<compile_context>
chip_gen: v7x
topology: tpu7x:2x2x1
jax: 0.10.0
libtpu: 0.0.40
codegen_flags: <defaults>
</compile_context>

<pallas_src>
import functools

import jax
import jax.numpy as jnp
from jax.experimental import pallas as pl
from jax.experimental.pallas import tpu as pltpu


def seres_block_kernel(wf_ref, aux_ref, mask_ref, x_ref, o_ref, stack_ref,
                       *, H, W, b_tile, c_r):
    """One grid step = b_tile images, lane-concatenated.

    wf_ref    : VMEM (2, C, 9C) bf16  BN-folded conv1/conv2 weights (tap-major cols)
    aux_ref   : VMEM (C, 2+2Cr) f32   [bias1 | bias2 | SE fc1^T | SE fc2]
    mask_ref  : VMEM (8, L)     f32   boundary masks for the 8 non-center taps
    x_ref     : VMEM (C, L)     f32   input block (L = b_tile*H*W, lane-dense)
    o_ref     : VMEM (C, L)           output block
    stack_ref : VMEM (9C, L)    bf16  im2col scratch (reused by both convs)
    """
    C, L = x_ref.shape
    HW = H * W

    # (lane shift, mask row) per tap; tap t = (dh+1)*3 + (dw+1) matches the
    # column blocks of the fused weight matrix.
    taps = []
    m = 0
    for dh in (-1, 0, 1):
        for dw in (-1, 0, 1):
            shift = (-(dh * W + dw)) % L
            if dh == 0 and dw == 0:
                taps.append((shift, None))
            else:
                taps.append((shift, m))
                m += 1

    masks = mask_ref[...]                                        # (8, L) f32

    def conv3x3(inp, w_bf, bias_col):
        """Fused 3x3 conv + BN bias: build im2col stack, one MXU matmul."""
        inp_f32 = inp.astype(jnp.float32)
        for t, (shift, mrow) in enumerate(taps):
            shifted = inp_f32 if shift == 0 else pltpu.roll(inp_f32, shift=shift, axis=1)
            if mrow is not None:
                shifted = shifted * masks[mrow:mrow + 1, :]      # zero out-of-image taps
            stack_ref[t * C:(t + 1) * C, :] = shifted.astype(jnp.bfloat16)
        acc = jnp.dot(w_bf, stack_ref[...],                      # (C,9C)@(9C,L) on MXU
                      preferred_element_type=jnp.float32)
        return acc + bias_col                                    # (C, L) f32

    aux = aux_ref[...]                                           # (C, 2+2Cr)
    b1 = aux[:, 0:1]
    b2 = aux[:, 1:2]
    fc1t = aux[:, 2:2 + c_r]                                     # (C, Cr)
    fc2w = aux[:, 2 + c_r:2 + 2 * c_r]                           # (C, Cr)

    out1 = jnp.maximum(conv3x3(x_ref[...], wf_ref[0], b1), 0.0)  # conv1+bn1+relu
    out2 = conv3x3(out1, wf_ref[1], b2)                          # conv2+bn2

    # SE attention + residual + relu, one lane-aligned image segment at a time.
    for b in range(b_tile):
        lo = b * HW
        o2 = out2[:, lo:lo + HW]                                 # (C, HW)
        xb = x_ref[:, lo:lo + HW].astype(jnp.float32)
        pooled = jnp.mean(o2, axis=1, keepdims=True)             # (C, 1)
        hidden = jnp.maximum(
            jnp.sum(fc1t * pooled, axis=0, keepdims=True), 0.0)  # (1, Cr)
        att = jax.nn.sigmoid(
            jnp.sum(fc2w * hidden, axis=1, keepdims=True))       # (C, 1)
        o_ref[:, lo:lo + HW] = jnp.maximum(o2 * att + xb, 0.0).astype(o_ref.dtype)


def _fold_bn_fused(conv_w, gamma, beta, mean, var, eps):
    """Fold eval-mode BN into the conv weight; return (C, 9C) fused weight + bias."""
    scale = gamma / jnp.sqrt(var + eps)                          # (C_out,)
    shift = beta - mean * scale                                  # (C_out,)
    w = conv_w * scale[:, None, None, None]                      # (C_out, C_in, 3, 3)
    co, ci = conv_w.shape[0], conv_w.shape[1]
    # W_f[co, t*C_in + ci] = w[co, ci, kh, kw] with tap t = kh*3 + kw.
    w_fused = jnp.transpose(w, (0, 2, 3, 1)).reshape(co, 9 * ci)
    return w_fused, shift


def _make_tap_masks(H, W, b_tile):
    """(8, b_tile*H*W) f32 masks for the 8 non-center taps (destination-keyed)."""
    HW = H * W
    h = jnp.arange(HW) // W
    w = jnp.arange(HW) % W
    rows = []
    for dh in (-1, 0, 1):
        for dw in (-1, 0, 1):
            if dh == 0 and dw == 0:
                continue
            rows.append((h + dh >= 0) & (h + dh < H) & (w + dw >= 0) & (w + dw < W))
    mask = jnp.stack(rows).astype(jnp.float32)                   # (8, HW)
    return jnp.tile(mask, (1, b_tile))                           # (8, b_tile*HW)


def _pick_b_tile(n, max_tile=4):
    """Largest divisor of n <= max_tile, preferring >= 4 grid steps (v7x cores)."""
    divisors = [d for d in range(1, n + 1) if n % d == 0 and d <= max_tile]
    preferred = [d for d in divisors if n // d >= 4]
    return max(preferred) if preferred else max(divisors)


def se_res_block(x, params, eps=1e-5):
    """x: (N, C, H, W) f32. SEResBlock forward (stride=1, downsample=None)."""
    N, C, H, W = x.shape
    HW = H * W
    b_tile = _pick_b_tile(N)
    L = b_tile * HW
    grid = (N // b_tile,)
    c_r = params["fc1_w"].shape[0]

    w1, s1 = _fold_bn_fused(params["conv1_w"], params["bn1_gamma"], params["bn1_beta"],
                            params["bn1_mean"], params["bn1_var"], eps)
    w2, s2 = _fold_bn_fused(params["conv2_w"], params["bn2_gamma"], params["bn2_beta"],
                            params["bn2_mean"], params["bn2_var"], eps)
    w_fused = jnp.stack([w1, w2]).astype(jnp.bfloat16)           # (2, C, 9C)
    aux = jnp.concatenate(
        [s1[:, None], s2[:, None], params["fc1_w"].T, params["fc2_w"]],
        axis=1).astype(jnp.float32)                              # (C, 2+2Cr)
    masks = _make_tap_masks(H, W, b_tile)                        # (8, L)

    # Channel-major, lane-dense layout: image b occupies lanes [b*HW, (b+1)*HW).
    x_cl = jnp.transpose(x, (1, 0, 2, 3)).reshape(C, N * HW)

    kernel = functools.partial(seres_block_kernel, H=H, W=W, b_tile=b_tile, c_r=c_r)

    out = pl.pallas_call(
        kernel,
        out_shape=jax.ShapeDtypeStruct((C, N * HW), x.dtype),
        grid=grid,
        in_specs=[
            pl.BlockSpec((2, C, 9 * C), lambda g: (0, 0, 0)),    # fused conv weights
            pl.BlockSpec((C, 2 + 2 * c_r), lambda g: (0, 0)),    # biases + SE weights
            pl.BlockSpec((8, L), lambda g: (0, 0)),              # boundary masks
            pl.BlockSpec((C, L), lambda g: (0, g)),              # input images
        ],
        out_specs=pl.BlockSpec((C, L), lambda g: (0, g)),
        scratch_shapes=[pltpu.VMEM((9 * C, L), jnp.bfloat16)],   # im2col stack
        compiler_params=pltpu.CompilerParams(
            dimension_semantics=("parallel",)),
    )(w_fused, aux, masks, x_cl)

    return jnp.transpose(out.reshape(C, N, H, W), (1, 0, 2, 3))


def reference(x, params, eps=1e-5):
    """Pure-JAX reference matching the PyTorch forward (eval-mode BN)."""
    def conv_bn(inp, w, gamma, beta, mean, var):
        conv = jax.lax.conv_general_dilated(
            inp, w, window_strides=(1, 1), padding=[(1, 1), (1, 1)],
            dimension_numbers=("NCHW", "OIHW", "NCHW"),
            precision=jax.lax.Precision.HIGHEST)
        scale = gamma / jnp.sqrt(var + eps)
        shift = beta - mean * scale
        return conv * scale[None, :, None, None] + shift[None, :, None, None]

    out = jax.nn.relu(conv_bn(x, params["conv1_w"], params["bn1_gamma"],
                              params["bn1_beta"], params["bn1_mean"],
                              params["bn1_var"]))
    out = conv_bn(out, params["conv2_w"], params["bn2_gamma"],
                  params["bn2_beta"], params["bn2_mean"], params["bn2_var"])
    pooled = jnp.mean(out, axis=(2, 3))                          # (N, C)
    hidden = jax.nn.relu(pooled @ params["fc1_w"].T)             # (N, C//r)
    att = jax.nn.sigmoid(hidden @ params["fc2_w"].T)             # (N, C)
    out = out * att[:, :, None, None]
    out = out + x                                                # identity branch
    return jax.nn.relu(out)


if __name__ == "__main__":
    key = jax.random.PRNGKey(0)
    ks = jax.random.split(key, 13)

    # SEResBlock(in_plane=32, num_plane=32, stride=1, reduction=16, downsample=None)
    N, C, H, W = 2, 32, 16, 16
    reduction = 16
    Cr = C // reduction

    x = jax.random.normal(ks[0], (N, C, H, W), jnp.float32)
    params = dict(
        conv1_w=0.1 * jax.random.normal(ks[1], (C, C, 3, 3), jnp.float32),
        conv2_w=0.1 * jax.random.normal(ks[2], (C, C, 3, 3), jnp.float32),
        bn1_gamma=1.0 + 0.1 * jax.random.normal(ks[3], (C,), jnp.float32),
        bn1_beta=0.1 * jax.random.normal(ks[4], (C,), jnp.float32),
        bn1_mean=0.1 * jax.random.normal(ks[5], (C,), jnp.float32),
        bn1_var=0.5 + jnp.abs(jax.random.normal(ks[6], (C,), jnp.float32)),
        bn2_gamma=1.0 + 0.1 * jax.random.normal(ks[7], (C,), jnp.float32),
        bn2_beta=0.1 * jax.random.normal(ks[8], (C,), jnp.float32),
        bn2_mean=0.1 * jax.random.normal(ks[9], (C,), jnp.float32),
        bn2_var=0.5 + jnp.abs(jax.random.normal(ks[10], (C,), jnp.float32)),
        fc1_w=0.3 * jax.random.normal(ks[11], (Cr, C), jnp.float32),
        fc2_w=0.3 * jax.random.normal(ks[12], (C, Cr), jnp.float32),
    )

    out = jax.block_until_ready(se_res_block(x, params))

    ref = reference(x, params)
    max_err = float(jnp.max(jnp.abs(out - ref)))
    assert jnp.allclose(out, ref, atol=3e-2, rtol=3e-2), f"max_err={max_err}"

    print("KERNEL_OK")
</pallas_src>

<mosaic_0001>
module attributes {stable_mosaic.version = 11 : i64} {
  func.func @seres_block_kernel(%arg0: i32, %arg1: memref<2x32x288xbf16, #tpu.memory_space<vmem>>, %arg2: memref<32x6xf32, #tpu.memory_space<vmem>>, %arg3: memref<8x512xf32, #tpu.memory_space<vmem>>, %arg4: memref<32x512xf32, #tpu.memory_space<vmem>>, %arg5: memref<32x512xf32, #tpu.memory_space<vmem>>, %arg6: memref<288x512xbf16, #tpu.memory_space<vmem>>) attributes {dimension_semantics = [#tpu.dimension_semantics<parallel>], iteration_bounds = array<i64: 1>, scalar_prefetch = 0 : i64, scratch_operands = 1 : i64, tpu.core_type = #tpu.core_type<tc>, window_params = [{pipeline_mode = #tpu.pipeline_mode<synchronous>, transform_indices = @transform_0, window_bounds = array<i64: 2, 32, 288>}, {pipeline_mode = #tpu.pipeline_mode<synchronous>, transform_indices = @transform_1, window_bounds = array<i64: 32, 6>}, {pipeline_mode = #tpu.pipeline_mode<synchronous>, transform_indices = @transform_2, window_bounds = array<i64: 8, 512>}, {transform_indices = @transform_3, window_bounds = array<i64: 32, 512>}, {transform_indices = @transform_4, window_bounds = array<i64: 32, 512>}]} {
    %c0 = arith.constant 0 : index
    %c0_0 = arith.constant 0 : index
    %0 = vector.load %arg3[%c0, %c0_0] : memref<8x512xf32, #tpu.memory_space<vmem>>, vector<8x512xf32>
    %c0_1 = arith.constant 0 : index
    %c0_2 = arith.constant 0 : index
    %1 = vector.load %arg2[%c0_1, %c0_2] : memref<32x6xf32, #tpu.memory_space<vmem>>, vector<32x6xf32>
    %2 = vector.extract_strided_slice %1 {offsets = [0, 0], sizes = [32, 1], strides = [1, 1]} : vector<32x6xf32> to vector<32x1xf32>
    %3 = vector.extract_strided_slice %1 {offsets = [0, 1], sizes = [32, 1], strides = [1, 1]} : vector<32x6xf32> to vector<32x1xf32>
    %4 = vector.extract_strided_slice %1 {offsets = [0, 2], sizes = [32, 2], strides = [1, 1]} : vector<32x6xf32> to vector<32x2xf32>
    %5 = vector.extract_strided_slice %1 {offsets = [0, 4], sizes = [32, 2], strides = [1, 1]} : vector<32x6xf32> to vector<32x2xf32>
    %c0_3 = arith.constant 0 : index
    %c0_4 = arith.constant 0 : index
    %6 = vector.load %arg4[%c0_3, %c0_4] : memref<32x512xf32, #tpu.memory_space<vmem>>, vector<32x512xf32>
    %c0_5 = arith.constant 0 : index
    %c0_6 = arith.constant 0 : index
    %c0_7 = arith.constant 0 : index
    %7 = vector.load %arg1[%c0_5, %c0_6, %c0_7] : memref<2x32x288xbf16, #tpu.memory_space<vmem>>, vector<1x32x288xbf16>
    %8 = vector.shape_cast %7 : vector<1x32x288xbf16> to vector<32x288xbf16>
    %c17_i32 = arith.constant 17 : i32
    %9 = tpu.dynamic_rotate %6 by %c17_i32 dim 1 : vector<32x512xf32>, i32 -> vector<32x512xf32>
    %10 = vector.extract_strided_slice %0 {offsets = [0, 0], sizes = [1, 512], strides = [1, 1]} : vector<8x512xf32> to vector<1x512xf32>
    %11 = vector.broadcast %10 : vector<1x512xf32> to vector<32x512xf32>
    %12 = arith.mulf %9, %11 : vector<32x512xf32>
    %13 = arith.truncf %12 : vector<32x512xf32> to vector<32x512xbf16>
    %c0_8 = arith.constant 0 : index
    %c0_9 = arith.constant 0 : index
    %14 = vector.load %arg6[%c0_8, %c0_9] : memref<288x512xbf16, #tpu.memory_space<vmem>>, vector<32x512xbf16>
    tpu.vector_store %arg6[%c0_8, %c0_9], %13 {strides = array<i32>} : memref<288x512xbf16, #tpu.memory_space<vmem>>, vector<32x512xbf16>,
    %c16_i32 = arith.constant 16 : i32
    %15 = tpu.dynamic_rotate %6 by %c16_i32 dim 1 : vector<32x512xf32>, i32 -> vector<32x512xf32>
    %16 = vector.extract_strided_slice %0 {offsets = [1, 0], sizes = [1, 512], strides = [1, 1]} : vector<8x512xf32> to vector<1x512xf32>
    %17 = vector.broadcast %16 : vector<1x512xf32> to vector<32x512xf32>
    %18 = arith.mulf %15, %17 : vector<32x512xf32>
    %19 = arith.truncf %18 : vector<32x512xf32> to vector<32x512xbf16>
    %c32 = arith.constant 32 : index
    %c0_10 = arith.constant 0 : index
    %20 = vector.load %arg6[%c32, %c0_10] : memref<288x512xbf16, #tpu.memory_space<vmem>>, vector<32x512xbf16>
    tpu.vector_store %arg6[%c32, %c0_10], %19 {strides = array<i32>} : memref<288x512xbf16, #tpu.memory_space<vmem>>, vector<32x512xbf16>,
    %c15_i32 = arith.constant 15 : i32
    %21 = tpu.dynamic_rotate %6 by %c15_i32 dim 1 : vector<32x512xf32>, i32 -> vector<32x512xf32>
    %22 = vector.extract_strided_slice %0 {offsets = [2, 0], sizes = [1, 512], strides = [1, 1]} : vector<8x512xf32> to vector<1x512xf32>
    %23 = vector.broadcast %22 : vector<1x512xf32> to vector<32x512xf32>
    %24 = arith.mulf %21, %23 : vector<32x512xf32>
    %25 = arith.truncf %24 : vector<32x512xf32> to vector<32x512xbf16>
    %c64 = arith.constant 64 : index
    %c0_11 = arith.constant 0 : index
    %26 = vector.load %arg6[%c64, %c0_11] : memref<288x512xbf16, #tpu.memory_space<vmem>>, vector<32x512xbf16>
    tpu.vector_store %arg6[%c64, %c0_11], %25 {strides = array<i32>} : memref<288x512xbf16, #tpu.memory_space<vmem>>, vector<32x512xbf16>,
    %c1_i32 = arith.constant 1 : i32
    %27 = tpu.dynamic_rotate %6 by %c1_i32 dim 1 : vector<32x512xf32>, i32 -> vector<32x512xf32>
    %28 = vector.extract_strided_slice %0 {offsets = [3, 0], sizes = [1, 512], strides = [1, 1]} : vector<8x512xf32> to vector<1x512xf32>
    %29 = vector.broadcast %28 : vector<1x512xf32> to vector<32x512xf32>
    %30 = arith.mulf %27, %29 : vector<32x512xf32>
    %31 = arith.truncf %30 : vector<32x512xf32> to vector<32x512xbf16>
    %c96 = arith.constant 96 : index
    %c0_12 = arith.constant 0 : index
    %32 = vector.load %arg6[%c96, %c0_12] : memref<288x512xbf16, #tpu.memory_space<vmem>>, vector<32x512xbf16>
    tpu.vector_store %arg6[%c96, %c0_12], %31 {strides = array<i32>} : memref<288x512xbf16, #tpu.memory_space<vmem>>, vector<32x512xbf16>,
    %33 = arith.truncf %6 : vector<32x512xf32> to vector<32x512xbf16>
    %c128 = arith.constant 128 : index
    %c0_13 = arith.constant 0 : index
    %34 = vector.load %arg6[%c128, %c0_13] : memref<288x512xbf16, #tpu.memory_space<vmem>>, vector<32x512xbf16>
    tpu.vector_store %arg6[%c128, %c0_13], %33 {strides = array<i32>} : memref<288x512xbf16, #tpu.memory_space<vmem>>, vector<32x512xbf16>,
    %c511_i32 = arith.constant 511 : i32
    %35 = tpu.dynamic_rotate %6 by %c511_i32 dim 1 : vector<32x512xf32>, i32 -> vector<32x512xf32>
    %36 = vector.extract_strided_slice %0 {offsets = [4, 0], sizes = [1, 512], strides = [1, 1]} : vector<8x512xf32> to vector<1x512xf32>
    %37 = vector.broadcast %36 : vector<1x512xf32> to vector<32x512xf32>
    %38 = arith.mulf %35, %37 : vector<32x512xf32>
    %39 = arith.truncf %38 : vector<32x512xf32> to vector<32x512xbf16>
    %c160 = arith.constant 160 : index
    %c0_14 = arith.constant 0 : index
    %40 = vector.load %arg6[%c160, %c0_14] : memref<288x512xbf16, #tpu.memory_space<vmem>>, vector<32x512xbf16>
    tpu.vector_store %arg6[%c160, %c0_14], %39 {strides = array<i32>} : memref<288x512xbf16, #tpu.memory_space<vmem>>, vector<32x512xbf16>,
    %c497_i32 = arith.constant 497 : i32
    %41 = tpu.dynamic_rotate %6 by %c497_i32 dim 1 : vector<32x512xf32>, i32 -> vector<32x512xf32>
    %42 = vector.extract_strided_slice %0 {offsets = [5, 0], sizes = [1, 512], strides = [1, 1]} : vector<8x512xf32> to vector<1x512xf32>
    %43 = vector.broadcast %42 : vector<1x512xf32> to vector<32x512xf32>
    %44 = arith.mulf %41, %43 : vector<32x512xf32>
    %45 = arith.truncf %44 : vector<32x512xf32> to vector<32x512xbf16>
    %c192 = arith.constant 192 : index
    %c0_15 = arith.constant 0 : index
    %46 = vector.load %arg6[%c192, %c0_15] : memref<288x512xbf16, #tpu.memory_space<vmem>>, vector<32x512xbf16>
    tpu.vector_store %arg6[%c192, %c0_15], %45 {strides = array<i32>} : memref<288x512xbf16, #tpu.memory_space<vmem>>, vector<32x512xbf16>,
    %c496_i32 = arith.constant 496 : i32
    %47 = tpu.dynamic_rotate %6 by %c496_i32 dim 1 : vector<32x512xf32>, i32 -> vector<32x512xf32>
    %48 = vector.extract_strided_slice %0 {offsets = [6, 0], sizes = [1, 512], strides = [1, 1]} : vector<8x512xf32> to vector<1x512xf32>
    %49 = vector.broadcast %48 : vector<1x512xf32> to vector<32x512xf32>
    %50 = arith.mulf %47, %49 : vector<32x512xf32>
    %51 = arith.truncf %50 : vector<32x512xf32> to vector<32x512xbf16>
    %c224 = arith.constant 224 : index
    %c0_16 = arith.constant 0 : index
    %52 = vector.load %arg6[%c224, %c0_16] : memref<288x512xbf16, #tpu.memory_space<vmem>>, vector<32x512xbf16>
    tpu.vector_store %arg6[%c224, %c0_16], %51 {strides = array<i32>} : memref<288x512xbf16, #tpu.memory_space<vmem>>, vector<32x512xbf16>,
    %c495_i32 = arith.constant 495 : i32
    %53 = tpu.dynamic_rotate %6 by %c495_i32 dim 1 : vector<32x512xf32>, i32 -> vector<32x512xf32>
    %54 = vector.extract_strided_slice %0 {offsets = [7, 0], sizes = [1, 512], strides = [1, 1]} : vector<8x512xf32> to vector<1x512xf32>
    %55 = vector.broadcast %54 : vector<1x512xf32> to vector<32x512xf32>
    %56 = arith.mulf %53, %55 : vector<32x512xf32>
    %57 = arith.truncf %56 : vector<32x512xf32> to vector<32x512xbf16>
    %c256 = arith.constant 256 : index
    %c0_17 = arith.constant 0 : index
    %58 = vector.load %arg6[%c256, %c0_17] : memref<288x512xbf16, #tpu.memory_space<vmem>>, vector<32x512xbf16>
    tpu.vector_store %arg6[%c256, %c0_17], %57 {strides = array<i32>} : memref<288x512xbf16, #tpu.memory_space<vmem>>, vector<32x512xbf16>,
    %c0_18 = arith.constant 0 : index
    %c0_19 = arith.constant 0 : index
    %59 = vector.load %arg6[%c0_18, %c0_19] : memref<288x512xbf16, #tpu.memory_space<vmem>>, vector<288x512xbf16>
    %cst = arith.constant dense<0.000000e+00> : vector<32x512xf32>
    %60 = tpu.matmul %8, %59, %cst {dimension_numbers = #tpu.dot_dimension_numbers<[1], [0], [0], [1], [0, 0, 1, 1], [], []>} : vector<32x288xbf16>, vector<288x512xbf16>, vector<32x512xf32> -> vector<32x512xf32>
    %61 = vector.broadcast %2 : vector<32x1xf32> to vector<32x512xf32>
    %62 = arith.addf %60, %61 : vector<32x512xf32>
    %cst_20 = arith.constant 0.000000e+00 : f32
    %63 = vector.broadcast %cst_20 : f32 to vector<32x512xf32>
    %64 = arith.maximumf %62, %63 : vector<32x512xf32>
    %c1 = arith.constant 1 : index
    %c0_21 = arith.constant 0 : index
    %c0_22 = arith.constant 0 : index
    %65 = vector.load %arg1[%c1, %c0_21, %c0_22] : memref<2x32x288xbf16, #tpu.memory_space<vmem>>, vector<1x32x288xbf16>
    %66 = vector.shape_cast %65 : vector<1x32x288xbf16> to vector<32x288xbf16>
    %c17_i32_23 = arith.constant 17 : i32
    %67 = tpu.dynamic_rotate %64 by %c17_i32_23 dim 1 : vector<32x512xf32>, i32 -> vector<32x512xf32>
    %68 = vector.extract_strided_slice %0 {offsets = [0, 0], sizes = [1, 512], strides = [1, 1]} : vector<8x512xf32> to vector<1x512xf32>
    %69 = vector.broadcast %68 : vector<1x512xf32> to vector<32x512xf32>
    %70 = arith.mulf %67, %69 : vector<32x512xf32>
    %71 = arith.truncf %70 : vector<32x512xf32> to vector<32x512xbf16>
    %c0_24 = arith.constant 0 : index
    %c0_25 = arith.constant 0 : index
    %72 = vector.load %arg6[%c0_24, %c0_25] : memref<288x512xbf16, #tpu.memory_space<vmem>>, vector<32x512xbf16>
    tpu.vector_store %arg6[%c0_24, %c0_25], %71 {strides = array<i32>} : memref<288x512xbf16, #tpu.memory_space<vmem>>, vector<32x512xbf16>,
    %c16_i32_26 = arith.constant 16 : i32
    %73 = tpu.dynamic_rotate %64 by %c16_i32_26 dim 1 : vector<32x512xf32>, i32 -> vector<32x512xf32>
    %74 = vector.extract_strided_slice %0 {offsets = [1, 0], sizes = [1, 512], strides = [1, 1]} : vector<8x512xf32> to vector<1x512xf32>
    %75 = vector.broadcast %74 : vector<1x512xf32> to vector<32x512xf32>
    %76 = arith.mulf %73, %75 : vector<32x512xf32>
    %77 = arith.truncf %76 : vector<32x512xf32> to vector<32x512xbf16>
    %c32_27 = arith.constant 32 : index
    %c0_28 = arith.constant 0 : index
    %78 = vector.load %arg6[%c32_27, %c0_28] : memref<288x512xbf16, #tpu.memory_space<vmem>>, vector<32x512xbf16>
    tpu.vector_store %arg6[%c32_27, %c0_28], %77 {strides = array<i32>} : memref<288x512xbf16, #tpu.memory_space<vmem>>, vector<32x512xbf16>,
    %c15_i32_29 = arith.constant 15 : i32
    %79 = tpu.dynamic_rotate %64 by %c15_i32_29 dim 1 : vector<32x512xf32>, i32 -> vector<32x512xf32>
    %80 = vector.extract_strided_slice %0 {offsets = [2, 0], sizes = [1, 512], strides = [1, 1]} : vector<8x512xf32> to vector<1x512xf32>
    %81 = vector.broadcast %80 : vector<1x512xf32> to vector<32x512xf32>
    %82 = arith.mulf %79, %81 : vector<32x512xf32>
    %83 = arith.truncf %82 : vector<32x512xf32> to vector<32x512xbf16>
    %c64_30 = arith.constant 64 : index
    %c0_31 = arith.constant 0 : index
    %84 = vector.load %arg6[%c64_30, %c0_31] : memref<288x512xbf16, #tpu.memory_space<vmem>>, vector<32x512xbf16>
    tpu.vector_store %arg6[%c64_30, %c0_31], %83 {strides = array<i32>} : memref<288x512xbf16, #tpu.memory_space<vmem>>, vector<32x512xbf16>,
    %c1_i32_32 = arith.constant 1 : i32
    %85 = tpu.dynamic_rotate %64 by %c1_i32_32 dim 1 : vector<32x512xf32>, i32 -> vector<32x512xf32>
    %86 = vector.extract_strided_slice %0 {offsets = [3, 0], sizes = [1, 512], strides = [1, 1]} : vector<8x512xf32> to vector<1x512xf32>
    %87 = vector.broadcast %86 : vector<1x512xf32> to vector<32x512xf32>
    %88 = arith.mulf %85, %87 : vector<32x512xf32>
    %89 = arith.truncf %88 : vector<32x512xf32> to vector<32x512xbf16>
    %c96_33 = arith.constant 96 : index
    %c0_34 = arith.constant 0 : index
    %90 = vector.load %arg6[%c96_33, %c0_34] : memref<288x512xbf16, #tpu.memory_space<vmem>>, vector<32x512xbf16>
    tpu.vector_store %arg6[%c96_33, %c0_34], %89 {strides = array<i32>} : memref<288x512xbf16, #tpu.memory_space<vmem>>, vector<32x512xbf16>,
    %91 = arith.truncf %64 : vector<32x512xf32> to vector<32x512xbf16>
    %c128_35 = arith.constant 128 : index
    %c0_36 = arith.constant 0 : index
    %92 = vector.load %arg6[%c128_35, %c0_36] : memref<288x512xbf16, #tpu.memory_space<vmem>>, vector<32x512xbf16>
    tpu.vector_store %arg6[%c128_35, %c0_36], %91 {strides = array<i32>} : memref<288x512xbf16, #tpu.memory_space<vmem>>, vector<32x512xbf16>,
    %c511_i32_37 = arith.constant 511 : i32
    %93 = tpu.dynamic_rotate %64 by %c511_i32_37 dim 1 : vector<32x512xf32>, i32 -> vector<32x512xf32>
    %94 = vector.extract_strided_slice %0 {offsets = [4, 0], sizes = [1, 512], strides = [1, 1]} : vector<8x512xf32> to vector<1x512xf32>
    %95 = vector.broadcast %94 : vector<1x512xf32> to vector<32x512xf32>
    %96 = arith.mulf %93, %95 : vector<32x512xf32>
    %97 = arith.truncf %96 : vector<32x512xf32> to vector<32x512xbf16>
    %c160_38 = arith.constant 160 : index
    %c0_39 = arith.constant 0 : index
    %98 = vector.load %arg6[%c160_38, %c0_39] : memref<288x512xbf16, #tpu.memory_space<vmem>>, vector<32x512xbf16>
    tpu.vector_store %arg6[%c160_38, %c0_39], %97 {strides = array<i32>} : memref<288x512xbf16, #tpu.memory_space<vmem>>, vector<32x512xbf16>,
    %c497_i32_40 = arith.constant 497 : i32
    %99 = tpu.dynamic_rotate %64 by %c497_i32_40 dim 1 : vector<32x512xf32>, i32 -> vector<32x512xf32>
    %100 = vector.extract_strided_slice %0 {offsets = [5, 0], sizes = [1, 512], strides = [1, 1]} : vector<8x512xf32> to vector<1x512xf32>
    %101 = vector.broadcast %100 : vector<1x512xf32> to vector<32x512xf32>
    %102 = arith.mulf %99, %101 : vector<32x512xf32>
    %103 = arith.truncf %102 : vector<32x512xf32> to vector<32x512xbf16>
    %c192_41 = arith.constant 192 : index
    %c0_42 = arith.constant 0 : index
    %104 = vector.load %arg6[%c192_41, %c0_42] : memref<288x512xbf16, #tpu.memory_space<vmem>>, vector<32x512xbf16>
    tpu.vector_store %arg6[%c192_41, %c0_42], %103 {strides = array<i32>} : memref<288x512xbf16, #tpu.memory_space<vmem>>, vector<32x512xbf16>,
    %c496_i32_43 = arith.constant 496 : i32
    %105 = tpu.dynamic_rotate %64 by %c496_i32_43 dim 1 : vector<32x512xf32>, i32 -> vector<32x512xf32>
    %106 = vector.extract_strided_slice %0 {offsets = [6, 0], sizes = [1, 512], strides = [1, 1]} : vector<8x512xf32> to vector<1x512xf32>
    %107 = vector.broadcast %106 : vector<1x512xf32> to vector<32x512xf32>
    %108 = arith.mulf %105, %107 : vector<32x512xf32>
    %109 = arith.truncf %108 : vector<32x512xf32> to vector<32x512xbf16>
    %c224_44 = arith.constant 224 : index
    %c0_45 = arith.constant 0 : index
    %110 = vector.load %arg6[%c224_44, %c0_45] : memref<288x512xbf16, #tpu.memory_space<vmem>>, vector<32x512xbf16>
    tpu.vector_store %arg6[%c224_44, %c0_45], %109 {strides = array<i32>} : memref<288x512xbf16, #tpu.memory_space<vmem>>, vector<32x512xbf16>,
    %c495_i32_46 = arith.constant 495 : i32
    %111 = tpu.dynamic_rotate %64 by %c495_i32_46 dim 1 : vector<32x512xf32>, i32 -> vector<32x512xf32>
    %112 = vector.extract_strided_slice %0 {offsets = [7, 0], sizes = [1, 512], strides = [1, 1]} : vector<8x512xf32> to vector<1x512xf32>
    %113 = vector.broadcast %112 : vector<1x512xf32> to vector<32x512xf32>
    %114 = arith.mulf %111, %113 : vector<32x512xf32>
    %115 = arith.truncf %114 : vector<32x512xf32> to vector<32x512xbf16>
    %c256_47 = arith.constant 256 : index
    %c0_48 = arith.constant 0 : index
    %116 = vector.load %arg6[%c256_47, %c0_48] : memref<288x512xbf16, #tpu.memory_space<vmem>>, vector<32x512xbf16>
    tpu.vector_store %arg6[%c256_47, %c0_48], %115 {strides = array<i32>} : memref<288x512xbf16, #tpu.memory_space<vmem>>, vector<32x512xbf16>,
    %c0_49 = arith.constant 0 : index
    %c0_50 = arith.constant 0 : index
    %117 = vector.load %arg6[%c0_49, %c0_50] : memref<288x512xbf16, #tpu.memory_space<vmem>>, vector<288x512xbf16>
    %cst_51 = arith.constant dense<0.000000e+00> : vector<32x512xf32>
    %118 = tpu.matmul %66, %117, %cst_51 {dimension_numbers = #tpu.dot_dimension_numbers<[1], [0], [0], [1], [0, 0, 1, 1], [], []>} : vector<32x288xbf16>, vector<288x512xbf16>, vector<32x512xf32> -> vector<32x512xf32>
    %119 = vector.broadcast %3 : vector<32x1xf32> to vector<32x512xf32>
    %120 = arith.addf %118, %119 : vector<32x512xf32>
    %121 = vector.extract_strided_slice %120 {offsets = [0, 0], sizes = [32, 256], strides = [1, 1]} : vector<32x512xf32> to vector<32x256xf32>
    %c0_52 = arith.constant 0 : index
    %c0_53 = arith.constant 0 : index
    %122 = vector.load %arg4[%c0_52, %c0_53] : memref<32x512xf32, #tpu.memory_space<vmem>>, vector<32x256xf32>
    %cst_54 = arith.constant dense<0.000000e+00> : vector<32xf32>
    %123 = vector.multi_reduction <add>, %121, %cst_54 [1] : vector<32x256xf32> to vector<32xf32>
    %124 = vector.shape_cast %123 : vector<32xf32> to vector<32x1xf32>
    %cst_55 = arith.constant 2.560000e+02 : f32
    %125 = vector.broadcast %cst_55 : f32 to vector<32x1xf32>
    %126 = arith.divf %124, %125 : vector<32x1xf32>
    %127 = vector.broadcast %126 : vector<32x1xf32> to vector<32x2xf32>
    %128 = arith.mulf %4, %127 : vector<32x2xf32>
    %cst_56 = arith.constant dense<0.000000e+00> : vector<2xf32>
    %129 = vector.multi_reduction <add>, %128, %cst_56 [0] : vector<32x2xf32> to vector<2xf32>
    %130 = vector.shape_cast %129 : vector<2xf32> to vector<1x2xf32>
    %cst_57 = arith.constant 0.000000e+00 : f32
    %131 = vector.broadcast %cst_57 : f32 to vector<1x2xf32>
    %132 = arith.maximumf %130, %131 : vector<1x2xf32>
    %133 = vector.broadcast %132 : vector<1x2xf32> to vector<32x2xf32>
    %134 = arith.mulf %5, %133 : vector<32x2xf32>
    %cst_58 = arith.constant dense<0.000000e+00> : vector<32xf32>
    %135 = vector.multi_reduction <add>, %134, %cst_58 [1] : vector<32x2xf32> to vector<32xf32>
    %136 = vector.shape_cast %135 : vector<32xf32> to vector<32x1xf32>
    %137 = arith.negf %136 : vector<32x1xf32>
    %138 = math.exp %137 : vector<32x1xf32>
    %cst_59 = arith.constant 1.000000e+00 : f32
    %139 = vector.broadcast %cst_59 : f32 to vector<32x1xf32>
    %140 = arith.addf %139, %138 : vector<32x1xf32>
    %141 = arith.divf %139, %140 : vector<32x1xf32>
    %142 = vector.broadcast %141 : vector<32x1xf32> to vector<32x256xf32>
    %143 = arith.mulf %121, %142 : vector<32x256xf32>
    %144 = arith.addf %143, %122 : vector<32x256xf32>
    %cst_60 = arith.constant 0.000000e+00 : f32
    %145 = vector.broadcast %cst_60 : f32 to vector<32x256xf32>
    %146 = arith.maximumf %144, %145 : vector<32x256xf32>
    %c0_61 = arith.constant 0 : index
    %c0_62 = arith.constant 0 : index
    %147 = vector.load %arg5[%c0_61, %c0_62] : memref<32x512xf32, #tpu.memory_space<vmem>>, vector<32x256xf32>
    tpu.vector_store %arg5[%c0_61, %c0_62], %146 {strides = array<i32>} : memref<32x512xf32, #tpu.memory_space<vmem>>, vector<32x256xf32>,
    %148 = vector.extract_strided_slice %120 {offsets = [0, 256], sizes = [32, 256], strides = [1, 1]} : vector<32x512xf32> to vector<32x256xf32>
    %c0_63 = arith.constant 0 : index
    %c256_64 = arith.constant 256 : index
    %149 = vector.load %arg4[%c0_63, %c256_64] : memref<32x512xf32, #tpu.memory_space<vmem>>, vector<32x256xf32>
    %cst_65 = arith.constant dense<0.000000e+00> : vector<32xf32>
    %150 = vector.multi_reduction <add>, %148, %cst_65 [1] : vector<32x256xf32> to vector<32xf32>
    %151 = vector.shape_cast %150 : vector<32xf32> to vector<32x1xf32>
    %cst_66 = arith.constant 2.560000e+02 : f32
    %152 = vector.broadcast %cst_66 : f32 to vector<32x1xf32>
    %153 = arith.divf %151, %152 : vector<32x1xf32>
    %154 = vector.broadcast %153 : vector<32x1xf32> to vector<32x2xf32>
    %155 = arith.mulf %4, %154 : vector<32x2xf32>
    %cst_67 = arith.constant dense<0.000000e+00> : vector<2xf32>
    %156 = vector.multi_reduction <add>, %155, %cst_67 [0] : vector<32x2xf32> to vector<2xf32>
    %157 = vector.shape_cast %156 : vector<2xf32> to vector<1x2xf32>
    %cst_68 = arith.constant 0.000000e+00 : f32
    %158 = vector.broadcast %cst_68 : f32 to vector<1x2xf32>
    %159 = arith.maximumf %157, %158 : vector<1x2xf32>
    %160 = vector.broadcast %159 : vector<1x2xf32> to vector<32x2xf32>
    %161 = arith.mulf %5, %160 : vector<32x2xf32>
    %cst_69 = arith.constant dense<0.000000e+00> : vector<32xf32>
    %162 = vector.multi_reduction <add>, %161, %cst_69 [1] : vector<32x2xf32> to vector<32xf32>
    %163 = vector.shape_cast %162 : vector<32xf32> to vector<32x1xf32>
    %164 = arith.negf %163 : vector<32x1xf32>
    %165 = math.exp %164 : vector<32x1xf32>
    %cst_70 = arith.constant 1.000000e+00 : f32
    %166 = vector.broadcast %cst_70 : f32 to vector<32x1xf32>
    %167 = arith.addf %166, %165 : vector<32x1xf32>
    %168 = arith.divf %166, %167 : vector<32x1xf32>
    %169 = vector.broadcast %168 : vector<32x1xf32> to vector<32x256xf32>
    %170 = arith.mulf %148, %169 : vector<32x256xf32>
    %171 = arith.addf %170, %149 : vector<32x256xf32>
    %cst_71 = arith.constant 0.000000e+00 : f32
    %172 = vector.broadcast %cst_71 : f32 to vector<32x256xf32>
    %173 = arith.maximumf %171, %172 : vector<32x256xf32>
    %c0_72 = arith.constant 0 : index
    %c256_73 = arith.constant 256 : index
    %174 = vector.load %arg5[%c0_72, %c256_73] : memref<32x512xf32, #tpu.memory_space<vmem>>, vector<32x256xf32>
    tpu.vector_store %arg5[%c0_72, %c256_73], %173 {strides = array<i32>} : memref<32x512xf32, #tpu.memory_space<vmem>>, vector<32x256xf32>,
    return
  }
  func.func @transform_0(%arg0: i32) -> (i32, i32, i32) {
    %c0_i32 = arith.constant 0 : i32
    %c0_i32_0 = arith.constant 0 : i32
    %c0_i32_1 = arith.constant 0 : i32
    %c0_i32_2 = arith.constant 0 : i32
    return %c0_i32, %c0_i32_0, %c0_i32_1 : i32, i32, i32
  }
  func.func @transform_1(%arg0: i32) -> (i32, i32) {
    %c0_i32 = arith.constant 0 : i32
    %c0_i32_0 = arith.constant 0 : i32
    %c0_i32_1 = arith.constant 0 : i32
    return %c0_i32, %c0_i32_0 : i32, i32
  }
  func.func @transform_2(%arg0: i32) -> (i32, i32) {
    %c0_i32 = arith.constant 0 : i32
    %c0_i32_0 = arith.constant 0 : i32
    %c0_i32_1 = arith.constant 0 : i32
    return %c0_i32, %c0_i32_0 : i32, i32
  }
  func.func @transform_3(%arg0: i32) -> (i32, i32) {
    %c0_i32 = arith.constant 0 : i32
    %c0_i32_0 = arith.constant 0 : i32
    return %c0_i32, %arg0 : i32, i32
  }
  func.func @transform_4(%arg0: i32) -> (i32, i32) {
    %c0_i32 = arith.constant 0 : i32
    %c0_i32_0 = arith.constant 0 : i32
    return %c0_i32, %arg0 : i32, i32
  }
}

</mosaic_0001>

<bundles_post_ra>
// kernel: tpu_custom_call.1
= control target key start
LH: loop header
LB: loop body
LE: loop exit
PB: predicated region body
PF: predicated region fallthrough
CT: control target
= control target key end

     0   :  { %9 = vsyncpa [#allocation4], 0  ;;  %s4862_s0 = inlined_call_operand.hbm [shape: bf16[2,32,288], index: 0, kind: input, shape index: {}]   ;;  %s4863_s1 = inlined_call_operand.vmem [shape: f32[32,6], index: 1, kind: input, shape index: {}]   ;;  %s4864_s2 = inlined_call_operand.vmem [shape: f32[8,512], index: 2, kind: input, shape index: {}]   ;;  %s4865_s3 = inlined_call_operand.hbm [shape: f32[32,512], index: 3, kind: input, shape index: {}]   ;;  %s4866_s4 = inlined_call_operand.hbm [shape: f32[32,512], index: 4, kind: output, shape index: {}]  }
   0x1   :  { %10 = vsyncpa [#allocation7], 0 }
   0x2   :  { %11 = vsyncpa [#allocation5], 0  ;;  %s2763_s15 = smov [#allocation3]   ;;  %s2691_s19 = scalar_lea.hbm %s4862_s0, 1536 }
   0x3   :  { %s17_s16 = sshll.u32 %s2763_s15, 4  ;;  %p2692_p0 = scmp.ne.s32.totalorder %s4862_s0, %s2691_s19  ;;  %s18_s16 = int_to_ptr.vmem [resolvable:$true] %s17_s16 }
   0x4   :  { %p2695_p1 = scmp.lt.u32.totalorder %s2691_s19, %s4862_s0 }
   0x6   :  { %p2697_p2 = pnand %p2695_p1, %p2692_p0 }
   0x8   :  { %2700 = shalt.err (!%p2697_p2)
}
   0x9   :  { %s2701_s24 = scalar_lea.vmem %s18_s16, 1536  ;;  %p2706_p4 = scmp.lt.s32.totalorder %s18_s16, %s18_s16 }
   0xa   :  { %p2702_p3 = scmp.ne.s32.totalorder %s18_s16, %s2701_s24  ;;  %p2707_p5 = scmp.lt.s32.totalorder %s2701_s24, %s2701_s24 }
   0xc   :  { %p2708_p6 = por %p2707_p5, %p2706_p4 }
   0xe   :  { %p2709_p7 = pnand %p2708_p6, %p2702_p3 }
  0x10   :  { %2712 = shalt.err (!%p2709_p7)
}
  0x11   :  { %s2764_s25 = smov 192   ;;  %s2765_s26 = smov 12  }
  0x12   :  { %23 = dma.hbm_to_vmem [thread:$0]  %s4862_s0, 1536, %s18_s16, [#allocation4], %s2764_s25, %s2764_s25, %s2765_s26  }
  0x13   :  { %s2766_s29 = smov [#allocation6]   ;;  %s2713_s7 = scalar_lea.hbm %s4865_s3, 2048 }
  0x14   :  { %s33_s30 = sshll.u32 %s2766_s29, 4  ;;  %p2714_p8 = scmp.ne.s32.totalorder %s4865_s3, %s2713_s7  ;;  %s34_s30 = int_to_ptr.vmem [resolvable:$true] %s33_s30 }
  0x15   :  { %p2717_p9 = scmp.lt.u32.totalorder %s2713_s7, %s4865_s3 }
  0x17   :  { %p2719_p10 = pnand %p2717_p9, %p2714_p8 }
  0x19   :  { %2722 = shalt.err (!%p2719_p10)
}
  0x1a   :  { %s2723_s12 = scalar_lea.vmem %s34_s30, 2048  ;;  %p2728_p12 = scmp.lt.s32.totalorder %s34_s30, %s34_s30 }
  0x1b   :  { %p2724_p11 = scmp.ne.s32.totalorder %s34_s30, %s2723_s12  ;;  %p2729_p13 = scmp.lt.s32.totalorder %s2723_s12, %s2723_s12 }
  0x1d   :  { %p2730_p0 = por %p2729_p13, %p2728_p12 }
  0x1f   :  { %p2731_p1 = pnand %p2730_p0, %p2724_p11 }
  0x21   :  { %2734 = shalt.err (!%p2731_p1)
}
  0x22   :  { %s2767_s0 = smov 512   ;;  %s2768_s13 = smov 32  }
  0x23   :  { %39 = dma.hbm_to_vmem [thread:$0]  %s4865_s3, 2048, %s34_s30, [#allocation7], %s2767_s0, %s2767_s0, %s2768_s13  }
  0x24   :  { %2757 = dma.done.wait [#allocation4], 1536  }
  0x25   :  { %2758 = vsyncadd [#allocation4], 4294965760 }
  0x26   :  { %2759 = dma.done.wait [#allocation7], 2048  }
  0x27   :  { %2760 = vsyncadd [#allocation7], 4294965248  ;;  %v2834_v0 = vld [vmem:[#allocation6 + $0x8] sm:$0xff]  ;;  %v2836_v1 = vld [vmem:[#allocation6] sm:$0xff]  ;;  %s2769_s16 = smov 17   ;;  %s2770_s3 = smov 16   ;;  %v111_v16 = vlaneseq }
  0x28   :  { %87 = vrot.lane.b32.xlu1 %v2834_v0, %s2769_s16  ;;  %79 = vrot.lane.b32.xlu0 %v2836_v1, %s2769_s16  ;;  %v2842_v2 = vld [vmem:[#allocation6 + $0x28] sm:$0xff]  ;;  %v2844_v3 = vld [vmem:[#allocation6 + $0x20] sm:$0xff]  ;;  %v2850_v4 = vld [vmem:[#allocation6 + $0x30] sm:$0xff]  ;;  %s2771_s17 = smov 15   ;;  %s2772_s18 = smov 1   ;;  %vm995_vm8 = vcmask 261120  }
  0x29   :  { %v2852_v5 = vld [vmem:[#allocation6 + $0x10] sm:$0xff]  ;;  %v2854_v6 = vld [vmem:[#allocation6 + $0x38] sm:$0xff]  ;;  %v2866_v8 = vld [vmem:[#allocation6 + $0x60] sm:$0xff]  ;;  %v2978_v17 = vshrl.u32 %v111_v16, 7  ;;  %v2980_v18 = vand.u32 127, %v111_v16  ;;  %s2773_s27 = smov 127  }
  0x2a   :  { %v2856_v7 = vld [vmem:[#allocation6 + $0x18] sm:$0xff]  ;;  %v2868_v9 = vld [vmem:[#allocation6 + $0x40] sm:$0xff]  ;;  %v2874_v10 = vld [vmem:[#allocation6 + $0x68] sm:$0xff]  ;;  %s2774_s28 = smov 113   ;;  %s2775_s29 = smov 112   ;;  %vm2260_vm9 = vcmask 31760  }
  0x2b   :  { %v2876_v11 = vld [vmem:[#allocation6 + $0x48] sm:$0xff]  ;;  %v2882_v12 = vld [vmem:[#allocation6 + $0x70] sm:$0xff]  ;;  %v2890_v14 = vld [vmem:[#allocation6 + $0x78] sm:$0xff]  ;;  %v132_v19 = vsub.s32 0, %v2978_v17  ;;  %vm113_vm0 = vcmp.lt.s32.totalorder %v2980_v18, 17  ;;  %vm210_vm1 = vcmp.lt.s32.totalorder %v2980_v18, 16 }
  0x2c   :  { %89 = vrot.lane.b32.xlu1 %v2842_v2, %s2769_s16  ;;  %81 = vrot.lane.b32.xlu0 %v2844_v3, %s2769_s16  ;;  %v2884_v13 = vld [vmem:[#allocation6 + $0x50] sm:$0xff]  ;;  %v2892_v15 = vld [vmem:[#allocation6 + $0x58] sm:$0xff]  ;;  %v2990_v20 = vld [vmem:[%s4864_s2 + $0x8] sm:$0xff]  ;;  %vm307_vm2 = vcmp.lt.s32.totalorder %v2980_v18, 15  ;;  %vm404_vm3 = vcmp.lt.s32.totalorder %v2980_v18, 1  ;;  %s2776_s30 = smov 111  }
  0x2d   :  { %v2998_v23 = vrot.slane %v2990_v20, %v132_v19  ;;  %v3007_v28 = vld [vmem:[%s4864_s2 + $0x10] sm:$0xff]  ;;  %v3018_v31 = vld [vmem:[%s4864_s2] sm:$0xff]  ;;  %v3023_v32 = vld [vmem:[%s4864_s2 + $0x18] sm:$0xff]  ;;  %vm517_vm4 = vcmp.lt.s32.totalorder %v2980_v18, 127  ;;  %vm614_vm5 = vcmp.lt.s32.totalorder %v2980_v18, 113  ;;  %vm711_vm6 = vcmp.lt.s32.totalorder %v2980_v18, 112 }
  0x2e   :  { %v3026_v36 = vrot.slane %v3007_v28, %v132_v19  ;;  %v3037_v39 = vrot.slane %v3018_v31, %v132_v19  ;;  %v3040_v40 = vrot.slane %v3023_v32, %v132_v19  ;;  %vm808_vm7 = vcmp.lt.s32.totalorder %v2980_v18, 111  ;;  %v2650_v18 = vld [vmem:[#allocation3 + $0x50] ss:$12 sps:$4 sm:$0xff]  }
  0x2f   :  { %vm2299_vm10 = vcmask 15360  }
  0x30   :  { %97 = vrot.lane.b32.xlu1 %v2850_v4, %s2769_s16  ;;  %95 = vrot.lane.b32.xlu0 %v2852_v5, %s2769_s16 }
  0x34   :  { %105 = vrot.lane.b32.xlu1 %v2854_v6, %s2769_s16  ;;  %103 = vrot.lane.b32.xlu0 %v2856_v7, %s2769_s16 }
  0x38   :  { %85 = vrot.lane.b32.xlu1 %v2866_v8, %s2769_s16  ;;  %83 = vrot.lane.b32.xlu0 %v2868_v9, %s2769_s16 }
  0x3c   :  { %93 = vrot.lane.b32.xlu1 %v2874_v10, %s2769_s16  ;;  %91 = vrot.lane.b32.xlu0 %v2876_v11, %s2769_s16 }
  0x40   :  { %101 = vrot.lane.b32.xlu1 %v2882_v12, %s2769_s16  ;;  %99 = vrot.lane.b32.xlu0 %v2884_v13, %s2769_s16 }
  0x44   :  { %109 = vrot.lane.b32.xlu1 %v2890_v14, %s2769_s16  ;;  %107 = vrot.lane.b32.xlu0 %v2892_v15, %s2769_s16 }
  0x48   :  { %180 = vrot.lane.b32.xlu1 %v2844_v3, %s2770_s3  ;;  %178 = vrot.lane.b32.xlu0 %v2836_v1, %s2770_s3 }
  0x4c   :  { %188 = vrot.lane.b32.xlu1 %v2842_v2, %s2770_s3  ;;  %186 = vrot.lane.b32.xlu0 %v2834_v0, %s2770_s3 }
  0x50   :  { %196 = vrot.lane.b32.xlu1 %v2850_v4, %s2770_s3  ;;  %194 = vrot.lane.b32.xlu0 %v2852_v5, %s2770_s3 }
  0x54   :  { %204 = vrot.lane.b32.xlu1 %v2854_v6, %s2770_s3  ;;  %202 = vrot.lane.b32.xlu0 %v2856_v7, %s2770_s3 }
  0x58   :  { %184 = vrot.lane.b32.xlu1 %v2866_v8, %s2770_s3  ;;  %182 = vrot.lane.b32.xlu0 %v2868_v9, %s2770_s3 }
  0x5c   :  { %192 = vrot.lane.b32.xlu1 %v2874_v10, %s2770_s3  ;;  %190 = vrot.lane.b32.xlu0 %v2876_v11, %s2770_s3 }
  0x60   :  { %200 = vrot.lane.b32.xlu1 %v2882_v12, %s2770_s3  ;;  %198 = vrot.lane.b32.xlu0 %v2884_v13, %s2770_s3 }
  0x64   :  { %208 = vrot.lane.b32.xlu1 %v2890_v14, %s2770_s3  ;;  %206 = vrot.lane.b32.xlu0 %v2892_v15, %s2770_s3 }
  0x68   :  { %277 = vrot.lane.b32.xlu1 %v2844_v3, %s2771_s17  ;;  %275 = vrot.lane.b32.xlu0 %v2836_v1, %s2771_s17 }
  0x6c   :  { %285 = vrot.lane.b32.xlu1 %v2842_v2, %s2771_s17  ;;  %283 = vrot.lane.b32.xlu0 %v2834_v0, %s2771_s17 }
  0x70   :  { %293 = vrot.lane.b32.xlu1 %v2850_v4, %s2771_s17  ;;  %291 = vrot.lane.b32.xlu0 %v2852_v5, %s2771_s17 }
  0x74   :  { %301 = vrot.lane.b32.xlu1 %v2854_v6, %s2771_s17  ;;  %299 = vrot.lane.b32.xlu0 %v2856_v7, %s2771_s17 }
  0x78   :  { %281 = vrot.lane.b32.xlu1 %v2866_v8, %s2771_s17  ;;  %279 = vrot.lane.b32.xlu0 %v2868_v9, %s2771_s17 }
  0x7c   :  { %289 = vrot.lane.b32.xlu1 %v2874_v10, %s2771_s17  ;;  %287 = vrot.lane.b32.xlu0 %v2876_v11, %s2771_s17 }
  0x80   :  { %297 = vrot.lane.b32.xlu1 %v2882_v12, %s2771_s17  ;;  %295 = vrot.lane.b32.xlu0 %v2884_v13, %s2771_s17 }
  0x84   :  { %305 = vrot.lane.b32.xlu1 %v2890_v14, %s2771_s17  ;;  %303 = vrot.lane.b32.xlu0 %v2892_v15, %s2771_s17 }
  0x88   :  { %374 = vrot.lane.b32.xlu1 %v2844_v3, %s2772_s18  ;;  %372 = vrot.lane.b32.xlu0 %v2836_v1, %s2772_s18 }
  0x8c   :  { %382 = vrot.lane.b32.xlu1 %v2842_v2, %s2772_s18  ;;  %380 = vrot.lane.b32.xlu0 %v2834_v0, %s2772_s18 }
  0x90   :  { %390 = vrot.lane.b32.xlu1 %v2850_v4, %s2772_s18  ;;  %388 = vrot.lane.b32.xlu0 %v2852_v5, %s2772_s18 }
  0x94   :  { %398 = vrot.lane.b32.xlu1 %v2854_v6, %s2772_s18  ;;  %396 = vrot.lane.b32.xlu0 %v2856_v7, %s2772_s18 }
  0x98   :  { %378 = vrot.lane.b32.xlu1 %v2866_v8, %s2772_s18  ;;  %376 = vrot.lane.b32.xlu0 %v2868_v9, %s2772_s18 }
  0x9a   :  { %v88_v21 = vpop.permute.xlu1 %87  ;;  %v80_v22 = vpop.permute.xlu0 %79 }
  0x9b   :  { %v122_v24 = vsel %vm113_vm0, %v80_v22, %v88_v21 }
  0x9c   :  { %386 = vrot.lane.b32.xlu1 %v2874_v10, %s2772_s18  ;;  %384 = vrot.lane.b32.xlu0 %v2876_v11, %s2772_s18  ;;  %v147_v29 = vmul.f32 %v2998_v23, %v122_v24 }
  0x9e   :  { %v90_v25 = vpop.permute.xlu1 %89  ;;  %v82_v26 = vpop.permute.xlu0 %81 }
  0x9f   :  { %v123_v27 = vsel %vm113_vm0, %v82_v26, %v90_v25 }
  0xa0   :  { %394 = vrot.lane.b32.xlu1 %v2882_v12, %s2772_s18  ;;  %392 = vrot.lane.b32.xlu0 %v2884_v13, %s2772_s18  ;;  %v151_v30 = vmul.f32 %v2998_v23, %v123_v27 }
  0xa2   :  { %v98_v33 = vpop.permute.xlu1 %97  ;;  %v96_v34 = vpop.permute.xlu0 %95  ;;  %v163_v35 = vpack.c.bf16 %v151_v30, %v147_v29  ;;  %v229_v30 = vsub.s32 1, %v2978_v17 }
  0xa3   :  { %v119_v37 = vsel %vm113_vm0, %v90_v25, %v98_v33  ;;  %v118_v38 = vsel %vm113_vm0, %v88_v21, %v96_v34 }
  0xa4   :  { %402 = vrot.lane.b32.xlu1 %v2890_v14, %s2772_s18  ;;  %400 = vrot.lane.b32.xlu0 %v2892_v15, %s2772_s18  ;;  %v148_v43 = vmul.f32 %v3026_v36, %v118_v38  ;;  %v152_v44 = vmul.f32 %v3026_v36, %v119_v37 }
  0xa5   :  { %1002 = vmatprep.subr.bf16.mxu0 %v163_v35 }
  0xa6   :  { %v106_v41 = vpop.permute.xlu1 %105  ;;  %v104_v42 = vpop.permute.xlu0 %103  ;;  %v164_v57 = vpack.c.bf16 %v152_v44, %v148_v43 }
  0xa7   :  { %v127_v45 = vsel %vm113_vm0, %v106_v41, %v82_v26  ;;  %v126_v46 = vsel %vm113_vm0, %v104_v42, %v80_v22  ;;  %v114_v47 = vsel %vm113_vm0, %v96_v34, %v104_v42  ;;  %v115_v48 = vsel %vm113_vm0, %v98_v33, %v106_v41 }
  0xa8   :  { %487 = vrot.lane.b32.xlu1 %v2844_v3, %s2773_s27  ;;  %485 = vrot.lane.b32.xlu0 %v2836_v1, %s2773_s27  ;;  %v146_v49 = vmul.f32 %v3037_v39, %v126_v46  ;;  %v150_v50 = vmul.f32 %v3037_v39, %v127_v45  ;;  %v149_v51 = vmul.f32 %v3040_v40, %v114_v47 }
  0xa9   :  { %v153_v52 = vmul.f32 %v3040_v40, %v115_v48 }
  0xaa   :  { %v86_v53 = vpop.permute.xlu1 %85  ;;  %v84_v54 = vpop.permute.xlu0 %83  ;;  %v162_v55 = vpack.c.bf16 %v150_v50, %v146_v49  ;;  %v3105_v49 = vrot.slane %v2990_v20, %v229_v30 }
  0xab   :  { %v165_v56 = vpack.c.bf16 %v153_v52, %v149_v51 }
  0xac   :  { %495 = vrot.lane.b32.xlu1 %v2842_v2, %s2773_s27  ;;  %493 = vrot.lane.b32.xlu0 %v2834_v0, %s2773_s27 }
  0xad   :  { %1003 = vmatpush1.bf16.msra.mxu0 %v162_v55  ;;  %1108 = vmatprep.subr.bf16.mxu1 %v165_v56 }
  0xae   :  { %1109 = vmatpush1.bf16.msra.mxu1 %v164_v57  ;;  %v94_v58 = vpop.permute.xlu1 %93  ;;  %v92_v59 = vpop.permute.xlu0 %91  ;;  %v3120_v57 = vrot.slane %v3007_v28, %v229_v30 }
  0xaf   :  { %v125_v60 = vsel %vm113_vm0, %v86_v53, %v94_v58  ;;  %v124_v61 = vsel %vm113_vm0, %v84_v54, %v92_v59 }
  0xb0   :  { %v159_v62 = vmul.f32 %v2998_v23, %v125_v60  ;;  %v155_v63 = vmul.f32 %v2998_v23, %v124_v61  ;;  %503 = vrot.lane.b32.xlu1 %v2850_v4, %s2773_s27  ;;  %501 = vrot.lane.b32.xlu0 %v2852_v5, %s2773_s27 }
  0xb2   :  { %v102_v16 = vpop.permute.xlu1 %101  ;;  %v100_v19 = vpop.permute.xlu0 %99  ;;  %v167_v21 = vpack.c.bf16 %v159_v62, %v155_v63  ;;  %v3129_v62 = vrot.slane %v3018_v31, %v229_v30  ;;  %v3132_v63 = vrot.slane %v3023_v32, %v229_v30 }
  0xb3   :  { %v121_v22 = vsel %vm113_vm0, %v94_v58, %v102_v16  ;;  %v120_v24 = vsel %vm113_vm0, %v92_v59, %v100_v19 }
  0xb4   :  { %511 = vrot.lane.b32.xlu1 %v2854_v6, %s2773_s27  ;;  %509 = vrot.lane.b32.xlu0 %v2856_v7, %s2773_s27  ;;  %v160_v25 = vmul.f32 %v3026_v36, %v121_v22  ;;  %v156_v26 = vmul.f32 %v3026_v36, %v120_v24 }
  0xb5   :  { %1004 = vmatprep.subr.bf16.mxu0 %v167_v21 }
  0xb6   :  { %v110_v27 = vpop.permute.xlu1 %109  ;;  %v108_v29 = vpop.permute.xlu0 %107  ;;  %v168_v48 = vpack.c.bf16 %v160_v25, %v156_v26 }
  0xb7   :  { %v117_v33 = vsel %vm113_vm0, %v102_v16, %v110_v27  ;;  %v129_v34 = vsel %vm113_vm0, %v110_v27, %v86_v53  ;;  %v116_v35 = vsel %vm113_vm0, %v100_v19, %v108_v29  ;;  %v128_v37 = vsel %vm113_vm0, %v108_v29, %v84_v54 }
  0xb8   :  { %v158_v38 = vmul.f32 %v3037_v39, %v129_v34  ;;  %v161_v41 = vmul.f32 %v3040_v40, %v117_v33  ;;  %v154_v42 = vmul.f32 %v3037_v39, %v128_v37  ;;  %v157_v43 = vmul.f32 %v3040_v40, %v116_v35  ;;  %491 = vrot.lane.b32.xlu1 %v2866_v8, %s2773_s27 }
  0xb9   :  { %489 = vrot.lane.b32.xlu0 %v2868_v9, %s2773_s27 }
  0xba   :  { %v181_v44 = vpop.permute.xlu1 %180  ;;  %v179_v45 = vpop.permute.xlu0 %178  ;;  %v166_v46 = vpack.c.bf16 %v158_v38, %v154_v42  ;;  %v169_v47 = vpack.c.bf16 %v161_v41, %v157_v43 }
  0xbc   :  { %499 = vrot.lane.b32.xlu1 %v2874_v10, %s2773_s27  ;;  %1005 = vmatpush1.bf16.msra.mxu0 %v166_v46 }
  0xbd   :  { %497 = vrot.lane.b32.xlu0 %v2876_v11, %s2773_s27  ;;  %1110 = vmatprep.subr.bf16.mxu1 %v169_v47 }
  0xbe   :  { %1111 = vmatpush1.bf16.msra.mxu1 %v168_v48  ;;  %v189_v50 = vpop.permute.xlu1 %188  ;;  %v187_v51 = vpop.permute.xlu0 %186 }
  0xbf   :  { %v220_v52 = vsel %vm210_vm1, %v181_v44, %v189_v50  ;;  %v219_v53 = vsel %vm210_vm1, %v179_v45, %v187_v51 }
  0xc0   :  { %v248_v54 = vmul.f32 %v3105_v49, %v220_v52  ;;  %v244_v55 = vmul.f32 %v3105_v49, %v219_v53  ;;  %507 = vrot.lane.b32.xlu1 %v2882_v12, %s2773_s27 }
  0xc1   :  { %505 = vrot.lane.b32.xlu0 %v2884_v13, %s2773_s27 }
  0xc2   :  { %v197_v56 = vpop.permute.xlu1 %196  ;;  %v195_v58 = vpop.permute.xlu0 %194  ;;  %v260_v59 = vpack.c.bf16 %v248_v54, %v244_v55 }
  0xc3   :  { %v216_v60 = vsel %vm210_vm1, %v189_v50, %v197_v56  ;;  %v215_v61 = vsel %vm210_vm1, %v187_v51, %v195_v58 }
  0xc4   :  { %515 = vrot.lane.b32.xlu1 %v2890_v14, %s2773_s27  ;;  %1006 = vmatprep.subr.bf16.mxu0 %v260_v59  ;;  %v249_v16 = vmul.f32 %v3120_v57, %v216_v60  ;;  %v245_v19 = vmul.f32 %v3120_v57, %v215_v61  ;;  %v326_v60 = vsub.s32 2, %v2978_v17 }
  0xc5   :  { %513 = vrot.lane.b32.xlu0 %v2892_v15, %s2773_s27 }
  0xc6   :  { %v205_v21 = vpop.permute.xlu1 %204  ;;  %v203_v22 = vpop.permute.xlu0 %202  ;;  %v261_v42 = vpack.c.bf16 %v249_v16, %v245_v19 }
  0xc7   :  { %v212_v24 = vsel %vm210_vm1, %v197_v56, %v205_v21  ;;  %v224_v25 = vsel %vm210_vm1, %v205_v21, %v181_v44  ;;  %v211_v26 = vsel %vm210_vm1, %v195_v58, %v203_v22  ;;  %v223_v27 = vsel %vm210_vm1, %v203_v22, %v179_v45 }
  0xc8   :  { %v247_v29 = vmul.f32 %v3129_v62, %v224_v25  ;;  %v250_v30 = vmul.f32 %v3132_v63, %v212_v24  ;;  %v243_v33 = vmul.f32 %v3129_v62, %v223_v27  ;;  %v246_v34 = vmul.f32 %v3132_v63, %v211_v26  ;;  %584 = vrot.lane.b32.xlu1 %v2844_v3, %s2774_s28 }
  0xc9   :  { %582 = vrot.lane.b32.xlu0 %v2836_v1, %s2774_s28 }
  0xca   :  { %v185_v35 = vpop.permute.xlu1 %184  ;;  %v183_v37 = vpop.permute.xlu0 %182  ;;  %v259_v38 = vpack.c.bf16 %v247_v29, %v243_v33  ;;  %v262_v41 = vpack.c.bf16 %v250_v30, %v246_v34 }
  0xcc   :  { %592 = vrot.lane.b32.xlu1 %v2842_v2, %s2774_s28  ;;  %1007 = vmatpush1.bf16.msra.mxu0 %v259_v38 }
  0xcd   :  { %590 = vrot.lane.b32.xlu0 %v2834_v0, %s2774_s28  ;;  %1112 = vmatprep.subr.bf16.mxu1 %v262_v41 }
  0xce   :  { %1113 = vmatpush1.bf16.msra.mxu1 %v261_v42  ;;  %v193_v43 = vpop.permute.xlu1 %192  ;;  %v191_v44 = vpop.permute.xlu0 %190 }
  0xcf   :  { %v222_v45 = vsel %vm210_vm1, %v185_v35, %v193_v43  ;;  %v221_v46 = vsel %vm210_vm1, %v183_v37, %v191_v44 }
  0xd0   :  { %v256_v47 = vmul.f32 %v3105_v49, %v222_v45  ;;  %v252_v48 = vmul.f32 %v3105_v49, %v221_v46  ;;  %600 = vrot.lane.b32.xlu1 %v2850_v4, %s2774_s28  ;;  %v3214_v46 = vrot.slane %v3007_v28, %v326_v60 }
  0xd1   :  { %598 = vrot.lane.b32.xlu0 %v2852_v5, %s2774_s28 }
  0xd2   :  { %v201_v50 = vpop.permute.xlu1 %200  ;;  %v199_v51 = vpop.permute.xlu0 %198  ;;  %v264_v52 = vpack.c.bf16 %v256_v47, %v252_v48 }
  0xd3   :  { %v218_v53 = vsel %vm210_vm1, %v193_v43, %v201_v50  ;;  %v217_v54 = vsel %vm210_vm1, %v191_v44, %v199_v51 }
  0xd4   :  { %608 = vrot.lane.b32.xlu1 %v2854_v6, %s2774_s28  ;;  %1008 = vmatprep.subr.bf16.mxu0 %v264_v52  ;;  %v257_v55 = vmul.f32 %v3120_v57, %v218_v53  ;;  %v253_v56 = vmul.f32 %v3120_v57, %v217_v54  ;;  %v3223_v52 = vrot.slane %v3018_v31, %v326_v60 }
  0xd5   :  { %606 = vrot.lane.b32.xlu0 %v2856_v7, %s2774_s28  ;;  %v3226_v53 = vrot.slane %v3023_v32, %v326_v60 }
  0xd6   :  { %v209_v58 = vpop.permute.xlu1 %208  ;;  %v207_v59 = vpop.permute.xlu0 %206  ;;  %v265_v34 = vpack.c.bf16 %v257_v55, %v253_v56 }
  0xd7   :  { %v214_v61 = vsel %vm210_vm1, %v201_v50, %v209_v58  ;;  %v226_v16 = vsel %vm210_vm1, %v209_v58, %v185_v35  ;;  %v213_v19 = vsel %vm210_vm1, %v199_v51, %v207_v59  ;;  %v225_v21 = vsel %vm210_vm1, %v207_v59, %v183_v37 }
  0xd8   :  { %v255_v22 = vmul.f32 %v3129_v62, %v226_v16  ;;  %v258_v24 = vmul.f32 %v3132_v63, %v214_v61  ;;  %v251_v25 = vmul.f32 %v3129_v62, %v225_v21  ;;  %v254_v26 = vmul.f32 %v3132_v63, %v213_v19  ;;  %588 = vrot.lane.b32.xlu1 %v2866_v8, %s2774_s28 }
  0xd9   :  { %586 = vrot.lane.b32.xlu0 %v2868_v9, %s2774_s28  ;;  %v3199_v35 = vrot.slane %v2990_v20, %v326_v60 }
  0xda   :  { %v278_v27 = vpop.permute.xlu1 %277  ;;  %v276_v29 = vpop.permute.xlu0 %275  ;;  %v263_v30 = vpack.c.bf16 %v255_v22, %v251_v25  ;;  %v266_v33 = vpack.c.bf16 %v258_v24, %v254_v26 }
  0xdc   :  { %596 = vrot.lane.b32.xlu1 %v2874_v10, %s2774_s28  ;;  %1009 = vmatpush1.bf16.msra.mxu0 %v263_v30 }
  0xdd   :  { %594 = vrot.lane.b32.xlu0 %v2876_v11, %s2774_s28  ;;  %1114 = vmatprep.subr.bf16.mxu1 %v266_v33 }
  0xde   :  { %1115 = vmatpush1.bf16.msra.mxu1 %v265_v34  ;;  %v286_v37 = vpop.permute.xlu1 %285  ;;  %v284_v38 = vpop.permute.xlu0 %283 }
  0xdf   :  { %v317_v41 = vsel %vm307_vm2, %v278_v27, %v286_v37  ;;  %v316_v42 = vsel %vm307_vm2, %v276_v29, %v284_v38 }
  0xe0   :  { %v345_v43 = vmul.f32 %v3199_v35, %v317_v41  ;;  %v341_v44 = vmul.f32 %v3199_v35, %v316_v42  ;;  %604 = vrot.lane.b32.xlu1 %v2882_v12, %s2774_s28 }
  0xe1   :  { %602 = vrot.lane.b32.xlu0 %v2884_v13, %s2774_s28 }
  0xe2   :  { %v294_v45 = vpop.permute.xlu1 %293  ;;  %v292_v47 = vpop.permute.xlu0 %291  ;;  %v357_v48 = vpack.c.bf16 %v345_v43, %v341_v44 }
  0xe3   :  { %v313_v50 = vsel %vm307_vm2, %v286_v37, %v294_v45  ;;  %v312_v51 = vsel %vm307_vm2, %v284_v38, %v292_v47 }
  0xe4   :  { %612 = vrot.lane.b32.xlu1 %v2890_v14, %s2774_s28  ;;  %1010 = vmatprep.subr.bf16.mxu0 %v357_v48  ;;  %v346_v54 = vmul.f32 %v3214_v46, %v313_v50  ;;  %v342_v55 = vmul.f32 %v3214_v46, %v312_v51 }
  0xe5   :  { %610 = vrot.lane.b32.xlu0 %v2892_v15, %s2774_s28 }
  0xe6   :  { %v302_v56 = vpop.permute.xlu1 %301  ;;  %v300_v58 = vpop.permute.xlu0 %299 }
  0xe7   :  { %v309_v59 = vsel %vm307_vm2, %v294_v45, %v302_v56  ;;  %v321_v61 = vsel %vm307_vm2, %v302_v56, %v278_v27  ;;  %v308_v16 = vsel %vm307_vm2, %v292_v47, %v300_v58  ;;  %v320_v60 = vsel %vm307_vm2, %v300_v58, %v276_v29 }
  0xe8   :  { %v344_v19 = vmul.f32 %v3223_v52, %v321_v61  ;;  %v347_v21 = vmul.f32 %v3226_v53, %v309_v59  ;;  %v340_v22 = vmul.f32 %v3223_v52, %v320_v60  ;;  %v343_v24 = vmul.f32 %v3226_v53, %v308_v16  ;;  %681 = vrot.lane.b32.xlu1 %v2844_v3, %s2775_s29 }
  0xe9   :  { %679 = vrot.lane.b32.xlu0 %v2836_v1, %s2775_s29  ;;  %v358_v29 = vpack.c.bf16 %v346_v54, %v342_v55  ;;  %v423_v56 = vsub.s32 3, %v2978_v17 }
  0xea   :  { %v282_v25 = vpop.permute.xlu1 %281  ;;  %v280_v26 = vpop.permute.xlu0 %279  ;;  %v356_v27 = vpack.c.bf16 %v344_v19, %v340_v22  ;;  %v359_v30 = vpack.c.bf16 %v347_v21, %v343_v24 }
  0xec   :  { %689 = vrot.lane.b32.xlu1 %v2842_v2, %s2775_s29  ;;  %1011 = vmatpush1.bf16.msra.mxu0 %v356_v27 }
  0xed   :  { %687 = vrot.lane.b32.xlu0 %v2834_v0, %s2775_s29  ;;  %1116 = vmatprep.subr.bf16.mxu1 %v359_v30 }
  0xee   :  { %1117 = vmatpush1.bf16.msra.mxu1 %v358_v29  ;;  %v290_v33 = vpop.permute.xlu1 %289  ;;  %v288_v34 = vpop.permute.xlu0 %287  ;;  %v3293_v29 = vrot.slane %v2990_v20, %v423_v56 }
  0xef   :  { %v319_v37 = vsel %vm307_vm2, %v282_v25, %v290_v33  ;;  %v318_v38 = vsel %vm307_vm2, %v280_v26, %v288_v34 }
  0xf0   :  { %v353_v41 = vmul.f32 %v3199_v35, %v319_v37  ;;  %v349_v42 = vmul.f32 %v3199_v35, %v318_v38  ;;  %697 = vrot.lane.b32.xlu1 %v2850_v4, %s2775_s29 }
  0xf1   :  { %695 = vrot.lane.b32.xlu0 %v2852_v5, %s2775_s29 }
  0xf2   :  { %v298_v43 = vpop.permute.xlu1 %297  ;;  %v296_v44 = vpop.permute.xlu0 %295  ;;  %v361_v45 = vpack.c.bf16 %v353_v41, %v349_v42 }
  0xf3   :  { %v315_v47 = vsel %vm307_vm2, %v290_v33, %v298_v43  ;;  %v314_v48 = vsel %vm307_vm2, %v288_v34, %v296_v44 }
  0xf4   :  { %705 = vrot.lane.b32.xlu1 %v2854_v6, %s2775_s29  ;;  %1012 = vmatprep.subr.bf16.mxu0 %v361_v45  ;;  %v354_v50 = vmul.f32 %v3214_v46, %v315_v47  ;;  %v350_v51 = vmul.f32 %v3214_v46, %v314_v48 }
  0xf5   :  { %703 = vrot.lane.b32.xlu0 %v2856_v7, %s2775_s29 }
  0xf6   :  { %v306_v54 = vpop.permute.xlu1 %305  ;;  %v304_v55 = vpop.permute.xlu0 %303 }
  0xf7   :  { %v311_v58 = vsel %vm307_vm2, %v298_v43, %v306_v54  ;;  %v323_v59 = vsel %vm307_vm2, %v306_v54, %v282_v25  ;;  %v310_v61 = vsel %vm307_vm2, %v296_v44, %v304_v55  ;;  %v322_v16 = vsel %vm307_vm2, %v304_v55, %v280_v26 }
  0xf8   :  { %v352_v60 = vmul.f32 %v3223_v52, %v323_v59  ;;  %v355_v19 = vmul.f32 %v3226_v53, %v311_v58  ;;  %v348_v21 = vmul.f32 %v3223_v52, %v322_v16  ;;  %v351_v22 = vmul.f32 %v3226_v53, %v310_v61  ;;  %685 = vrot.lane.b32.xlu1 %v2866_v8, %s2775_s29 }
  0xf9   :  { %683 = vrot.lane.b32.xlu0 %v2868_v9, %s2775_s29  ;;  %v362_v26 = vpack.c.bf16 %v354_v50, %v350_v51  ;;  %v3308_v44 = vrot.slane %v3007_v28, %v423_v56  ;;  %v3317_v51 = vrot.slane %v3018_v31, %v423_v56  ;;  %v3320_v54 = vrot.slane %v3023_v32, %v423_v56 }
  0xfa   :  { %v375_v24 = vpop.permute.xlu1 %374  ;;  %v373_v25 = vpop.permute.xlu0 %372  ;;  %v360_v27 = vpack.c.bf16 %v352_v60, %v348_v21  ;;  %v363_v30 = vpack.c.bf16 %v355_v19, %v351_v22  ;;  %v2637_v21 = vld [vmem:[#allocation3 + $0x4] ss:$12 sps:$4 sm:$0xff]  }
  0xfb   :  { %4941 = vst [vmem:[#allocation12_spill] sm:$0xff] %v3308_v44  ;;  %4942 = vst [vmem:[#allocation13_spill] sm:$0xff] %v3317_v51  ;;  %1034 = vmatprep.mubr.bf16.mxu0 %v2637_v21  ;;  %1140 = vmatprep.mubr.bf16.mxu1 %v2637_v21 }
  0xfc   :  { %693 = vrot.lane.b32.xlu1 %v2874_v10, %s2775_s29  ;;  %1013 = vmatpush1.bf16.msra.mxu0 %v360_v27  ;;  %4943 = vst [vmem:[#allocation14_spill] sm:$0xff] %v3320_v54 }
  0xfd   :  { %691 = vrot.lane.b32.xlu0 %v2876_v11, %s2775_s29  ;;  %1118 = vmatprep.subr.bf16.mxu1 %v363_v30 }
  0xfe   :  { %1119 = vmatpush1.bf16.msra.mxu1 %v362_v26  ;;  %v383_v33 = vpop.permute.xlu1 %382  ;;  %v381_v34 = vpop.permute.xlu0 %380 }
  0xff   :  { %v414_v37 = vsel %vm404_vm3, %v375_v24, %v383_v33  ;;  %v413_v38 = vsel %vm404_vm3, %v373_v25, %v381_v34 }
 0x100   :  { %v442_v41 = vmul.f32 %v3293_v29, %v414_v37  ;;  %v438_v42 = vmul.f32 %v3293_v29, %v413_v38  ;;  %701 = vrot.lane.b32.xlu1 %v2882_v12, %s2775_s29 }
 0x101   :  { %699 = vrot.lane.b32.xlu0 %v2884_v13, %s2775_s29 }
 0x102   :  { %v391_v43 = vpop.permute.xlu1 %390  ;;  %v389_v45 = vpop.permute.xlu0 %388  ;;  %v454_v47 = vpack.c.bf16 %v442_v41, %v438_v42 }
 0x103   :  { %v410_v48 = vsel %vm404_vm3, %v383_v33, %v391_v43  ;;  %v409_v50 = vsel %vm404_vm3, %v381_v34, %v389_v45 }
 0x104   :  { %709 = vrot.lane.b32.xlu1 %v2890_v14, %s2775_s29  ;;  %1014 = vmatprep.subr.bf16.mxu0 %v454_v47  ;;  %v443_v55 = vmul.f32 %v3308_v44, %v410_v48  ;;  %v439_v58 = vmul.f32 %v3308_v44, %v409_v50 }
 0x105   :  { %707 = vrot.lane.b32.xlu0 %v2892_v15, %s2775_s29 }
 0x106   :  { %v399_v59 = vpop.permute.xlu1 %398  ;;  %v397_v61 = vpop.permute.xlu0 %396  ;;  %v455_v37 = vpack.c.bf16 %v443_v55, %v439_v58 }
 0x107   :  { %v406_v16 = vsel %vm404_vm3, %v391_v43, %v399_v59  ;;  %v418_v60 = vsel %vm404_vm3, %v399_v59, %v375_v24  ;;  %v405_v19 = vsel %vm404_vm3, %v389_v45, %v397_v61  ;;  %v417_v56 = vsel %vm404_vm3, %v397_v61, %v373_v25 }
 0x108   :  { %v441_v22 = vmul.f32 %v3317_v51, %v418_v60  ;;  %v444_v27 = vmul.f32 %v3320_v54, %v406_v16  ;;  %v437_v30 = vmul.f32 %v3317_v51, %v417_v56  ;;  %v440_v26 = vmul.f32 %v3320_v54, %v405_v19  ;;  %778 = vrot.lane.b32.xlu1 %v2844_v3, %s2776_s30 }
 0x109   :  { %776 = vrot.lane.b32.xlu0 %v2836_v1, %s2776_s30 }
 0x10a   :  { %v379_v24 = vpop.permute.xlu1 %378  ;;  %v377_v33 = vpop.permute.xlu0 %376  ;;  %v453_v25 = vpack.c.bf16 %v441_v22, %v437_v30  ;;  %v456_v34 = vpack.c.bf16 %v444_v27, %v440_v26 }
 0x10c   :  { %786 = vrot.lane.b32.xlu1 %v2842_v2, %s2776_s30  ;;  %1015 = vmatpush1.bf16.msra.mxu0 %v453_v25 }
 0x10d   :  { %784 = vrot.lane.b32.xlu0 %v2834_v0, %s2776_s30  ;;  %1120 = vmatprep.subr.bf16.mxu1 %v456_v34 }
 0x10e   :  { %1121 = vmatpush1.bf16.msra.mxu1 %v455_v37  ;;  %v387_v38 = vpop.permute.xlu1 %386  ;;  %v385_v41 = vpop.permute.xlu0 %384 }
 0x10f   :  { %v416_v42 = vsel %vm404_vm3, %v379_v24, %v387_v38  ;;  %v415_v43 = vsel %vm404_vm3, %v377_v33, %v385_v41 }
 0x110   :  { %v450_v45 = vmul.f32 %v3293_v29, %v416_v42  ;;  %v446_v47 = vmul.f32 %v3293_v29, %v415_v43  ;;  %794 = vrot.lane.b32.xlu1 %v2850_v4, %s2776_s30  ;;  %v470_v42 = vpack.c.bf16 %v2842_v2, %v2834_v0  ;;  %v472_v43 = vpack.c.bf16 %v2854_v6, %v2856_v7 }
 0x111   :  { %792 = vrot.lane.b32.xlu0 %v2852_v5, %s2776_s30  ;;  %v474_v0 = vpack.c.bf16 %v2874_v10, %v2876_v11 }
 0x112   :  { %v395_v48 = vpop.permute.xlu1 %394  ;;  %v393_v50 = vpop.permute.xlu0 %392  ;;  %v458_v55 = vpack.c.bf16 %v450_v45, %v446_v47  ;;  %v469_v47 = vpack.c.bf16 %v2844_v3, %v2836_v1 }
 0x113   :  { %v412_v58 = vsel %vm404_vm3, %v387_v38, %v395_v48  ;;  %v411_v59 = vsel %vm404_vm3, %v385_v41, %v393_v50 }
 0x114   :  { %802 = vrot.lane.b32.xlu1 %v2854_v6, %s2776_s30  ;;  %1016 = vmatprep.subr.bf16.mxu0 %v458_v55  ;;  %v451_v61 = vmul.f32 %v3308_v44, %v412_v58  ;;  %v447_v16 = vmul.f32 %v3308_v44, %v411_v59  ;;  %v2645_v44 = vld [vmem:[#allocation3 + $0x34] ss:$12 sps:$4 sm:$0xff]  }
 0x115   :  { %800 = vrot.lane.b32.xlu0 %v2856_v7, %s2776_s30 }
 0x116   :  { %v403_v60 = vpop.permute.xlu1 %402  ;;  %v401_v19 = vpop.permute.xlu0 %400  ;;  %v459_v45 = vpack.c.bf16 %v451_v61, %v447_v16  ;;  %v475_v61 = vpack.c.bf16 %v2882_v12, %v2884_v13 }
 0x117   :  { %v408_v56 = vsel %vm404_vm3, %v395_v48, %v403_v60  ;;  %v420_v21 = vsel %vm404_vm3, %v403_v60, %v379_v24  ;;  %v407_v22 = vsel %vm404_vm3, %v393_v50, %v401_v19  ;;  %v419_v27 = vsel %vm404_vm3, %v401_v19, %v377_v33 }
 0x118   :  { %v449_v30 = vmul.f32 %v3317_v51, %v420_v21  ;;  %v452_v26 = vmul.f32 %v3320_v54, %v408_v56  ;;  %v445_v25 = vmul.f32 %v3317_v51, %v419_v27  ;;  %v448_v34 = vmul.f32 %v3320_v54, %v407_v22  ;;  %782 = vrot.lane.b32.xlu1 %v2866_v8, %s2776_s30 }
 0x119   :  { %780 = vrot.lane.b32.xlu0 %v2868_v9, %s2776_s30  ;;  %v536_v33 = vsub.s32 4, %v2978_v17  ;;  %v471_v48 = vpack.c.bf16 %v2850_v4, %v2852_v5  ;;  %v473_v4 = vpack.c.bf16 %v2866_v8, %v2868_v9 }
 0x11a   :  { %v488_v24 = vpop.permute.xlu1 %487  ;;  %v486_v37 = vpop.permute.xlu0 %485  ;;  %v457_v38 = vpack.c.bf16 %v449_v30, %v445_v25  ;;  %v460_v41 = vpack.c.bf16 %v452_v26, %v448_v34 }
 0x11b   :  { %v3397_v6 = vrot.slane %v3018_v31, %v536_v33  ;;  %v3411_v50 = vrot.slane %v2990_v20, %v536_v33  ;;  %v3427_v9 = vrot.slane %v3007_v28, %v536_v33 }
 0x11c   :  { %790 = vrot.lane.b32.xlu1 %v2874_v10, %s2776_s30  ;;  %1017 = vmatpush1.bf16.msra.mxu0 %v457_v38  ;;  %v476_v10 = vpack.c.bf16 %v2890_v14, %v2892_v15 }
 0x11d   :  { %788 = vrot.lane.b32.xlu0 %v2876_v11, %s2776_s30  ;;  %1122 = vmatprep.subr.bf16.mxu1 %v460_v41  ;;  %4944 = vst [vmem:[#allocation15_spill] sm:$0xff] %v3397_v6  ;;  %v4867_v11 = vmov 0   ;;  %4945 = vst [vmem:[#allocation16_spill] sm:$0xff] %v3411_v50  ;;  %v51_v41 = vld [vmem:[%s4863_s1] sm:$0xff] }
 0x11e   :  { %1123 = vmatpush1.bf16.msra.mxu1 %v459_v45  ;;  %v496_v2 = vpop.permute.xlu1 %495  ;;  %v494_v7 = vpop.permute.xlu0 %493  ;;  %1018 = vmatprep.subr.bf16.mxu0 %v470_v42  ;;  %4946 = vst [vmem:[#allocation17_spill] sm:$0xff] %v3427_v9  ;;  %v53_v45 = vld [vmem:[%s4863_s1 + $0x10] sm:$0xff] }
 0x11f   :  { %v527_v1 = vsel %vm517_vm4, %v488_v24, %v496_v2  ;;  %v526_v3 = vsel %vm517_vm4, %v486_v37, %v494_v7  ;;  %1124 = vmatprep.subr.bf16.mxu1 %v472_v43  ;;  %2632 = vset.pattern.permute.xlu1 %v4867_v11 }
 0x120   :  { %798 = vrot.lane.b32.xlu1 %v2882_v12, %s2776_s30  ;;  %1019 = vmatpush1.bf16.msra.mxu0 %v469_v47  ;;  %v554_v5 = vmul.f32 %v3397_v6, %v527_v1  ;;  %v550_v55 = vmul.f32 %v3397_v6, %v526_v3  ;;  %v3434_v12 = vrot.slane %v3023_v32, %v536_v33  ;;  %v54_v47 = vld [vmem:[%s4863_s1 + $0x18] sm:$0xff] }
 0x121   :  { %796 = vrot.lane.b32.xlu0 %v2884_v13, %s2776_s30  ;;  %1020 = vmatprep.subr.bf16.mxu0 %v474_v0 }
 0x122   :  { %v504_v58 = vpop.permute.xlu1 %503  ;;  %v502_v59 = vpop.permute.xlu0 %501  ;;  %1125 = vmatpush1.bf16.msra.mxu1 %v471_v48  ;;  %2631 = vset.pattern.permute.xlu0 %v4867_v11  ;;  %4947 = vst [vmem:[#allocation18_spill] sm:$0xff] %v3434_v12  ;;  %v566_v22 = vpack.c.bf16 %v554_v5, %v550_v55 }
 0x123   :  { %v523_v16 = vsel %vm517_vm4, %v496_v2, %v504_v58  ;;  %v522_v8 = vsel %vm517_vm4, %v494_v7, %v502_v59  ;;  %1126 = vmatprep.subr.bf16.mxu1 %v476_v10 }
 0x124   :  { %v555_v60 = vmul.f32 %v3411_v50, %v523_v16  ;;  %v551_v19 = vmul.f32 %v3411_v50, %v522_v8  ;;  %806 = vrot.lane.b32.xlu1 %v2890_v14, %s2776_s30  ;;  %1021 = vmatpush1.bf16.msra.mxu0 %v473_v4 }
 0x125   :  { %804 = vrot.lane.b32.xlu0 %v2892_v15, %s2776_s30 }
 0x126   :  { %v512_v13 = vpop.permute.xlu1 %511  ;;  %v510_v56 = vpop.permute.xlu0 %509  ;;  %v567_v21 = vpack.c.bf16 %v555_v60, %v551_v19  ;;  %1127 = vmatpush1.bf16.msra.mxu1 %v475_v61 }
 0x127   :  { %v519_v27 = vsel %vm517_vm4, %v504_v58, %v512_v13  ;;  %v531_v30 = vsel %vm517_vm4, %v512_v13, %v488_v24  ;;  %v518_v14 = vsel %vm517_vm4, %v502_v59, %v510_v56  ;;  %v530_v26 = vsel %vm517_vm4, %v510_v56, %v486_v37  ;;  %v52_v24 = vld [vmem:[%s4863_s1 + $0x8] sm:$0xff] }
 0x128   :  { %v556_v25 = vmul.f32 %v3427_v9, %v519_v27  ;;  %v557_v15 = vmul.f32 %v3434_v12, %v531_v30  ;;  %v552_v34 = vmul.f32 %v3427_v9, %v518_v14  ;;  %v553_v38 = vmul.f32 %v3434_v12, %v530_v26  ;;  %1022 = vmatprep.subr.bf16.mxu0 %v567_v21 }
 0x129   :  { %1023 = vmatpush1.bf16.msra.mxu0 %v566_v22  ;;  %952 = vperm.xlu1 %2632, %v52_v24  }
 0x12a   :  { %v492_v33 = vpop.permute.xlu1 %491  ;;  %v569_v37 = vpack.c.bf16 %v557_v15, %v553_v38  ;;  %v568_v42 = vpack.c.bf16 %v556_v25, %v552_v34  ;;  %947 = vperm.xlu0 %2631, %v51_v41   ;;  %v633_v38 = vsub.s32 5, %v2978_v17 }
 0x12b   :  { %v490_v43 = vpop.permute.xlu0 %489 }
 0x12c   :  { %1128 = vmatprep.subr.bf16.mxu1 %v569_v37  ;;  %v3489_v41 = vrot.slane %v3018_v31, %v633_v38 }
 0x12d   :  { %1129 = vmatpush1.bf16.msra.mxu1 %v568_v42  ;;  %957 = vperm.xlu1 %2632, %v53_v45  }
 0x12e   :  { %v500_v0 = vpop.permute.xlu1 %499  ;;  %962 = vperm.xlu0 %2631, %v54_v47   ;;  %4948 = vst [vmem:[#allocation19_spill] sm:$0xff] %v3489_v41 }
 0x12f   :  { %v498_v2 = vpop.permute.xlu0 %497  ;;  %v529_v7 = vsel %vm517_vm4, %v492_v33, %v500_v0 }
 0x130   :  { %v528_v48 = vsel %vm517_vm4, %v490_v43, %v498_v2  ;;  %v562_v3 = vmul.f32 %v3397_v6, %v529_v7 }
 0x131   :  { %v558_v10 = vmul.f32 %v3397_v6, %v528_v48 }
 0x132   :  { %v508_v1 = vpop.permute.xlu1 %507 }
 0x133   :  { %v525_v4 = vsel %vm517_vm4, %v500_v0, %v508_v1  ;;  %v506_v5 = vpop.permute.xlu0 %505  ;;  %v570_v13 = vpack.c.bf16 %v562_v3, %v558_v10 }
 0x134   :  { %v563_v55 = vmul.f32 %v3411_v50, %v525_v4  ;;  %v524_v58 = vsel %vm517_vm4, %v498_v2, %v506_v5 }
 0x135   :  { %v559_v59 = vmul.f32 %v3411_v50, %v524_v58 }
 0x136   :  { %v516_v61 = vpop.permute.xlu1 %515 }
 0x137   :  { %v521_v16 = vsel %vm517_vm4, %v508_v1, %v516_v61  ;;  %v533_v8 = vsel %vm517_vm4, %v516_v61, %v492_v33  ;;  %v514_v60 = vpop.permute.xlu0 %513  ;;  %v571_v19 = vpack.c.bf16 %v563_v55, %v559_v59  ;;  %v3506_v1 = vrot.slane %v3007_v28, %v633_v38 }
 0x138   :  { %v564_v56 = vmul.f32 %v3427_v9, %v521_v16  ;;  %v565_v21 = vmul.f32 %v3434_v12, %v533_v8  ;;  %v520_v22 = vsel %vm517_vm4, %v506_v5, %v514_v60  ;;  %v532_v27 = vsel %vm517_vm4, %v514_v60, %v490_v43 }
 0x139   :  { %v560_v30 = vmul.f32 %v3427_v9, %v520_v22  ;;  %v561_v14 = vmul.f32 %v3434_v12, %v532_v27  ;;  %1024 = vmatprep.subr.bf16.mxu0 %v571_v19  ;;  %v3496_v43 = vrot.slane %v2990_v20, %v633_v38  ;;  %4950 = vst [vmem:[#allocation21_spill] sm:$0xff] %v3506_v1 }
 0x13a   :  { %1025 = vmatpush1.bf16.msra.mxu0 %v570_v13  ;;  %v585_v26 = vpop.permute.xlu1 %584  ;;  %v3509_v20 = vrot.slane %v3023_v32, %v633_v38 }
 0x13b   :  { %v583_v25 = vpop.permute.xlu0 %582  ;;  %v573_v15 = vpack.c.bf16 %v565_v21, %v561_v14  ;;  %v572_v34 = vpack.c.bf16 %v564_v56, %v560_v30  ;;  %4949 = vst [vmem:[#allocation20_spill] sm:$0xff] %v3496_v43 }
 0x13c   :  { %4951 = vst [vmem:[#allocation22_spill] sm:$0xff] %v3509_v20 }
 0x13d   :  { %1130 = vmatprep.subr.bf16.mxu1 %v573_v15 }
 0x13e   :  { %1131 = vmatpush1.bf16.msra.mxu1 %v572_v34  ;;  %v593_v24 = vpop.permute.xlu1 %592 }
 0x13f   :  { %v591_v33 = vpop.permute.xlu0 %590  ;;  %v624_v37 = vsel %vm614_vm5, %v585_v26, %v593_v24 }
 0x140   :  { %v623_v42 = vsel %vm614_vm5, %v583_v25, %v591_v33  ;;  %v651_v47 = vmul.f32 %v3489_v41, %v624_v37 }
 0x141   :  { %v647_v0 = vmul.f32 %v3489_v41, %v623_v42 }
 0x142   :  { %v601_v45 = vpop.permute.xlu1 %600 }
 0x143   :  { %v620_v2 = vsel %vm614_vm5, %v593_v24, %v601_v45  ;;  %v599_v31 = vpop.permute.xlu0 %598  ;;  %v663_v59 = vpack.c.bf16 %v651_v47, %v647_v0 }
 0x144   :  { %v652_v7 = vmul.f32 %v3496_v43, %v620_v2  ;;  %v619_v48 = vsel %vm614_vm5, %v591_v33, %v599_v31 }
 0x145   :  { %v648_v3 = vmul.f32 %v3496_v43, %v619_v48 }
 0x146   :  { %v609_v10 = vpop.permute.xlu1 %608 }
 0x147   :  { %v616_v4 = vsel %vm614_vm5, %v601_v45, %v609_v10  ;;  %v628_v5 = vsel %vm614_vm5, %v609_v10, %v585_v26  ;;  %v607_v55 = vpop.permute.xlu0 %606  ;;  %v664_v58 = vpack.c.bf16 %v652_v7, %v648_v3 }
 0x148   :  { %v653_v61 = vmul.f32 %v3506_v1, %v616_v4  ;;  %v654_v28 = vmul.f32 %v3509_v20, %v628_v5  ;;  %v615_v32 = vsel %vm614_vm5, %v599_v31, %v607_v55  ;;  %v627_v16 = vsel %vm614_vm5, %v607_v55, %v583_v25 }
 0x149   :  { %v649_v8 = vmul.f32 %v3506_v1, %v615_v32  ;;  %v650_v60 = vmul.f32 %v3509_v20, %v627_v16  ;;  %1026 = vmatprep.subr.bf16.mxu0 %v664_v58  ;;  %v3553_v16 = vld [vmem:[%s4864_s2] sm:$0xff] }
 0x14a   :  { %1027 = vmatpush1.bf16.msra.mxu0 %v663_v59  ;;  %v589_v19 = vpop.permute.xlu1 %588 }
 0x14b   :  { %v587_v13 = vpop.permute.xlu0 %586  ;;  %v666_v56 = vpack.c.bf16 %v654_v28, %v650_v60  ;;  %v665_v21 = vpack.c.bf16 %v653_v61, %v649_v8  ;;  %v730_v28 = vsub.s32 6, %v2978_v17 }
 0x14d   :  { %1132 = vmatprep.subr.bf16.mxu1 %v666_v56  ;;  %v3556_v8 = vrot.slane %v3553_v16, %v730_v28  ;;  %v3565_v56 = vld [vmem:[%s4864_s2 + $0x8] sm:$0xff] }
 0x14e   :  { %1133 = vmatpush1.bf16.msra.mxu1 %v665_v21  ;;  %v597_v22 = vpop.permute.xlu1 %596  ;;  %v3568_v21 = vrot.slane %v3565_v56, %v730_v28 }
 0x14f   :  { %v595_v27 = vpop.permute.xlu0 %594  ;;  %v626_v30 = vsel %vm614_vm5, %v589_v19, %v597_v22  ;;  %4952 = vst [vmem:[#allocation23_spill] sm:$0xff] %v3556_v8 }
 0x150   :  { %v625_v14 = vsel %vm614_vm5, %v587_v13, %v595_v27  ;;  %v659_v25 = vmul.f32 %v3489_v41, %v626_v30  ;;  %4953 = vst [vmem:[#allocation24_spill] sm:$0xff] %v3568_v21 }
 0x151   :  { %v655_v15 = vmul.f32 %v3489_v41, %v625_v14 }
 0x152   :  { %v605_v26 = vpop.permute.xlu1 %604 }
 0x153   :  { %v622_v34 = vsel %vm614_vm5, %v597_v22, %v605_v26  ;;  %v603_v38 = vpop.permute.xlu0 %602  ;;  %v667_v31 = vpack.c.bf16 %v659_v25, %v655_v15 }
 0x154   :  { %v660_v24 = vmul.f32 %v3496_v43, %v622_v34  ;;  %v621_v33 = vsel %vm614_vm5, %v595_v27, %v603_v38  ;;  %v3580_v34 = vld [vmem:[%s4864_s2 + $0x10] sm:$0xff] }
 0x155   :  { %v656_v37 = vmul.f32 %v3496_v43, %v621_v33 }
 0x156   :  { %v613_v42 = vpop.permute.xlu1 %612 }
 0x157   :  { %v618_v45 = vsel %vm614_vm5, %v605_v26, %v613_v42  ;;  %v630_v47 = vsel %vm614_vm5, %v613_v42, %v589_v19  ;;  %v611_v0 = vpop.permute.xlu0 %610  ;;  %v668_v2 = vpack.c.bf16 %v660_v24, %v656_v37  ;;  %v3588_v24 = vld [vmem:[%s4864_s2 + $0x18] sm:$0xff] }
 0x158   :  { %v661_v7 = vmul.f32 %v3506_v1, %v618_v45  ;;  %v662_v48 = vmul.f32 %v3509_v20, %v630_v47  ;;  %v617_v3 = vsel %vm614_vm5, %v603_v38, %v611_v0  ;;  %v629_v10 = vsel %vm614_vm5, %v611_v0, %v587_v13 }
 0x159   :  { %v657_v4 = vmul.f32 %v3506_v1, %v617_v3  ;;  %v658_v5 = vmul.f32 %v3509_v20, %v629_v10  ;;  %1028 = vmatprep.subr.bf16.mxu0 %v668_v2  ;;  %v3583_v38 = vrot.slane %v3580_v34, %v730_v28  ;;  %v3591_v33 = vrot.slane %v3588_v24, %v730_v28 }
 0x15a   :  { %1029 = vmatpush1.bf16.msra.mxu0 %v667_v31  ;;  %v682_v55 = vpop.permute.xlu1 %681 }
 0x15b   :  { %v680_v58 = vpop.permute.xlu0 %679  ;;  %v670_v59 = vpack.c.bf16 %v662_v48, %v658_v5  ;;  %v669_v61 = vpack.c.bf16 %v661_v7, %v657_v4  ;;  %4954 = vst [vmem:[#allocation25_spill] sm:$0xff] %v3583_v38  ;;  %4955 = vst [vmem:[#allocation26_spill] sm:$0xff] %v3591_v33 }
 0x15d   :  { %1134 = vmatprep.subr.bf16.mxu1 %v670_v59 }
 0x15e   :  { %1135 = vmatpush1.bf16.msra.mxu1 %v669_v61  ;;  %v690_v32 = vpop.permute.xlu1 %689 }
 0x15f   :  { %v688_v60 = vpop.permute.xlu0 %687  ;;  %v721_v19 = vsel %vm711_vm6, %v682_v55, %v690_v32 }
 0x160   :  { %v720_v13 = vsel %vm711_vm6, %v680_v58, %v688_v60  ;;  %v748_v27 = vmul.f32 %v3556_v8, %v721_v19 }
 0x161   :  { %v744_v30 = vmul.f32 %v3556_v8, %v720_v13 }
 0x162   :  { %v698_v22 = vpop.permute.xlu1 %697 }
 0x163   :  { %v717_v14 = vsel %vm711_vm6, %v690_v32, %v698_v22  ;;  %v696_v26 = vpop.permute.xlu0 %695  ;;  %v760_v31 = vpack.c.bf16 %v748_v27, %v744_v30 }
 0x164   :  { %v749_v25 = vmul.f32 %v3568_v21, %v717_v14  ;;  %v716_v15 = vsel %vm711_vm6, %v688_v60, %v696_v26 }
 0x165   :  { %v745_v37 = vmul.f32 %v3568_v21, %v716_v15 }
 0x166   :  { %v706_v42 = vpop.permute.xlu1 %705 }
 0x167   :  { %v713_v45 = vsel %vm711_vm6, %v698_v22, %v706_v42  ;;  %v725_v47 = vsel %vm711_vm6, %v706_v42, %v682_v55  ;;  %v704_v0 = vpop.permute.xlu0 %703  ;;  %v761_v2 = vpack.c.bf16 %v749_v25, %v745_v37 }
 0x168   :  { %v750_v7 = vmul.f32 %v3583_v38, %v713_v45  ;;  %v751_v48 = vmul.f32 %v3591_v33, %v725_v47  ;;  %v712_v3 = vsel %vm711_vm6, %v696_v26, %v704_v0  ;;  %v724_v10 = vsel %vm711_vm6, %v704_v0, %v680_v58 }
 0x169   :  { %v746_v4 = vmul.f32 %v3583_v38, %v712_v3  ;;  %v747_v5 = vmul.f32 %v3591_v33, %v724_v10  ;;  %1030 = vmatprep.subr.bf16.mxu0 %v761_v2 }
 0x16a   :  { %1031 = vmatpush1.bf16.msra.mxu0 %v760_v31  ;;  %v686_v55 = vpop.permute.xlu1 %685 }
 0x16b   :  { %v684_v59 = vpop.permute.xlu0 %683  ;;  %v763_v61 = vpack.c.bf16 %v751_v48, %v747_v5  ;;  %v762_v28 = vpack.c.bf16 %v750_v7, %v746_v4  ;;  %v2635_v5 = vld [vmem:[#allocation3] ss:$12 sps:$4 sm:$0xff]  }
 0x16d   :  { %1136 = vmatprep.subr.bf16.mxu1 %v763_v61  ;;  %v2638_v61 = vld [vmem:[#allocation3 + $0x1c] ss:$12 sps:$4 sm:$0xff]  }
 0x16e   :  { %1137 = vmatpush1.bf16.msra.mxu1 %v762_v28  ;;  %v694_v32 = vpop.permute.xlu1 %693 }
 0x16f   :  { %v692_v60 = vpop.permute.xlu0 %691  ;;  %v723_v19 = vsel %vm711_vm6, %v686_v55, %v694_v32 }
 0x170   :  { %v722_v58 = vsel %vm711_vm6, %v684_v59, %v692_v60  ;;  %v756_v22 = vmul.f32 %v3556_v8, %v723_v19  ;;  %v827_v19 = vsub.s32 7, %v2978_v17  ;;  %v2640_v17 = vld [vmem:[#allocation3 + $0x18] ss:$12 sps:$4 sm:$0xff]  }
 0x171   :  { %v752_v27 = vmul.f32 %v3556_v8, %v722_v58 }
 0x172   :  { %v702_v13 = vpop.permute.xlu1 %701  ;;  %v3633_v58 = vrot.slane %v3553_v16, %v827_v19 }
 0x173   :  { %v719_v30 = vsel %vm711_vm6, %v694_v32, %v702_v13  ;;  %v700_v14 = vpop.permute.xlu0 %699  ;;  %v764_v2 = vpack.c.bf16 %v756_v22, %v752_v27 }
 0x174   :  { %v757_v26 = vmul.f32 %v3568_v21, %v719_v30  ;;  %v718_v25 = vsel %vm711_vm6, %v692_v60, %v700_v14  ;;  %4956 = vst [vmem:[#allocation27_spill] sm:$0xff] %v3633_v58  ;;  %v3640_v30 = vrot.slane %v3565_v56, %v827_v19  ;;  %v3650_v56 = vrot.slane %v3580_v34, %v827_v19 }
 0x175   :  { %v753_v15 = vmul.f32 %v3568_v21, %v718_v25 }
 0x176   :  { %v710_v37 = vpop.permute.xlu1 %709  ;;  %4957 = vst [vmem:[#allocation28_spill] sm:$0xff] %v3640_v30  ;;  %4958 = vst [vmem:[#allocation29_spill] sm:$0xff] %v3650_v56 }
 0x177   :  { %v715_v42 = vsel %vm711_vm6, %v702_v13, %v710_v37  ;;  %v727_v45 = vsel %vm711_vm6, %v710_v37, %v686_v55  ;;  %v708_v47 = vpop.permute.xlu0 %707  ;;  %v765_v0 = vpack.c.bf16 %v757_v26, %v753_v15 }
 0x178   :  { %v758_v31 = vmul.f32 %v3583_v38, %v715_v42  ;;  %v759_v7 = vmul.f32 %v3591_v33, %v727_v45  ;;  %v714_v48 = vsel %vm711_vm6, %v700_v14, %v708_v47  ;;  %v726_v3 = vsel %vm711_vm6, %v708_v47, %v684_v59 }
 0x179   :  { %v754_v10 = vmul.f32 %v3583_v38, %v714_v48  ;;  %v755_v4 = vmul.f32 %v3591_v33, %v726_v3  ;;  %1032 = vmatprep.subr.bf16.mxu0 %v765_v0  ;;  %v3653_v45 = vrot.slane %v3588_v24, %v827_v19 }
 0x17a   :  { %1033 = vmatpush1.bf16.msra.mxu0 %v764_v2  ;;  %v779_v55 = vpop.permute.xlu1 %778 }
 0x17b   :  { %v777_v28 = vpop.permute.xlu0 %776  ;;  %v767_v32 = vpack.c.bf16 %v759_v7, %v755_v4  ;;  %v766_v60 = vpack.c.bf16 %v758_v31, %v754_v10  ;;  %4959 = vst [vmem:[#allocation30_spill] sm:$0xff] %v3653_v45 }
 0x17d   :  { %1138 = vmatprep.subr.bf16.mxu1 %v767_v32  ;;  %1035 = vmatmul.mubr.bf16.vlgmr.msra.gmra.mrb[0].mxu0 %v2635_v5 }
 0x17e   :  { %1139 = vmatpush1.bf16.msra.mxu1 %v766_v60  ;;  %v787_v59 = vpop.permute.xlu1 %786  ;;  %1044 = vmatprep.mubr.bf16.mxu0 %v2638_v61 }
 0x17f   :  { %v785_v13 = vpop.permute.xlu0 %784  ;;  %v818_v22 = vsel %vm808_vm7, %v779_v55, %v787_v59 }
 0x180   :  { %v817_v27 = vsel %vm808_vm7, %v777_v28, %v785_v13  ;;  %v845_v26 = vmul.f32 %v3633_v58, %v818_v22 }
 0x181   :  { %1141 = vmatmul.mubr.bf16.vlgmr.msra.gmra.mrb[0].mxu1 %v2635_v5  ;;  %v841_v25 = vmul.f32 %v3633_v58, %v817_v27 }
 0x182   :  { %v795_v14 = vpop.permute.xlu1 %794  ;;  %1150 = vmatprep.mubr.bf16.mxu1 %v2638_v61 }
 0x183   :  { %v814_v16 = vsel %vm808_vm7, %v787_v59, %v795_v14  ;;  %v793_v15 = vpop.permute.xlu0 %792  ;;  %v857_v2 = vpack.c.bf16 %v845_v26, %v841_v25 }
 0x184   :  { %v846_v37 = vmul.f32 %v3640_v30, %v814_v16  ;;  %v813_v42 = vsel %vm808_vm7, %v785_v13, %v793_v15 }
 0x185   :  { %v842_v47 = vmul.f32 %v3640_v30, %v813_v42  ;;  %1045 = vmatmul.mubr.bf16.gmra.mrb[4].mxu0 %v2640_v17 }
 0x186   :  { %v803_v0 = vpop.permute.xlu1 %802  ;;  %1087 = vmatprep.mubr.bf16.mxu0 %v4867_v11 }
 0x187   :  { %v810_v31 = vsel %vm808_vm7, %v795_v14, %v803_v0  ;;  %v822_v7 = vsel %vm808_vm7, %v803_v0, %v779_v55  ;;  %v801_v48 = vpop.permute.xlu0 %800  ;;  %v858_v3 = vpack.c.bf16 %v846_v37, %v842_v47 }
 0x188   :  { %v847_v34 = vmul.f32 %v3650_v56, %v810_v31  ;;  %v848_v24 = vmul.f32 %v3653_v45, %v822_v7  ;;  %v809_v10 = vsel %vm808_vm7, %v793_v15, %v801_v48  ;;  %v821_v4 = vsel %vm808_vm7, %v801_v48, %v777_v28 }
 0x189   :  { %v843_v5 = vmul.f32 %v3650_v56, %v809_v10  ;;  %v844_v61 = vmul.f32 %v3653_v45, %v821_v4  ;;  %1055 = vmatprep.subr.bf16.mxu0 %v858_v3  ;;  %1151 = vmatmul.mubr.bf16.gmra.mrb[4].mxu1 %v2640_v17 }
 0x18a   :  { %1056 = vmatpush1.bf16.msra.mxu0 %v857_v2  ;;  %v783_v55 = vpop.permute.xlu1 %782  ;;  %1193 = vmatprep.mubr.bf16.mxu1 %v4867_v11 }
 0x18b   :  { %v859_v32 = vpack.c.bf16 %v847_v34, %v843_v5  ;;  %v781_v60 = vpop.permute.xlu0 %780  ;;  %v860_v19 = vpack.c.bf16 %v848_v24, %v844_v61  ;;  %v2641_v5 = vld [vmem:[#allocation3 + $0x8] ss:$12 sps:$4 sm:$0xff]  }
 0x18d   :  { %1161 = vmatprep.subr.bf16.mxu1 %v860_v19 }
 0x18e   :  { %1162 = vmatpush1.bf16.msra.mxu1 %v859_v32  ;;  %v791_v59 = vpop.permute.xlu1 %790  ;;  %v2642_v32 = vld [vmem:[#allocation3 + $0x20] ss:$12 sps:$4 sm:$0xff]  }
 0x18f   :  { %v789_v13 = vpop.permute.xlu0 %788  ;;  %v820_v28 = vsel %vm808_vm7, %v783_v55, %v791_v59 }
 0x190   :  { %v819_v22 = vsel %vm808_vm7, %v781_v60, %v789_v13  ;;  %v853_v17 = vmul.f32 %v3633_v58, %v820_v28 }
 0x191   :  { %v849_v14 = vmul.f32 %v3633_v58, %v819_v22 }
 0x192   :  { %v799_v27 = vpop.permute.xlu1 %798 }
 0x193   :  { %v816_v26 = vsel %vm808_vm7, %v791_v59, %v799_v27  ;;  %v797_v25 = vpop.permute.xlu0 %796  ;;  %v861_v47 = vpack.c.bf16 %v853_v17, %v849_v14 }
 0x194   :  { %v854_v16 = vmul.f32 %v3640_v30, %v816_v26  ;;  %v815_v15 = vsel %vm808_vm7, %v789_v13, %v797_v25 }
 0x195   :  { %v850_v37 = vmul.f32 %v3640_v30, %v815_v15 }
 0x196   :  { %v807_v42 = vpop.permute.xlu1 %806 }
 0x197   :  { %v812_v0 = vsel %vm808_vm7, %v799_v27, %v807_v42  ;;  %v824_v2 = vsel %vm808_vm7, %v807_v42, %v783_v55  ;;  %v805_v31 = vpop.permute.xlu0 %804  ;;  %v862_v7 = vpack.c.bf16 %v854_v16, %v850_v37 }
 0x198   :  { %v855_v48 = vmul.f32 %v3650_v56, %v812_v0  ;;  %v856_v3 = vmul.f32 %v3653_v45, %v824_v2  ;;  %v811_v34 = vsel %vm808_vm7, %v797_v25, %v805_v31  ;;  %v823_v24 = vsel %vm808_vm7, %v805_v31, %v781_v60 }
 0x199   :  { %v851_v10 = vmul.f32 %v3650_v56, %v811_v34  ;;  %v852_v4 = vmul.f32 %v3653_v45, %v823_v24  ;;  %1057 = vmatprep.subr.bf16.mxu0 %v862_v7 }
 0x19a   :  { %1058 = vmatpush1.bf16.msra.mxu0 %v861_v47 }
 0x19b   :  { %v863_v61 = vpack.c.bf16 %v855_v48, %v851_v10  ;;  %v864_v55 = vpack.c.bf16 %v856_v3, %v852_v4 }
 0x19d   :  { %2526 = vmatmul.mubr.msk.bf16.vlgmr.msra.gmra.mrb[0].mxu0 %vm995_vm8, %v2641_v5  ;;  %1163 = vmatprep.subr.bf16.mxu1 %v864_v55 }
 0x19e   :  { %1164 = vmatpush1.bf16.msra.mxu1 %v863_v61  ;;  %1097 = vmatprep.mubr.bf16.mxu0 %v4867_v11 }
 0x1a1   :  { %2528 = vmatmul.mubr.msk.bf16.vlgmr.msra.gmra.mrb[0].mxu1 %vm995_vm8, %v2641_v5 }
 0x1a2   :  { %1203 = vmatprep.mubr.bf16.mxu1 %v4867_v11 }
 0x1a5   :  { %2527 = vmatmul.mubr.msk.bf16.gmra.mrb[4].mxu0 %vm995_vm8, %v2642_v32 }
 0x1a6   :  { %2051 = vmatprep.mubr.bf16.mxu0 %v2645_v44 }
 0x1a8   :  { %v953_v28 = vpop.permute.xlu1 %952 }
 0x1a9   :  { %2529 = vmatmul.mubr.msk.bf16.gmra.mrb[4].mxu1 %vm995_vm8, %v2642_v32  ;;  %v948_v60 = vpop.permute.xlu0 %947 }
 0x1aa   :  { %2157 = vmatprep.mubr.bf16.mxu1 %v2645_v44 }
 0x270   :  { %v1089_v19 = vpop.f32.mrb[0].mxu0 }
 0x271   :  { %v2548_v59 = vadd.f32 %v1089_v19, %v948_v60  ;;  %v1091_v13 = vpop.f32.mrb[1].mxu0 }
 0x272   :  { %v1093_v22 = vpop.f32.mrb[2].mxu0  ;;  %v2549_v61 = vadd.f32 %v1091_v13, %v948_v60 }
 0x273   :  { %v3700_v27 = vmax.f32 %v2548_v59, 0.0  ;;  %v2550_v17 = vadd.f32 %v1093_v22, %v953_v28  ;;  %v1095_v14 = vpop.f32.mrb[3].mxu0 }
 0x274   :  { %v1195_v26 = vpop.f32.mrb[0].mxu1  ;;  %v2551_v5 = vadd.f32 %v1095_v14, %v953_v28  ;;  %v3764_v19 = vmax.f32 %v2549_v61, 0.0 }
 0x275   :  { %4960 = vst [vmem:[#allocation31_spill] sm:$0xff] %v3700_v27  ;;  %v3702_v25 = vmax.f32 %v2550_v17, 0.0  ;;  %v2556_v16 = vadd.f32 %v1195_v26, %v948_v60  ;;  %v1197_v15 = vpop.f32.mrb[1].mxu1  ;;  %1239 = vrot.lane.b32.xlu1 %v3700_v27, %s2769_s16  ;;  %v958_v17 = vpop.permute.xlu1 %957 }
 0x276   :  { %v1199_v37 = vpop.f32.mrb[2].mxu1  ;;  %v3760_v55 = vmax.f32 %v2551_v5, 0.0  ;;  %4965 = vst [vmem:[#allocation36_spill] sm:$0xff] %v3764_v19  ;;  %v2557_v59 = vadd.f32 %v1197_v15, %v948_v60  ;;  %v963_v60 = vpop.permute.xlu0 %962 }
 0x277   :  { %4961 = vst [vmem:[#allocation32_spill] sm:$0xff] %v3702_v25  ;;  %v3706_v42 = vmax.f32 %v2556_v16, 0.0  ;;  %v2558_v47 = vadd.f32 %v1199_v37, %v953_v28  ;;  %v1201_v0 = vpop.f32.mrb[3].mxu1  ;;  %1241 = vrot.lane.b32.xlu0 %v3702_v25, %s2769_s16 }
 0x278   :  { %v1099_v2 = vpop.f32.mrb[4].mxu0  ;;  %4964 = vst [vmem:[#allocation35_spill] sm:$0xff] %v3760_v55  ;;  %v2559_v32 = vadd.f32 %v1201_v0, %v953_v28  ;;  %v3772_v13 = vmax.f32 %v2557_v59, 0.0 }
 0x279   :  { %4962 = vst [vmem:[#allocation33_spill] sm:$0xff] %v3706_v42  ;;  %v3710_v31 = vmax.f32 %v2558_v47, 0.0  ;;  %v3712_v7 = vpop.f32.mrb[5].mxu0  ;;  %1255 = vrot.lane.b32.xlu1 %v3706_v42, %s2769_s16  ;;  %v2552_v14 = vadd.f32 %v1099_v2, %v958_v17 }
 0x27a   :  { %v1103_v48 = vpop.f32.mrb[6].mxu0  ;;  %v3768_v22 = vmax.f32 %v2559_v32, 0.0  ;;  %4967 = vst [vmem:[#allocation38_spill] sm:$0xff] %v3772_v13  ;;  %v2553_v59 = vadd.f32 %v3712_v7, %v958_v17 }
 0x27b   :  { %4963 = vst [vmem:[#allocation34_spill] sm:$0xff] %v3710_v31  ;;  %v3716_v3 = vpop.f32.mrb[7].mxu0  ;;  %1257 = vrot.lane.b32.xlu0 %v3710_v31, %s2769_s16  ;;  %v2554_v28 = vadd.f32 %v1103_v48, %v963_v60  ;;  %v3816_v15 = vmax.f32 %v2552_v14, 0.0 }
 0x27c   :  { %v1205_v34 = vpop.f32.mrb[4].mxu1  ;;  %4966 = vst [vmem:[#allocation37_spill] sm:$0xff] %v3768_v22  ;;  %v2555_v61 = vadd.f32 %v3716_v3, %v963_v60  ;;  %v3881_v3 = vmax.f32 %v2553_v59, 0.0 }
 0x27d   :  { %v3720_v24 = vpop.f32.mrb[5].mxu1  ;;  %1319 = vrot.lane.b32.xlu1 %v3700_v27, %s2770_s3  ;;  %v3812_v26 = vmax.f32 %v2554_v28, 0.0  ;;  %4969 = vst [vmem:[#allocation40_spill] sm:$0xff] %v3816_v15  ;;  %v2560_v37 = vadd.f32 %v1205_v34, %v958_v17 }
 0x27e   :  { %v1209_v10 = vpop.f32.mrb[6].mxu1  ;;  %v3874_v14 = vmax.f32 %v2555_v61, 0.0  ;;  %v2561_v11 = vadd.f32 %v3720_v24, %v958_v17 }
 0x27f   :  { %v3724_v4 = vpop.f32.mrb[7].mxu1  ;;  %1321 = vrot.lane.b32.xlu0 %v3702_v25, %s2770_s3  ;;  %4968 = vst [vmem:[#allocation39_spill] sm:$0xff] %v3812_v26  ;;  %v2562_v16 = vadd.f32 %v1209_v10, %v963_v60  ;;  %v3824_v0 = vmax.f32 %v2560_v37, 0.0 }
 0x280   :  { %4970 = vst [vmem:[#allocation41_spill] sm:$0xff] %v3874_v14 }
 0x281   :  { %1335 = vrot.lane.b32.xlu1 %v3706_v42, %s2770_s3  ;;  %v3820_v47 = vmax.f32 %v2562_v16, 0.0  ;;  %v2563_v16 = vadd.f32 %v3724_v4, %v963_v60  ;;  %v3894_v4 = vmax.f32 %v2561_v11, 0.0 }
 0x283   :  { %1337 = vrot.lane.b32.xlu0 %v3710_v31, %s2770_s3  ;;  %v3888_v45 = vmax.f32 %v2563_v16, 0.0 }
 0x285   :  { %1399 = vrot.lane.b32.xlu1 %v3700_v27, %s2771_s17 }
 0x287   :  { %1401 = vrot.lane.b32.xlu0 %v3702_v25, %s2771_s17 }
 0x289   :  { %1415 = vrot.lane.b32.xlu1 %v3706_v42, %s2771_s17 }
 0x28b   :  { %1417 = vrot.lane.b32.xlu0 %v3710_v31, %s2771_s17 }
 0x28d   :  { %1479 = vrot.lane.b32.xlu1 %v3700_v27, %s2772_s18 }
 0x28f   :  { %1481 = vrot.lane.b32.xlu0 %v3702_v25, %s2772_s18 }
 0x291   :  { %1495 = vrot.lane.b32.xlu1 %v3706_v42, %s2772_s18 }
 0x293   :  { %1497 = vrot.lane.b32.xlu0 %v3710_v31, %s2772_s18 }
 0x295   :  { %1575 = vrot.lane.b32.xlu1 %v3700_v27, %s2773_s27 }
 0x297   :  { %1577 = vrot.lane.b32.xlu0 %v3702_v25, %s2773_s27 }
 0x299   :  { %1591 = vrot.lane.b32.xlu1 %v3706_v42, %s2773_s27 }
 0x29b   :  { %1593 = vrot.lane.b32.xlu0 %v3710_v31, %s2773_s27 }
 0x29d   :  { %1655 = vrot.lane.b32.xlu1 %v3700_v27, %s2774_s28 }
 0x29f   :  { %1657 = vrot.lane.b32.xlu0 %v3702_v25, %s2774_s28 }
 0x2a1   :  { %1671 = vrot.lane.b32.xlu1 %v3706_v42, %s2774_s28 }
 0x2a3   :  { %1249 = vrot.lane.b32.xlu0 %v3760_v55, %s2769_s16 }
 0x2a5   :  { %1247 = vrot.lane.b32.xlu1 %v3764_v19, %s2769_s16 }
 0x2a7   :  { %1265 = vrot.lane.b32.xlu0 %v3768_v22, %s2769_s16 }
 0x2a9   :  { %1263 = vrot.lane.b32.xlu1 %v3772_v13, %s2769_s16 }
 0x2ab   :  { %1329 = vrot.lane.b32.xlu0 %v3760_v55, %s2770_s3 }
 0x2ad   :  { %1327 = vrot.lane.b32.xlu1 %v3764_v19, %s2770_s3 }
 0x2af   :  { %1345 = vrot.lane.b32.xlu0 %v3768_v22, %s2770_s3 }
 0x2b1   :  { %1343 = vrot.lane.b32.xlu1 %v3772_v13, %s2770_s3 }
 0x2b3   :  { %1409 = vrot.lane.b32.xlu0 %v3760_v55, %s2771_s17 }
 0x2b5   :  { %1407 = vrot.lane.b32.xlu1 %v3764_v19, %s2771_s17 }
 0x2b7   :  { %1425 = vrot.lane.b32.xlu0 %v3768_v22, %s2771_s17 }
 0x2b9   :  { %1423 = vrot.lane.b32.xlu1 %v3772_v13, %s2771_s17 }
 0x2bb   :  { %1489 = vrot.lane.b32.xlu0 %v3760_v55, %s2772_s18 }
 0x2bd   :  { %1487 = vrot.lane.b32.xlu1 %v3764_v19, %s2772_s18 }
 0x2bf   :  { %1505 = vrot.lane.b32.xlu0 %v3768_v22, %s2772_s18 }
 0x2c1   :  { %1503 = vrot.lane.b32.xlu1 %v3772_v13, %s2772_s18 }
 0x2c3   :  { %1585 = vrot.lane.b32.xlu0 %v3760_v55, %s2773_s27 }
 0x2c5   :  { %1583 = vrot.lane.b32.xlu1 %v3764_v19, %s2773_s27 }
 0x2c7   :  { %1601 = vrot.lane.b32.xlu0 %v3768_v22, %s2773_s27 }
 0x2c9   :  { %1599 = vrot.lane.b32.xlu1 %v3772_v13, %s2773_s27 }
 0x2cb   :  { %1665 = vrot.lane.b32.xlu0 %v3760_v55, %s2774_s28 }
 0x2cd   :  { %1663 = vrot.lane.b32.xlu1 %v3764_v19, %s2774_s28 }
 0x2cf   :  { %1245 = vrot.lane.b32.xlu0 %v3812_v26, %s2769_s16 }
 0x2d1   :  { %1243 = vrot.lane.b32.xlu1 %v3816_v15, %s2769_s16 }
 0x2d3   :  { %1261 = vrot.lane.b32.xlu0 %v3820_v47, %s2769_s16 }
 0x2d5   :  { %1259 = vrot.lane.b32.xlu1 %v3824_v0, %s2769_s16 }
 0x2d7   :  { %1325 = vrot.lane.b32.xlu0 %v3812_v26, %s2770_s3 }
 0x2d9   :  { %1323 = vrot.lane.b32.xlu1 %v3816_v15, %s2770_s3 }
 0x2db   :  { %1341 = vrot.lane.b32.xlu0 %v3820_v47, %s2770_s3 }
 0x2dd   :  { %1339 = vrot.lane.b32.xlu1 %v3824_v0, %s2770_s3 }
 0x2df   :  { %1405 = vrot.lane.b32.xlu0 %v3812_v26, %s2771_s17 }
 0x2e1   :  { %1403 = vrot.lane.b32.xlu1 %v3816_v15, %s2771_s17 }
 0x2e3   :  { %1421 = vrot.lane.b32.xlu0 %v3820_v47, %s2771_s17 }
 0x2e5   :  { %1419 = vrot.lane.b32.xlu1 %v3824_v0, %s2771_s17 }
 0x2e7   :  { %1485 = vrot.lane.b32.xlu0 %v3812_v26, %s2772_s18  ;;  %v3848_v2 = vpop.permute.xlu1 %1239 }
 0x2e9   :  { %v3850_v48 = vpop.permute.xlu0 %1241  ;;  %1483 = vrot.lane.b32.xlu1 %v3816_v15, %s2772_s18 }
 0x2eb   :  { %1501 = vrot.lane.b32.xlu0 %v3820_v47, %s2772_s18  ;;  %v3856_v34 = vpop.permute.xlu1 %1255 }
 0x2ed   :  { %v1258_v10 = vpop.permute.xlu0 %1257  ;;  %1499 = vrot.lane.b32.xlu1 %v3824_v0, %s2772_s18 }
 0x2ef   :  { %1581 = vrot.lane.b32.xlu0 %v3812_v26, %s2773_s27  ;;  %v3862_v5 = vpop.permute.xlu1 %1319 }
 0x2f1   :  { %v3865_v32 = vpop.permute.xlu0 %1321  ;;  %1579 = vrot.lane.b32.xlu1 %v3816_v15, %s2773_s27 }
 0x2f3   :  { %1597 = vrot.lane.b32.xlu0 %v3820_v47, %s2773_s27  ;;  %v3872_v28 = vpop.permute.xlu1 %1335 }
 0x2f5   :  { %v3877_v37 = vpop.permute.xlu0 %1337  ;;  %1595 = vrot.lane.b32.xlu1 %v3824_v0, %s2773_s27 }
 0x2f7   :  { %1253 = vrot.lane.b32.xlu0 %v3874_v14, %s2769_s16  ;;  %v3886_v7 = vpop.permute.xlu1 %1399 }
 0x2f9   :  { %v3890_v61 = vpop.permute.xlu0 %1401  ;;  %1251 = vrot.lane.b32.xlu1 %v3881_v3, %s2769_s16 }
 0x2fb   :  { %1269 = vrot.lane.b32.xlu0 %v3888_v45, %s2769_s16  ;;  %v3898_v60 = vpop.permute.xlu1 %1415 }
 0x2fd   :  { %v3900_v24 = vpop.permute.xlu0 %1417  ;;  %1267 = vrot.lane.b32.xlu1 %v3894_v4, %s2769_s16 }
 0x2ff   :  { %1333 = vrot.lane.b32.xlu0 %v3874_v14, %s2770_s3  ;;  %v3906_v17 = vpop.permute.xlu1 %1479 }
 0x300   :  { %4971 = vst [vmem:[#allocation42_spill] sm:$0xff] %v3906_v17 }
 0x301   :  { %v3908_v59 = vpop.permute.xlu0 %1481  ;;  %1331 = vrot.lane.b32.xlu1 %v3881_v3, %s2770_s3 }
 0x303   :  { %1349 = vrot.lane.b32.xlu0 %v3888_v45, %s2770_s3  ;;  %v3914_v11 = vpop.permute.xlu1 %1495 }
 0x305   :  { %v3916_v16 = vpop.permute.xlu0 %1497  ;;  %1347 = vrot.lane.b32.xlu1 %v3894_v4, %s2770_s3 }
 0x307   :  { %1413 = vrot.lane.b32.xlu0 %v3874_v14, %s2771_s17  ;;  %v3922_v56 = vpop.permute.xlu1 %1575 }
 0x308   :  { %4972 = vst [vmem:[#allocation43_spill] sm:$0xff] %v3922_v56 }
 0x309   :  { %v3924_v30 = vpop.permute.xlu0 %1577  ;;  %1411 = vrot.lane.b32.xlu1 %v3881_v3, %s2771_s17 }
 0x30a   :  { %4973 = vst [vmem:[#allocation44_spill] sm:$0xff] %v3924_v30 }
 0x30b   :  { %1429 = vrot.lane.b32.xlu0 %v3888_v45, %s2771_s17  ;;  %v3930_v58 = vpop.permute.xlu1 %1591 }
 0x30c   :  { %4974 = vst [vmem:[#allocation45_spill] sm:$0xff] %v3930_v58 }
 0x30d   :  { %v3932_v33 = vpop.permute.xlu0 %1593  ;;  %1427 = vrot.lane.b32.xlu1 %v3894_v4, %s2771_s17 }
 0x30e   :  { %4975 = vst [vmem:[#allocation46_spill] sm:$0xff] %v3932_v33 }
 0x30f   :  { %1493 = vrot.lane.b32.xlu0 %v3874_v14, %s2772_s18  ;;  %v3938_v38 = vpop.permute.xlu1 %1655 }
 0x310   :  { %4976 = vst [vmem:[#allocation47_spill] sm:$0xff] %v3938_v38 }
 0x311   :  { %v3940_v21 = vpop.permute.xlu0 %1657  ;;  %1491 = vrot.lane.b32.xlu1 %v3881_v3, %s2772_s18 }
 0x312   :  { %4977 = vst [vmem:[#allocation48_spill] sm:$0xff] %v3940_v21 }
 0x313   :  { %1509 = vrot.lane.b32.xlu0 %v3888_v45, %s2772_s18  ;;  %v3946_v8 = vpop.permute.xlu1 %1671 }
 0x314   :  { %4978 = vst [vmem:[#allocation49_spill] sm:$0xff] %v3946_v8 }
 0x315   :  { %v1250_v1 = vpop.permute.xlu0 %1249  ;;  %1507 = vrot.lane.b32.xlu1 %v3894_v4, %s2772_s18 }
 0x316   :  { %v1280_v41 = vsel %vm113_vm0, %v3850_v48, %v1250_v1 }
 0x317   :  { %1589 = vrot.lane.b32.xlu0 %v3874_v14, %s2773_s27  ;;  %v1248_v20 = vpop.permute.xlu1 %1247  ;;  %v1292_v38 = vmul.f32 %v1280_v41, %v2998_v23  ;;  %v1276_v41 = vsel %vm113_vm0, %v1250_v1, %v1258_v10 }
 0x318   :  { %v1279_v43 = vsel %vm113_vm0, %v3848_v2, %v1248_v20  ;;  %v1275_v21 = vsel %vm113_vm0, %v1248_v20, %v3856_v34 }
 0x319   :  { %v1288_v8 = vmul.f32 %v1279_v43, %v2998_v23  ;;  %v1266_v12 = vpop.permute.xlu0 %1265  ;;  %1587 = vrot.lane.b32.xlu1 %v3881_v3, %s2773_s27  ;;  %v1289_v43 = vmul.f32 %v1275_v21, %v3026_v36 }
 0x31a   :  { %v1272_v9 = vsel %vm113_vm0, %v1258_v10, %v1266_v12  ;;  %v1284_v50 = vsel %vm113_vm0, %v1266_v12, %v3850_v48 }
 0x31b   :  { %1605 = vrot.lane.b32.xlu0 %v3888_v45, %s2773_s27  ;;  %v1264_v20 = vpop.permute.xlu1 %1263  ;;  %v1304_v6 = vpack.c.bf16 %v1292_v38, %v1288_v8  ;;  %v1291_v30 = vmul.f32 %v1284_v50, %v3037_v39  ;;  %v1294_v48 = vmul.f32 %v1272_v9, %v3040_v40  ;;  %v1293_v50 = vmul.f32 %v1276_v41, %v3026_v36 }
 0x31c   :  { %v1271_v33 = vsel %vm113_vm0, %v3856_v34, %v1264_v20  ;;  %v1283_v12 = vsel %vm113_vm0, %v1264_v20, %v3848_v2 }
 0x31d   :  { %v1287_v1 = vmul.f32 %v1283_v12, %v3037_v39  ;;  %v1290_v10 = vmul.f32 %v1271_v33, %v3040_v40  ;;  %v3985_v56 = vpop.permute.xlu0 %1329  ;;  %1603 = vrot.lane.b32.xlu1 %v3894_v4, %s2773_s27  ;;  %2019 = vmatprep.subr.bf16.mxu0 %v1304_v6  ;;  %v1305_v9 = vpack.c.bf16 %v1293_v50, %v1289_v43 }
 0x31f   :  { %v1303_v8 = vpack.c.bf16 %v1291_v30, %v1287_v1  ;;  %1673 = vrot.lane.b32.xlu0 %v3710_v31, %s2774_s28  ;;  %v3992_v21 = vpop.permute.xlu1 %1327  ;;  %v1306_v38 = vpack.c.bf16 %v1294_v48, %v1290_v10 }
 0x321   :  { %v3994_v2 = vpop.permute.xlu0 %1345  ;;  %1679 = vrot.lane.b32.xlu1 %v3772_v13, %s2774_s28  ;;  %2020 = vmatpush1.bf16.msra.mxu0 %v1303_v8 }
 0x322   :  { %2125 = vmatprep.subr.bf16.mxu1 %v1306_v38 }
 0x323   :  { %2126 = vmatpush1.bf16.msra.mxu1 %v1305_v9  ;;  %1681 = vrot.lane.b32.xlu0 %v3768_v22, %s2774_s28  ;;  %v4000_v6 = vpop.permute.xlu1 %1343 }
 0x325   :  { %v4002_v33 = vpop.permute.xlu0 %1409  ;;  %1659 = vrot.lane.b32.xlu1 %v3816_v15, %s2774_s28 }
 0x327   :  { %1661 = vrot.lane.b32.xlu0 %v3812_v26, %s2774_s28  ;;  %v4008_v30 = vpop.permute.xlu1 %1407 }
 0x329   :  { %v4010_v34 = vpop.permute.xlu0 %1425  ;;  %1667 = vrot.lane.b32.xlu1 %v3881_v3, %s2774_s28 }
 0x32b   :  { %1669 = vrot.lane.b32.xlu0 %v3874_v14, %s2774_s28  ;;  %v4016_v41 = vpop.permute.xlu1 %1423 }
 0x32d   :  { %v4018_v20 = vpop.permute.xlu0 %1489  ;;  %1675 = vrot.lane.b32.xlu1 %v3824_v0, %s2774_s28 }
 0x32f   :  { %1677 = vrot.lane.b32.xlu0 %v3820_v47, %s2774_s28  ;;  %v4024_v43 = vpop.permute.xlu1 %1487 }
 0x331   :  { %v4026_v12 = vpop.permute.xlu0 %1505  ;;  %1683 = vrot.lane.b32.xlu1 %v3894_v4, %s2774_s28 }
 0x332   :  { %4979 = vst [vmem:[#allocation50_spill] sm:$0xff] %v4026_v12 }
 0x333   :  { %1685 = vrot.lane.b32.xlu0 %v3888_v45, %s2774_s28  ;;  %v4032_v48 = vpop.permute.xlu1 %1503  ;;  %s2780_s28 = smov 124  }
 0x334   :  { %4980 = vst [vmem:[#allocation51_spill] sm:$0xff] %v4032_v48 }
 0x335   :  { %v4034_v1 = vpop.permute.xlu0 %1585  ;;  %1735 = vrot.lane.b32.xlu1 %v3700_v27, %s2775_s29 }
 0x336   :  { %4981 = vst [vmem:[#allocation52_spill] sm:$0xff] %v4034_v1 }
 0x337   :  { %1737 = vrot.lane.b32.xlu0 %v3702_v25, %s2775_s29  ;;  %v4040_v10 = vpop.permute.xlu1 %1583 }
 0x338   :  { %4982 = vst [vmem:[#allocation53_spill] sm:$0xff] %v4040_v10 }
 0x339   :  { %v4042_v50 = vpop.permute.xlu0 %1601  ;;  %1743 = vrot.lane.b32.xlu1 %v3764_v19, %s2775_s29 }
 0x33a   :  { %4983 = vst [vmem:[#allocation54_spill] sm:$0xff] %v4042_v50 }
 0x33b   :  { %1745 = vrot.lane.b32.xlu0 %v3760_v55, %s2775_s29  ;;  %v4048_v8 = vpop.permute.xlu1 %1599 }
 0x33c   :  { %4984 = vst [vmem:[#allocation55_spill] sm:$0xff] %v4048_v8 }
 0x33d   :  { %v4050_v38 = vpop.permute.xlu0 %1665  ;;  %1751 = vrot.lane.b32.xlu1 %v3706_v42, %s2775_s29 }
 0x33e   :  { %4985 = vst [vmem:[#allocation56_spill] sm:$0xff] %v4050_v38 }
 0x33f   :  { %1753 = vrot.lane.b32.xlu0 %v3710_v31, %s2775_s29  ;;  %v4056_v9 = vpop.permute.xlu1 %1663 }
 0x340   :  { %4986 = vst [vmem:[#allocation57_spill] sm:$0xff] %v4056_v9 }
 0x341   :  { %v4058_v1 = vpop.permute.xlu0 %1245  ;;  %1759 = vrot.lane.b32.xlu1 %v3772_v13, %s2775_s29 }
 0x343   :  { %1761 = vrot.lane.b32.xlu0 %v3768_v22, %s2775_s29  ;;  %v4064_v50 = vpop.permute.xlu1 %1243 }
 0x345   :  { %v4066_v8 = vpop.permute.xlu0 %1261  ;;  %1739 = vrot.lane.b32.xlu1 %v3816_v15, %s2775_s29 }
 0x347   :  { %1741 = vrot.lane.b32.xlu0 %v3812_v26, %s2775_s29  ;;  %v4072_v38 = vpop.permute.xlu1 %1259 }
 0x349   :  { %v4074_v9 = vpop.permute.xlu0 %1325  ;;  %1747 = vrot.lane.b32.xlu1 %v3881_v3, %s2775_s29 }
 0x34b   :  { %1749 = vrot.lane.b32.xlu0 %v3874_v14, %s2775_s29  ;;  %v4080_v10 = vpop.permute.xlu1 %1323 }
 0x34d   :  { %v4082_v58 = vpop.permute.xlu0 %1341  ;;  %1755 = vrot.lane.b32.xlu1 %v3824_v0, %s2775_s29 }
 0x34f   :  { %1757 = vrot.lane.b32.xlu0 %v3820_v47, %s2775_s29  ;;  %v4088_v51 = vpop.permute.xlu1 %1339 }
 0x351   :  { %v4090_v54 = vpop.permute.xlu0 %1405  ;;  %1763 = vrot.lane.b32.xlu1 %v3894_v4, %s2775_s29 }
 0x352   :  { %4987 = vst [vmem:[#allocation58_spill] sm:$0xff] %v4090_v54 }
 0x353   :  { %1765 = vrot.lane.b32.xlu0 %v3888_v45, %s2775_s29  ;;  %v4096_v48 = vpop.permute.xlu1 %1403  ;;  %s2781_s29 = smov [#allocation8]  }
 0x354   :  { %4988 = vst [vmem:[#allocation59_spill] sm:$0xff] %v4096_v48 }
 0x355   :  { %v4098_v12 = vpop.permute.xlu0 %1421  ;;  %1815 = vrot.lane.b32.xlu1 %v3700_v27, %s2776_s30  ;;  %v1355_v27 = vsel %vm210_vm1, %v3992_v21, %v3872_v28 }
 0x356   :  { %4989 = vst [vmem:[#allocation60_spill] sm:$0xff] %v4098_v12 }
 0x357   :  { %1817 = vrot.lane.b32.xlu0 %v3702_v25, %s2776_s30  ;;  %v4104_v17 = vpop.permute.xlu1 %1419 }
 0x359   :  { %v4106_v54 = vpop.permute.xlu0 %1485  ;;  %1823 = vrot.lane.b32.xlu1 %v3764_v19, %s2776_s30 }
 0x35b   :  { %1825 = vrot.lane.b32.xlu0 %v3760_v55, %s2776_s30  ;;  %v4112_v12 = vpop.permute.xlu1 %1483  ;;  %v4151_v55 = vmul.f32 %v1355_v27, %v3120_v57 }
 0x35d   :  { %v4114_v48 = vpop.permute.xlu0 %1501  ;;  %1831 = vrot.lane.b32.xlu1 %v3706_v42, %s2776_s30  ;;  %v1359_v42 = vsel %vm210_vm1, %v3862_v5, %v3992_v21  ;;  %v1360_v21 = vsel %vm210_vm1, %v3865_v32, %v3985_v56 }
 0x35e   :  { %v4176_v19 = vmul.f32 %v1360_v21, %v3105_v49  ;;  %v1439_v21 = vsel %vm307_vm2, %v3886_v7, %v4008_v30 }
 0x35f   :  { %1833 = vrot.lane.b32.xlu0 %v3710_v31, %s2776_s30  ;;  %v4120_v25 = vpop.permute.xlu1 %1499  ;;  %v1363_v31 = vsel %vm210_vm1, %v4000_v6, %v3862_v5  ;;  %v1364_v5 = vsel %vm210_vm1, %v3994_v2, %v3865_v32  ;;  %v1435_v32 = vsel %vm307_vm2, %v4008_v30, %v3898_v60 }
 0x360   :  { %v4169_v27 = vmul.f32 %v1363_v31, %v3129_v62 }
 0x361   :  { %v4122_v44 = vpop.permute.xlu0 %1581  ;;  %1839 = vrot.lane.b32.xlu1 %v3772_v13, %s2776_s30  ;;  %v1356_v13 = vsel %vm210_vm1, %v3985_v56, %v3877_v37  ;;  %v4166_v56 = vmul.f32 %v1359_v42, %v3105_v49  ;;  %v1352_v42 = vsel %vm210_vm1, %v3877_v37, %v3994_v2  ;;  %v1440_v37 = vsel %vm307_vm2, %v3890_v61, %v4002_v33 }
 0x362   :  { %4990 = vst [vmem:[#allocation61_spill] sm:$0xff] %v4122_v44 }
 0x363   :  { %1841 = vrot.lane.b32.xlu0 %v3768_v22, %s2776_s30  ;;  %v4140_v44 = vpop.permute.xlu1 %1579  ;;  %v1384_v30 = vpack.c.bf16 %v4176_v19, %v4166_v56  ;;  %v4241_v56 = vmul.f32 %v1439_v21, %v3199_v35 }
 0x364   :  { %4991 = vst [vmem:[#allocation62_spill] sm:$0xff] %v4140_v44  ;;  %v1351_v44 = vsel %vm210_vm1, %v3872_v28, %v4000_v6  ;;  %v4179_v28 = vmul.f32 %v1356_v13, %v3120_v57  ;;  %v4190_v6 = vmul.f32 %v1364_v5, %v3129_v62  ;;  %v1436_v13 = vsel %vm307_vm2, %v4002_v33, %v3900_v24 }
 0x365   :  { %v4161_v22 = vpop.permute.xlu0 %1597  ;;  %1819 = vrot.lane.b32.xlu1 %v3816_v15, %s2776_s30  ;;  %v1444_v33 = vsel %vm307_vm2, %v4010_v34, %v3890_v61 }
 0x366   :  { %4992 = vst [vmem:[#allocation63_spill] sm:$0xff] %v4161_v22  ;;  %v4193_v22 = vmul.f32 %v1351_v44, %v3132_v63  ;;  %v4210_v44 = vmul.f32 %v1435_v32, %v3214_v46  ;;  %v4225_v32 = vmul.f32 %v1440_v37, %v3199_v35 }
 0x367   :  { %1821 = vrot.lane.b32.xlu0 %v3812_v26, %s2776_s30  ;;  %v4187_v31 = vpop.permute.xlu1 %1595  ;;  %v4228_v26 = vmul.f32 %v1436_v13, %v3214_v46  ;;  %v1443_v13 = vsel %vm307_vm2, %v4016_v41, %v3886_v7  ;;  %v4262_v7 = vmul.f32 %v1444_v33, %v3223_v52 }
 0x368   :  { %4993 = vst [vmem:[#allocation64_spill] sm:$0xff] %v4187_v31  ;;  %v4215_v31 = vmul.f32 %v1352_v42, %v3132_v63  ;;  %v1432_v42 = vsel %vm307_vm2, %v3900_v24, %v4010_v34 }
 0x369   :  { %v1254_v5 = vpop.permute.xlu0 %1253  ;;  %1827 = vrot.lane.b32.xlu1 %v3881_v3, %s2776_s30 }
 0x36a   :  { %v1282_v2 = vsel %vm113_vm0, %v4058_v1, %v1254_v5  ;;  %v1386_v37 = vpack.c.bf16 %v4215_v31, %v4193_v22  ;;  %v4265_v22 = vmul.f32 %v1432_v42, %v3226_v53  ;;  %v1278_v33 = vsel %vm113_vm0, %v1254_v5, %v4066_v8 }
 0x36b   :  { %1829 = vrot.lane.b32.xlu0 %v3874_v14, %s2776_s30  ;;  %v1252_v19 = vpop.permute.xlu1 %1251  ;;  %v1300_v34 = vmul.f32 %v1282_v2, %v2998_v23 }
 0x36c   :  { %v1281_v24 = vsel %vm113_vm0, %v4064_v50, %v1252_v19  ;;  %v1277_v21 = vsel %vm113_vm0, %v1252_v19, %v4072_v38  ;;  %v4278_v19 = vmul.f32 %v1443_v13, %v3223_v52 }
 0x36d   :  { %v1296_v15 = vmul.f32 %v1281_v24, %v2998_v23  ;;  %v1270_v14 = vpop.permute.xlu0 %1269  ;;  %1835 = vrot.lane.b32.xlu1 %v3824_v0, %s2776_s30  ;;  %v1431_v23 = vsel %vm307_vm2, %v3898_v60, %v4016_v41  ;;  %v1297_v61 = vmul.f32 %v1277_v21, %v3026_v36 }
 0x36e   :  { %v1274_v31 = vsel %vm113_vm0, %v4066_v8, %v1270_v14  ;;  %v1286_v2 = vsel %vm113_vm0, %v1270_v14, %v4058_v1 }
 0x36f   :  { %1837 = vrot.lane.b32.xlu0 %v3820_v47, %s2776_s30  ;;  %v1268_v42 = vpop.permute.xlu1 %1267  ;;  %v1308_v24 = vpack.c.bf16 %v1300_v34, %v1296_v15  ;;  %v1299_v14 = vmul.f32 %v1286_v2, %v3037_v39  ;;  %v1302_v1 = vmul.f32 %v1274_v31, %v3040_v40  ;;  %v1520_v15 = vsel %vm404_vm3, %v3908_v59, %v4018_v20 }
 0x370   :  { %v1273_v60 = vsel %vm113_vm0, %v4072_v38, %v1268_v42  ;;  %v1285_v41 = vsel %vm113_vm0, %v1268_v42, %v4064_v50  ;;  %v1301_v38 = vmul.f32 %v1278_v33, %v3026_v36  ;;  %v4315_v34 = vsel %vm404_vm3, %v4018_v20, %v3916_v16 }
 0x371   :  { %v1295_v8 = vmul.f32 %v1285_v41, %v3037_v39  ;;  %v1298_v5 = vmul.f32 %v1273_v60, %v3040_v40  ;;  %v1334_v13 = vpop.permute.xlu0 %1333  ;;  %1843 = vrot.lane.b32.xlu1 %v3894_v4, %s2776_s30  ;;  %2021 = vmatprep.subr.bf16.mxu0 %v1308_v24  ;;  %v1464_v39 = vpack.c.bf16 %v4225_v32, %v4241_v56 }
 0x372   :  { %v1362_v50 = vsel %vm210_vm1, %v4074_v9, %v1334_v13  ;;  %v4309_v40 = vmul.f32 %v1431_v23, %v3226_v53  ;;  %v1463_v2 = vpack.c.bf16 %v4262_v7, %v4278_v19  ;;  %v1309_v33 = vpack.c.bf16 %v1301_v38, %v1297_v61 }
 0x373   :  { %v1307_v21 = vpack.c.bf16 %v1299_v14, %v1295_v8  ;;  %1845 = vrot.lane.b32.xlu0 %v3888_v45, %s2776_s30  ;;  %v1332_v36 = vpop.permute.xlu1 %1331  ;;  %v1310_v31 = vpack.c.bf16 %v1302_v1, %v1298_v5  ;;  %v4328_v20 = vmul.f32 %v1520_v15, %v3293_v29  ;;  %v1380_v24 = vmul.f32 %v1362_v50, %v3105_v49  ;;  %s2507_s30 = sshll.u32 %s2781_s29, 4  ;;  %s2508_s30 = int_to_ptr.vmem [resolvable:$true] %s2507_s30 }
 0x374   :  { %v1357_v23 = vsel %vm210_vm1, %v1332_v36, %v4088_v51  ;;  %v1361_v42 = vsel %vm210_vm1, %v4080_v10, %v1332_v36  ;;  %v1515_v61 = vsel %vm404_vm3, %v4024_v43, %v3914_v11  ;;  %v1358_v5 = vsel %vm210_vm1, %v1334_v13, %v4082_v58  ;;  %s2735_s5 = scalar_lea.vmem %s2508_s30, 2048  ;;  %p2740_p3 = scmp.lt.s32.totalorder %s2508_s30, %s2508_s30 }
 0x375   :  { %v1376_v14 = vmul.f32 %v1361_v42, %v3105_v49  ;;  %v1350_v60 = vpop.permute.xlu0 %1349  ;;  %2022 = vmatpush1.bf16.msra.mxu0 %v1307_v21  ;;  %2127 = vmatprep.subr.bf16.mxu1 %v1310_v31  ;;  %v4994_v49 = vld [vmem:[#allocation42_spill] sm:$0xff]  ;;  %v1377_v15 = vmul.f32 %v1357_v23, %v3120_v57  ;;  %v2778_v31 = vmov 1   ;;  %p2736_p2 = scmp.ne.s32.totalorder %s2508_s30, %s2735_s5  ;;  %p2741_p4 = scmp.lt.s32.totalorder %s2735_s5, %s2735_s5 }
 0x376   :  { %v1354_v41 = vsel %vm210_vm1, %v4082_v58, %v1350_v60  ;;  %v1366_v1 = vsel %vm210_vm1, %v1350_v60, %v4074_v9  ;;  %2023 = vmatprep.subr.bf16.mxu0 %v1384_v30  ;;  %2128 = vmatpush1.bf16.msra.mxu1 %v1309_v33  ;;  %v1519_v8 = vsel %vm404_vm3, %v4994_v49, %v4024_v43 }
 0x377   :  { %2129 = vmatprep.subr.bf16.mxu1 %v1386_v37  ;;  %v1348_v38 = vpop.permute.xlu1 %1347  ;;  %v1388_v50 = vpack.c.bf16 %v1380_v24, %v1376_v14  ;;  %v1379_v21 = vmul.f32 %v1366_v1, %v3129_v62  ;;  %v1382_v43 = vmul.f32 %v1354_v41, %v3132_v63  ;;  %v4995_v37 = vpack.c.bf16 %v4190_v6, %v4169_v27  ;;  %v4998_v27 = vld [vmem:[#allocation12_spill] sm:$0xff]  ;;  %p2742_p5 = por %p2741_p4, %p2740_p3 }
 0x378   :  { %v1353_v9 = vsel %vm210_vm1, %v4088_v51, %v1348_v38  ;;  %v1365_v30 = vsel %vm210_vm1, %v1348_v38, %v4080_v10  ;;  %2633 = vset.pattern.permute.xlu1 %v2778_v31  ;;  %v1381_v33 = vmul.f32 %v1358_v5, %v3120_v57  ;;  %v4996_v51 = vld [vmem:[#allocation58_spill] sm:$0xff]  ;;  %v4997_v10 = vpack.c.bf16 %v4179_v28, %v4151_v55  ;;  %v4381_v14 = vld [vmem:[%s4863_s1] sm:$0xff] }
 0x379   :  { %v1375_v36 = vmul.f32 %v1365_v30, %v3129_v62  ;;  %v1378_v58 = vmul.f32 %v1353_v9, %v3132_v63  ;;  %v1414_v13 = vpop.permute.xlu0 %1413  ;;  %2024 = vmatpush1.bf16.msra.mxu0 %v4995_v37  ;;  %v1466_v62 = vpack.c.bf16 %v4265_v22, %v4309_v40  ;;  %v4373_v63 = vmul.f32 %v1519_v8, %v3293_v29  ;;  %v4999_v55 = vld [vmem:[#allocation50_spill] sm:$0xff]  ;;  %v5000_v22 = vld [vmem:[#allocation51_spill] sm:$0xff]  ;;  %p2743_p6 = pnand %p2742_p5, %p2736_p2 }
 0x37a   :  { %v1442_v23 = vsel %vm307_vm2, %v4996_v51, %v1414_v13  ;;  %2025 = vmatprep.subr.bf16.mxu0 %v1388_v50  ;;  %2130 = vmatpush1.bf16.msra.mxu1 %v4997_v10  ;;  %v4376_v6 = vmul.f32 %v1515_v61, %v4998_v27  ;;  %v1512_v28 = vsel %vm404_vm3, %v3916_v16, %v4999_v55  ;;  %v5001_v61 = vld [vmem:[#allocation59_spill] sm:$0xff] }
 0x37b   :  { %v1387_v42 = vpack.c.bf16 %v1379_v21, %v1375_v36  ;;  %v1412_v57 = vpop.permute.xlu1 %1411  ;;  %v1390_v24 = vpack.c.bf16 %v1382_v43, %v1378_v58  ;;  %1968 = vperm.xlu1 %2633, %v4381_v14   ;;  %v1511_v40 = vsel %vm404_vm3, %v3914_v11, %v5000_v22  ;;  %v1389_v60 = vpack.c.bf16 %v1381_v33, %v1377_v15  ;;  %v5002_v15 = vld [vmem:[#allocation60_spill] sm:$0xff]  ;;  %v5003_v21 = vld [vmem:[#allocation14_spill] sm:$0xff] }
 0x37c   :  { %v1441_v41 = vsel %vm307_vm2, %v5001_v61, %v1412_v57  ;;  %2634 = vset.pattern.permute.xlu0 %v2778_v31  ;;  %v1460_v1 = vmul.f32 %v1442_v23, %v3199_v35  ;;  %v1437_v8 = vsel %vm307_vm2, %v1412_v57, %v4104_v17  ;;  %v1524_v11 = vsel %vm404_vm3, %v4999_v55, %v3908_v59 }
 0x37d   :  { %v1456_v5 = vmul.f32 %v1441_v41, %v3199_v35  ;;  %v1430_v16 = vpop.permute.xlu0 %1429  ;;  %2026 = vmatpush1.bf16.msra.mxu0 %v1387_v42  ;;  %2131 = vmatprep.subr.bf16.mxu1 %v1390_v24  ;;  %v1523_v35 = vsel %vm404_vm3, %v5000_v22, %v4994_v49  ;;  %v1530_v59 = vmul.f32 %v1511_v40, %v5003_v21  ;;  %v4437_v49 = vld [vmem:[%s4863_s1 + $0x10] sm:$0xff] }
 0x37e   :  { %v1434_v38 = vsel %vm307_vm2, %v5002_v15, %v1430_v16  ;;  %v1446_v50 = vsel %vm307_vm2, %v1430_v16, %v4996_v51  ;;  %2027 = vmatprep.subr.bf16.mxu0 %v1464_v39  ;;  %2132 = vmatpush1.bf16.msra.mxu1 %v1389_v60  ;;  %v1438_v9 = vsel %vm307_vm2, %v1414_v13, %v5002_v15  ;;  %v4431_v39 = vld [vmem:[%s4863_s1 + $0x8] sm:$0xff] }
 0x37f   :  { %2133 = vmatprep.subr.bf16.mxu1 %v1466_v62  ;;  %v1428_v30 = vpop.permute.xlu1 %1427  ;;  %v1468_v43 = vpack.c.bf16 %v1460_v1, %v1456_v5  ;;  %v1457_v36 = vmul.f32 %v1437_v8, %v3214_v46  ;;  %1972 = vperm.xlu0 %2634, %v4431_v39   ;;  %v1462_v58 = vmul.f32 %v1434_v38, %v3226_v53 }
 0x380   :  { %v1433_v32 = vsel %vm307_vm2, %v4104_v17, %v1428_v30  ;;  %v1445_v56 = vsel %vm307_vm2, %v1428_v30, %v5001_v61  ;;  %1976 = vperm.xlu1 %2633, %v4437_v49   ;;  %v1459_v17 = vmul.f32 %v1446_v50, %v3223_v52  ;;  %v1534_v33 = vmul.f32 %v1512_v28, %v5003_v21  ;;  %v5009_v30 = vld [vmem:[#allocation32_spill] sm:$0xff] }
 0x381   :  { %v1455_v13 = vmul.f32 %v1445_v56, %v3223_v52  ;;  %v1458_v37 = vmul.f32 %v1433_v32, %v3226_v53  ;;  %v1494_v31 = vpop.permute.xlu0 %1493  ;;  %2028 = vmatpush1.bf16.msra.mxu0 %v1463_v2  ;;  %v1461_v51 = vmul.f32 %v1438_v9, %v3214_v46  ;;  %v5004_v10 = vpack.c.bf16 %v4228_v26, %v4210_v44  ;;  %v5005_v52 = vld [vmem:[#allocation13_spill] sm:$0xff]  ;;  %v4465_v26 = vld [vmem:[%s4863_s1 + $0x18] sm:$0xff]  ;;  %s2779_s1 = smov 2  }
 0x382   :  { %v1522_v23 = vsel %vm404_vm3, %v4106_v54, %v1494_v31  ;;  %2029 = vmatprep.subr.bf16.mxu0 %v1468_v43  ;;  %v1531_v53 = vmul.f32 %v1524_v11, %v5005_v52  ;;  %v1527_v62 = vmul.f32 %v1523_v35, %v5005_v52  ;;  %v1544_v57 = vpack.c.bf16 %v4328_v20, %v4373_v63  ;;  %v5006_v35 = vld [vmem:[#allocation36_spill] sm:$0xff]  ;;  %v5008_v9 = vld [vmem:[#allocation31_spill] sm:$0xff]  ;;  %v5011_v32 = vld [vmem:[#allocation53_spill] sm:$0xff] }
 0x383   :  { %2134 = vmatpush1.bf16.msra.mxu1 %v5004_v10  ;;  %v1467_v42 = vpack.c.bf16 %v1459_v17, %v1455_v13  ;;  %v1492_v7 = vpop.permute.xlu1 %1491  ;;  %v1470_v19 = vpack.c.bf16 %v1462_v58, %v1458_v37  ;;  %v1469_v2 = vpack.c.bf16 %v1461_v51, %v1457_v36  ;;  %v1546_v24 = vpack.c.bf16 %v1534_v33, %v1530_v59  ;;  %v5010_v36 = vld [vmem:[#allocation45_spill] sm:$0xff]  ;;  %v5012_v56 = vld [vmem:[#allocation43_spill] sm:$0xff]  ;;  %v5014_v33 = vld [vmem:[#allocation38_spill] sm:$0xff] }
 0x384   :  { %v1521_v46 = vsel %vm404_vm3, %v4112_v12, %v1492_v7  ;;  %1980 = vperm.xlu1 %2633, %v4465_v26   ;;  %v1540_v44 = vmul.f32 %v1522_v23, %v3293_v29  ;;  %v1517_v55 = vsel %vm404_vm3, %v1492_v7, %v4120_v25  ;;  %v1533_v20 = vmul.f32 %v4315_v34, %v4998_v27  ;;  %v5013_v17 = vld [vmem:[#allocation55_spill] sm:$0xff]  ;;  %v5015_v51 = vld [vmem:[#allocation37_spill] sm:$0xff] }
 0x385   :  { %v1536_v28 = vmul.f32 %v1521_v46, %v3293_v29  ;;  %v1510_v22 = vpop.permute.xlu0 %1509  ;;  %2030 = vmatpush1.bf16.msra.mxu0 %v1467_v42  ;;  %2135 = vmatprep.subr.bf16.mxu1 %v1470_v19  ;;  %v1543_v60 = vpack.c.bf16 %v1531_v53, %v1527_v62  ;;  %v1518_v29 = vsel %vm404_vm3, %v1494_v31, %v4114_v48  ;;  %v5016_v10 = vld [vmem:[#allocation33_spill] sm:$0xff]  ;;  %v5018_v62 = vld [vmem:[#allocation46_spill] sm:$0xff]  ;;  %v5019_v42 = vld [vmem:[#allocation52_spill] sm:$0xff] }
 0x386   :  { %v1514_v63 = vsel %vm404_vm3, %v4114_v48, %v1510_v22  ;;  %v1526_v40 = vsel %vm404_vm3, %v1510_v22, %v4106_v54  ;;  %2031 = vmatprep.subr.bf16.mxu0 %v1544_v57  ;;  %v1545_v34 = vpack.c.bf16 %v1533_v20, %v4376_v6  ;;  %v1537_v1 = vmul.f32 %v1517_v55, %v4998_v27  ;;  %v5020_v19 = vld [vmem:[#allocation44_spill] sm:$0xff]  ;;  %v5021_v46 = vld [vmem:[#allocation54_spill] sm:$0xff]  ;;  %v5024_v20 = vld [vmem:[#allocation17_spill] sm:$0xff] }
 0x387   :  { %2136 = vmatpush1.bf16.msra.mxu1 %v1469_v2  ;;  %v1508_v61 = vpop.permute.xlu1 %1507  ;;  %v1548_v41 = vpack.c.bf16 %v1540_v44, %v1536_v28  ;;  %v1539_v5 = vmul.f32 %v1526_v40, %v5005_v52  ;;  %v1542_v16 = vmul.f32 %v1514_v63, %v5003_v21  ;;  %v1541_v6 = vmul.f32 %v1518_v29, %v4998_v27  ;;  %v5023_v55 = vld [vmem:[#allocation16_spill] sm:$0xff] }
 0x388   :  { %2137 = vmatprep.subr.bf16.mxu1 %v1546_v24  ;;  %v1513_v8 = vsel %vm404_vm3, %v4120_v25, %v1508_v61  ;;  %v1525_v54 = vsel %vm404_vm3, %v1508_v61, %v4112_v12  ;;  %v5007_v12 = vld [vmem:[#allocation35_spill] sm:$0xff]  ;;  %v1559_v43 = vpack.c.bf16 %v5009_v30, %v5008_v9  ;;  %v1615_v27 = vsel %vm517_vm4, %v5012_v56, %v5011_v32  ;;  %v5026_v61 = vld [vmem:[#allocation41_spill] sm:$0xff] }
 0x389   :  { %v1535_v48 = vmul.f32 %v1525_v54, %v5005_v52  ;;  %v1538_v11 = vmul.f32 %v1513_v8, %v5003_v21  ;;  %v4496_v15 = vpop.permute.xlu0 %1589  ;;  %2032 = vmatpush1.bf16.msra.mxu0 %v1543_v60  ;;  %v1560_v59 = vpack.c.bf16 %v5007_v12, %v5006_v35  ;;  %v1611_v21 = vsel %vm517_vm4, %v5011_v32, %v5010_v36  ;;  %v5017_v52 = vld [vmem:[#allocation34_spill] sm:$0xff]  ;;  %v5022_v24 = vld [vmem:[#allocation15_spill] sm:$0xff] }
 0x38a   :  { %2033 = vmatprep.subr.bf16.mxu0 %v1548_v41  ;;  %v1607_v58 = vsel %vm517_vm4, %v5010_v36, %v5013_v17  ;;  %v1549_v13 = vpack.c.bf16 %v1541_v6, %v1537_v1  ;;  %v1619_v37 = vsel %vm517_vm4, %v5013_v17, %v5012_v56  ;;  %v1562_v23 = vpack.c.bf16 %v5015_v51, %v5014_v33  ;;  %v5025_v60 = vld [vmem:[#allocation18_spill] sm:$0xff]  ;;  %v5027_v1 = vld [vmem:[#allocation40_spill] sm:$0xff]  ;;  %v5028_v8 = vld [vmem:[#allocation39_spill] sm:$0xff] }
 0x38b   :  { %2138 = vmatpush1.bf16.msra.mxu1 %v1545_v34  ;;  %v1547_v25 = vpack.c.bf16 %v1539_v5, %v1535_v48  ;;  %v1588_v38 = vpop.permute.xlu1 %1587  ;;  %v1550_v50 = vpack.c.bf16 %v1542_v16, %v1538_v11  ;;  %v1561_v53 = vpack.c.bf16 %v5017_v52, %v5016_v10  ;;  %v1612_v7 = vsel %vm517_vm4, %v5019_v42, %v5018_v62  ;;  %v5029_v11 = vld [vmem:[#allocation64_spill] sm:$0xff]  ;;  %v5033_v56 = vld [vmem:[#allocation49_spill] sm:$0xff] }
 0x38c   :  { %v1616_v2 = vsel %vm517_vm4, %v5020_v19, %v5019_v42  ;;  %v1608_v57 = vsel %vm517_vm4, %v5018_v62, %v5021_v46  ;;  %v1623_v44 = vmul.f32 %v1615_v27, %v5022_v24  ;;  %v1624_v28 = vmul.f32 %v1611_v21, %v5023_v55  ;;  %v5032_v21 = vld [vmem:[#allocation61_spill] sm:$0xff]  ;;  %v5036_v10 = vld [vmem:[#allocation48_spill] sm:$0xff] }
 0x38d   :  { %v1606_v31 = vpop.permute.xlu0 %1605  ;;  %2034 = vmatpush1.bf16.msra.mxu0 %v1547_v25  ;;  %2139 = vmatprep.subr.bf16.mxu1 %v1550_v50  ;;  %v1620_v22 = vsel %vm517_vm4, %v5021_v46, %v5020_v19  ;;  %v1625_v63 = vmul.f32 %v1607_v58, %v5024_v20  ;;  %v1626_v29 = vmul.f32 %v1619_v37, %v5025_v60  ;;  %v5030_v50 = vld [vmem:[#allocation62_spill] sm:$0xff]  ;;  %v5034_v27 = vld [vmem:[#allocation57_spill] sm:$0xff]  ;;  %v5035_v37 = vld [vmem:[#allocation56_spill] sm:$0xff] }
 0x38e   :  { %2035 = vmatprep.subr.bf16.mxu0 %v1560_v59  ;;  %v1564_v41 = vpack.c.bf16 %v5026_v61, %v3881_v3  ;;  %v1566_v34 = vpack.c.bf16 %v3888_v45, %v3894_v4  ;;  %v1563_v54 = vpack.c.bf16 %v5028_v8, %v5027_v1  ;;  %v1627_v5 = vmul.f32 %v1616_v2, %v5022_v24  ;;  %v5031_v59 = vld [vmem:[#allocation63_spill] sm:$0xff]  ;;  %v5038_v46 = vld [vmem:[#allocation20_spill] sm:$0xff] }
 0x38f   :  { %2140 = vmatpush1.bf16.msra.mxu1 %v1549_v13  ;;  %v1604_v40 = vpop.permute.xlu1 %1603  ;;  %v1628_v16 = vmul.f32 %v1612_v7, %v5023_v55  ;;  %v1629_v48 = vmul.f32 %v1608_v57, %v5024_v20  ;;  %v1613_v6 = vsel %vm517_vm4, %v1588_v38, %v5029_v11  ;;  %v1630_v3 = vmul.f32 %v1620_v22, %v5025_v60 }
 0x390   :  { %2141 = vmatprep.subr.bf16.mxu1 %v1562_v23  ;;  %v1621_v45 = vsel %vm517_vm4, %v1604_v40, %v5030_v50  ;;  %v1565_v4 = vpack.c.bf16 %v3820_v47, %v3824_v0  ;;  %v1639_v35 = vpack.c.bf16 %v1627_v5, %v1623_v44  ;;  %v1614_v9 = vsel %vm517_vm4, %v4496_v15, %v5031_v59 }
 0x391   :  { %v1674_v25 = vpop.permute.xlu0 %1673  ;;  %2036 = vmatpush1.bf16.msra.mxu0 %v1559_v43  ;;  %v1641_v12 = vpack.c.bf16 %v1629_v48, %v1625_v63  ;;  %v1640_v43 = vpack.c.bf16 %v1628_v16, %v1624_v28  ;;  %v1617_v36 = vsel %vm517_vm4, %v5030_v50, %v1588_v38  ;;  %v1632_v32 = vmul.f32 %v1613_v6, %v5023_v55  ;;  %v5039_v63 = vld [vmem:[#allocation22_spill] sm:$0xff]  ;;  %v5041_v48 = vld [vmem:[#allocation21_spill] sm:$0xff] }
 0x392   :  { %2037 = vmatprep.subr.bf16.mxu0 %v1564_v41  ;;  %v1622_v47 = vsel %vm517_vm4, %v1606_v31, %v5032_v21  ;;  %v1642_v0 = vpack.c.bf16 %v1630_v3, %v1626_v29  ;;  %v1691_v17 = vsel %vm614_vm5, %v5034_v27, %v5033_v56  ;;  %v1609_v58 = vsel %vm517_vm4, %v5029_v11, %v1604_v40 }
 0x393   :  { %2142 = vmatpush1.bf16.msra.mxu1 %v1561_v53  ;;  %v1680_v30 = vpop.permute.xlu1 %1679  ;;  %v1634_v13 = vmul.f32 %v1621_v45, %v5025_v60  ;;  %v1692_v38 = vsel %vm614_vm5, %v5035_v37, %v1674_v25  ;;  %v1618_v51 = vsel %vm517_vm4, %v5032_v21, %v4496_v15  ;;  %v1636_v23 = vmul.f32 %v1614_v9, %v5023_v55  ;;  %v5037_v53 = vld [vmem:[#allocation47_spill] sm:$0xff] }
 0x394   :  { %2143 = vmatprep.subr.bf16.mxu1 %v1566_v34  ;;  %v1695_v62 = vsel %vm614_vm5, %v5037_v53, %v5034_v27  ;;  %v1631_v42 = vmul.f32 %v1617_v36, %v5022_v24  ;;  %v1610_v7 = vsel %vm517_vm4, %v5031_v59, %v1606_v31  ;;  %v1638_v15 = vmul.f32 %v1622_v47, %v5025_v60 }
 0x395   :  { %v1682_v33 = vpop.permute.xlu0 %1681  ;;  %2038 = vmatpush1.bf16.msra.mxu0 %v1563_v54  ;;  %v1633_v2 = vmul.f32 %v1609_v58, %v5024_v20  ;;  %v1708_v57 = vmul.f32 %v1692_v38, %v5038_v46  ;;  %v1699_v44 = vsel %vm614_vm5, %v1680_v30, %v5037_v53  ;;  %v1644_v55 = vpack.c.bf16 %v1636_v23, %v1632_v32 }
 0x396   :  { %v1700_v52 = vsel %vm614_vm5, %v1682_v33, %v5036_v10  ;;  %2039 = vmatprep.subr.bf16.mxu0 %v1640_v43  ;;  %v1635_v28 = vmul.f32 %v1618_v51, %v5022_v24  ;;  %v1688_v22 = vsel %vm614_vm5, %v1674_v25, %v1682_v33  ;;  %v1646_v60 = vpack.c.bf16 %v1638_v15, %v1634_v13  ;;  %v5040_v24 = vld [vmem:[#allocation19_spill] sm:$0xff] }
 0x397   :  { %2144 = vmatpush1.bf16.msra.mxu1 %v1565_v4  ;;  %v1660_v19 = vpop.permute.xlu1 %1659  ;;  %v1710_v31 = vmul.f32 %v1700_v52, %v5039_v63  ;;  %v1696_v29 = vsel %vm614_vm5, %v5036_v10, %v5035_v37  ;;  %v1704_v61 = vmul.f32 %v1691_v17, %v5038_v46  ;;  %v1637_v41 = vmul.f32 %v1610_v7, %v5024_v20 }
 0x398   :  { %2145 = vmatprep.subr.bf16.mxu1 %v1642_v0  ;;  %v1703_v34 = vmul.f32 %v1695_v62, %v5040_v24  ;;  %v1643_v1 = vpack.c.bf16 %v1635_v28, %v1631_v42  ;;  %v1687_v8 = vsel %vm614_vm5, %v5033_v56, %v1680_v30  ;;  %v1706_v54 = vmul.f32 %v1699_v44, %v5039_v63 }
 0x399   :  { %v1662_v40 = vpop.permute.xlu0 %1661  ;;  %2040 = vmatpush1.bf16.msra.mxu0 %v1639_v35  ;;  %v1645_v16 = vpack.c.bf16 %v1637_v41, %v1633_v2  ;;  %v1709_v11 = vmul.f32 %v1688_v22, %v5041_v48  ;;  %v1720_v6 = vpack.c.bf16 %v1708_v57, %v1704_v61  ;;  %v1707_v25 = vmul.f32 %v1696_v29, %v5040_v24 }
 0x39a   :  { %2041 = vmatprep.subr.bf16.mxu0 %v1644_v55  ;;  %v1722_v3 = vpack.c.bf16 %v1710_v31, %v1706_v54  ;;  %v1705_v50 = vmul.f32 %v1687_v8, %v5041_v48  ;;  %v5042_v55 = vld [vmem:[#allocation23_spill] sm:$0xff] }
 0x39b   :  { %2146 = vmatpush1.bf16.msra.mxu1 %v1641_v12  ;;  %v1668_v5 = vpop.permute.xlu1 %1667  ;;  %v1719_v45 = vpack.c.bf16 %v1707_v25, %v1703_v34 }
 0x39c   :  { %2147 = vmatprep.subr.bf16.mxu1 %v1646_v60  ;;  %v1721_v12 = vpack.c.bf16 %v1709_v11, %v1705_v50  ;;  %v1697_v9 = vsel %vm614_vm5, %v1660_v19, %v1668_v5 }
 0x39d   :  { %v1670_v20 = vpop.permute.xlu0 %1669  ;;  %2042 = vmatpush1.bf16.msra.mxu0 %v1643_v1  ;;  %v1711_v0 = vmul.f32 %v1697_v9, %v5040_v24 }
 0x39e   :  { %2043 = vmatprep.subr.bf16.mxu0 %v1720_v6  ;;  %v1698_v4 = vsel %vm614_vm5, %v1662_v40, %v1670_v20 }
 0x39f   :  { %2148 = vmatpush1.bf16.msra.mxu1 %v1645_v16  ;;  %v1676_v35 = vpop.permute.xlu1 %1675  ;;  %v1715_v43 = vmul.f32 %v1698_v4, %v5040_v24 }
 0x3a0   :  { %2149 = vmatprep.subr.bf16.mxu1 %v1722_v3  ;;  %v1693_v59 = vsel %vm614_vm5, %v1668_v5, %v1676_v35  ;;  %v5044_v5 = vld [vmem:[#allocation25_spill] sm:$0xff] }
 0x3a1   :  { %v1678_v30 = vpop.permute.xlu0 %1677  ;;  %2044 = vmatpush1.bf16.msra.mxu0 %v1719_v45  ;;  %v1712_v32 = vmul.f32 %v1693_v59, %v5038_v46  ;;  %v1723_v13 = vpack.c.bf16 %v1715_v43, %v1711_v0 }
 0x3a2   :  { %v1694_v36 = vsel %vm614_vm5, %v1670_v20, %v1678_v30 }
 0x3a3   :  { %2150 = vmatpush1.bf16.msra.mxu1 %v1721_v12  ;;  %v1716_v21 = vmul.f32 %v1694_v36, %v5038_v46  ;;  %v1684_v47 = vpop.permute.xlu1 %1683 }
 0x3a4   :  { %v1689_v56 = vsel %vm614_vm5, %v1676_v35, %v1684_v47  ;;  %v1701_v27 = vsel %vm614_vm5, %v1684_v47, %v1660_v19 }
 0x3a5   :  { %v1686_v17 = vpop.permute.xlu0 %1685  ;;  %v1724_v58 = vpack.c.bf16 %v1716_v21, %v1712_v32  ;;  %v1713_v33 = vmul.f32 %v1689_v56, %v5041_v48  ;;  %v1714_v51 = vmul.f32 %v1701_v27, %v5039_v63 }
 0x3a6   :  { %v1690_v37 = vsel %vm614_vm5, %v1678_v30, %v1686_v17  ;;  %v1702_v38 = vsel %vm614_vm5, %v1686_v17, %v1662_v40 }
 0x3a7   :  { %v1717_v23 = vmul.f32 %v1690_v37, %v5041_v48  ;;  %v1718_v10 = vmul.f32 %v1702_v38, %v5039_v63  ;;  %v1736_v52 = vpop.permute.xlu1 %1735  ;;  %2045 = vmatprep.subr.bf16.mxu0 %v1724_v58  ;;  %v5043_v63 = vld [vmem:[#allocation24_spill] sm:$0xff]  ;;  %v5045_v48 = vld [vmem:[#allocation26_spill] sm:$0xff] }
 0x3a8   :  { %2046 = vmatpush1.bf16.msra.mxu0 %v1723_v13 }
 0x3a9   :  { %v1725_v53 = vpack.c.bf16 %v1717_v23, %v1713_v33  ;;  %v1738_v62 = vpop.permute.xlu0 %1737  ;;  %v1726_v42 = vpack.c.bf16 %v1718_v10, %v1714_v51 }
 0x3ab   :  { %2151 = vmatprep.subr.bf16.mxu1 %v1726_v42  ;;  %v1744_v7 = vpop.permute.xlu1 %1743  ;;  %v2646_v42 = vld [vmem:[#allocation3 + $0x4c] ss:$12 sps:$4 sm:$0xff]  }
 0x3ac   :  { %2152 = vmatpush1.bf16.msra.mxu1 %v1725_v53  ;;  %v1775_v57 = vsel %vm711_vm6, %v1736_v52, %v1744_v7 }
 0x3ad   :  { %v1746_v15 = vpop.permute.xlu0 %1745  ;;  %v1783_v29 = vmul.f32 %v1775_v57, %v5042_v55 }
 0x3ae   :  { %v1776_v19 = vsel %vm711_vm6, %v1738_v62, %v1746_v15 }
 0x3af   :  { %v1752_v2 = vpop.permute.xlu1 %1751  ;;  %v1787_v28 = vmul.f32 %v1776_v19, %v5042_v55 }
 0x3b0   :  { %v1771_v46 = vsel %vm711_vm6, %v1744_v7, %v1752_v2 }
 0x3b1   :  { %v1754_v44 = vpop.permute.xlu0 %1753  ;;  %v1784_v31 = vmul.f32 %v1771_v46, %v5043_v63  ;;  %v1799_v1 = vpack.c.bf16 %v1787_v28, %v1783_v29  ;;  %v5047_v29 = vld [vmem:[#allocation28_spill] sm:$0xff] }
 0x3b2   :  { %v1772_v22 = vsel %vm711_vm6, %v1746_v15, %v1754_v44 }
 0x3b3   :  { %v1788_v40 = vmul.f32 %v1772_v22, %v5043_v63  ;;  %v1760_v60 = vpop.permute.xlu1 %1759 }
 0x3b4   :  { %v1767_v61 = vsel %vm711_vm6, %v1752_v2, %v1760_v60  ;;  %v1779_v41 = vsel %vm711_vm6, %v1760_v60, %v1736_v52 }
 0x3b5   :  { %v1762_v24 = vpop.permute.xlu0 %1761  ;;  %v1800_v34 = vpack.c.bf16 %v1788_v40, %v1784_v31  ;;  %v1785_v16 = vmul.f32 %v1767_v61, %v5044_v5  ;;  %v1786_v11 = vmul.f32 %v1779_v41, %v5045_v48  ;;  %v5046_v31 = vld [vmem:[#allocation27_spill] sm:$0xff] }
 0x3b6   :  { %v1768_v8 = vsel %vm711_vm6, %v1754_v44, %v1762_v24  ;;  %v1780_v54 = vsel %vm711_vm6, %v1762_v24, %v1738_v62  ;;  %v2643_v62 = vld [vmem:[#allocation3 + $0x30] ss:$12 sps:$4 sm:$0xff]  }
 0x3b7   :  { %v1789_v6 = vmul.f32 %v1768_v8, %v5044_v5  ;;  %v1790_v25 = vmul.f32 %v1780_v54, %v5045_v48  ;;  %v1740_v20 = vpop.permute.xlu1 %1739  ;;  %2047 = vmatprep.subr.bf16.mxu0 %v1800_v34  ;;  %v5048_v54 = vmov 0  }
 0x3b8   :  { %2048 = vmatpush1.bf16.msra.mxu0 %v1799_v1 }
 0x3b9   :  { %v1801_v3 = vpack.c.bf16 %v1789_v6, %v1785_v16  ;;  %v1742_v50 = vpop.permute.xlu0 %1741  ;;  %v1802_v45 = vpack.c.bf16 %v1790_v25, %v1786_v11  ;;  %v5049_v11 = vld [vmem:[#allocation29_spill] sm:$0xff] }
 0x3bb   :  { %2153 = vmatprep.subr.bf16.mxu1 %v1802_v45  ;;  %v1748_v4 = vpop.permute.xlu1 %1747 }
 0x3bc   :  { %2154 = vmatpush1.bf16.msra.mxu1 %v1801_v3  ;;  %v1777_v30 = vsel %vm711_vm6, %v1740_v20, %v1748_v4  ;;  %v5050_v3 = vld [vmem:[#allocation30_spill] sm:$0xff] }
 0x3bd   :  { %v1750_v35 = vpop.permute.xlu0 %1749  ;;  %v1791_v56 = vmul.f32 %v1777_v30, %v5042_v55 }
 0x3be   :  { %v1778_v12 = vsel %vm711_vm6, %v1742_v50, %v1750_v35 }
 0x3bf   :  { %v1756_v59 = vpop.permute.xlu1 %1755  ;;  %v1795_v36 = vmul.f32 %v1778_v12, %v5042_v55  ;;  %v2648_v55 = vld [vmem:[#allocation3 + $0x48] ss:$12 sps:$4 sm:$0xff]  }
 0x3c0   :  { %v1773_v9 = vsel %vm711_vm6, %v1748_v4, %v1756_v59 }
 0x3c1   :  { %v1758_v43 = vpop.permute.xlu0 %1757  ;;  %v1792_v21 = vmul.f32 %v1773_v9, %v5043_v63  ;;  %v1803_v37 = vpack.c.bf16 %v1795_v36, %v1791_v56 }
 0x3c2   :  { %v1774_v32 = vsel %vm711_vm6, %v1750_v35, %v1758_v43 }
 0x3c3   :  { %v1796_v47 = vmul.f32 %v1774_v32, %v5043_v63  ;;  %v1764_v0 = vpop.permute.xlu1 %1763 }
 0x3c4   :  { %v1769_v27 = vsel %vm711_vm6, %v1756_v59, %v1764_v0  ;;  %v1781_v17 = vsel %vm711_vm6, %v1764_v0, %v1740_v20 }
 0x3c5   :  { %v1766_v58 = vpop.permute.xlu0 %1765  ;;  %v1804_v13 = vpack.c.bf16 %v1796_v47, %v1792_v21  ;;  %v1793_v51 = vmul.f32 %v1769_v27, %v5044_v5  ;;  %v1794_v23 = vmul.f32 %v1781_v17, %v5045_v48 }
 0x3c6   :  { %v1770_v38 = vsel %vm711_vm6, %v1758_v43, %v1766_v58  ;;  %v1782_v33 = vsel %vm711_vm6, %v1766_v58, %v1742_v50 }
 0x3c7   :  { %v1797_v10 = vmul.f32 %v1770_v38, %v5044_v5  ;;  %v1798_v52 = vmul.f32 %v1782_v33, %v5045_v48  ;;  %v1816_v53 = vpop.permute.xlu1 %1815  ;;  %2049 = vmatprep.subr.bf16.mxu0 %v1804_v13 }
 0x3c8   :  { %2050 = vmatpush1.bf16.msra.mxu0 %v1803_v37 }
 0x3c9   :  { %v1805_v7 = vpack.c.bf16 %v1797_v10, %v1793_v51  ;;  %v1818_v15 = vpop.permute.xlu0 %1817  ;;  %v1806_v19 = vpack.c.bf16 %v1798_v52, %v1794_v23 }
 0x3cb   :  { %2155 = vmatprep.subr.bf16.mxu1 %v1806_v19  ;;  %v1824_v2 = vpop.permute.xlu1 %1823  ;;  %2052 = vmatmul.mubr.bf16.vlgmr.msra.gmra.mrb[8].mxu0 %v2643_v62  ;;  %v2649_v19 = vld [vmem:[#allocation3 + $0x38] ss:$12 sps:$4 sm:$0xff]  }
 0x3cc   :  { %2156 = vmatpush1.bf16.msra.mxu1 %v1805_v7  ;;  %2061 = vmatprep.mubr.bf16.mxu0 %v2646_v42  ;;  %v1855_v22 = vsel %vm808_vm7, %v1816_v53, %v1824_v2 }
 0x3cd   :  { %v1826_v46 = vpop.permute.xlu0 %1825  ;;  %v1863_v34 = vmul.f32 %v1855_v22, %v5046_v31 }
 0x3ce   :  { %v1856_v57 = vsel %vm808_vm7, %v1818_v15, %v1826_v46 }
 0x3cf   :  { %v1832_v44 = vpop.permute.xlu1 %1831  ;;  %2158 = vmatmul.mubr.bf16.vlgmr.msra.gmra.mrb[8].mxu1 %v2643_v62  ;;  %v1867_v40 = vmul.f32 %v1856_v57, %v5046_v31 }
 0x3d0   :  { %v1851_v28 = vsel %vm808_vm7, %v1824_v2, %v1832_v44  ;;  %2167 = vmatprep.mubr.bf16.mxu1 %v2646_v42 }
 0x3d1   :  { %v1834_v63 = vpop.permute.xlu0 %1833  ;;  %v1864_v61 = vmul.f32 %v1851_v28, %v5047_v29  ;;  %v1879_v48 = vpack.c.bf16 %v1867_v40, %v1863_v34 }
 0x3d2   :  { %v1852_v60 = vsel %vm808_vm7, %v1826_v46, %v1834_v63 }
 0x3d3   :  { %v1868_v41 = vmul.f32 %v1852_v60, %v5047_v29  ;;  %v1840_v24 = vpop.permute.xlu1 %1839  ;;  %2062 = vmatmul.mubr.bf16.gmra.mrb[12].mxu0 %v2648_v55 }
 0x3d4   :  { %v1847_v1 = vsel %vm808_vm7, %v1832_v44, %v1840_v24  ;;  %v1859_v8 = vsel %vm808_vm7, %v1840_v24, %v1816_v53  ;;  %2104 = vmatprep.mubr.bf16.mxu0 %v5048_v54 }
 0x3d5   :  { %v1842_v5 = vpop.permute.xlu0 %1841  ;;  %v1880_v16 = vpack.c.bf16 %v1868_v41, %v1864_v61  ;;  %v1865_v6 = vmul.f32 %v1847_v1, %v5049_v11  ;;  %v1866_v50 = vmul.f32 %v1859_v8, %v5050_v3 }
 0x3d6   :  { %v1848_v25 = vsel %vm808_vm7, %v1834_v63, %v1842_v5  ;;  %v1860_v20 = vsel %vm808_vm7, %v1842_v5, %v1818_v15 }
 0x3d7   :  { %v1869_v45 = vmul.f32 %v1848_v25, %v5049_v11  ;;  %v1870_v4 = vmul.f32 %v1860_v20, %v5050_v3  ;;  %v1820_v35 = vpop.permute.xlu1 %1819  ;;  %2072 = vmatprep.subr.bf16.mxu0 %v1880_v16  ;;  %2168 = vmatmul.mubr.bf16.gmra.mrb[12].mxu1 %v2648_v55 }
 0x3d8   :  { %2073 = vmatpush1.bf16.msra.mxu0 %v1879_v48  ;;  %2210 = vmatprep.mubr.bf16.mxu1 %v5048_v54 }
 0x3d9   :  { %v1881_v12 = vpack.c.bf16 %v1869_v45, %v1865_v6  ;;  %v1822_v59 = vpop.permute.xlu0 %1821  ;;  %v1882_v9 = vpack.c.bf16 %v1870_v4, %v1866_v50 }
 0x3db   :  { %2178 = vmatprep.subr.bf16.mxu1 %v1882_v9  ;;  %v1828_v30 = vpop.permute.xlu1 %1827 }
 0x3dc   :  { %2179 = vmatpush1.bf16.msra.mxu1 %v1881_v12  ;;  %v1857_v47 = vsel %vm808_vm7, %v1820_v35, %v1828_v30 }
 0x3dd   :  { %v1830_v43 = vpop.permute.xlu0 %1829  ;;  %v1871_v37 = vmul.f32 %v1857_v47, %v5046_v31 }
 0x3de   :  { %v1858_v36 = vsel %vm808_vm7, %v1822_v59, %v1830_v43 }
 0x3df   :  { %v1836_v32 = vpop.permute.xlu1 %1835  ;;  %v1875_v56 = vmul.f32 %v1858_v36, %v5046_v31 }
 0x3e0   :  { %v1853_v21 = vsel %vm808_vm7, %v1828_v30, %v1836_v32 }
 0x3e1   :  { %v1838_v0 = vpop.permute.xlu0 %1837  ;;  %v1872_v17 = vmul.f32 %v1853_v21, %v5047_v29  ;;  %v1883_v10 = vpack.c.bf16 %v1875_v56, %v1871_v37 }
 0x3e2   :  { %v1854_v27 = vsel %vm808_vm7, %v1830_v43, %v1838_v0 }
 0x3e3   :  { %v1876_v58 = vmul.f32 %v1854_v27, %v5047_v29  ;;  %v1844_v13 = vpop.permute.xlu1 %1843 }
 0x3e4   :  { %v1849_v38 = vsel %vm808_vm7, %v1836_v32, %v1844_v13  ;;  %v1861_v33 = vsel %vm808_vm7, %v1844_v13, %v1820_v35 }
 0x3e5   :  { %v1846_v51 = vpop.permute.xlu0 %1845  ;;  %v1884_v23 = vpack.c.bf16 %v1876_v58, %v1872_v17  ;;  %v1873_v62 = vmul.f32 %v1849_v38, %v5049_v11  ;;  %v1874_v42 = vmul.f32 %v1861_v33, %v5050_v3 }
 0x3e6   :  { %v1850_v52 = vsel %vm808_vm7, %v1838_v0, %v1846_v51  ;;  %v1862_v53 = vsel %vm808_vm7, %v1846_v51, %v1822_v59 }
 0x3e7   :  { %v1877_v7 = vmul.f32 %v1850_v52, %v5049_v11  ;;  %v1878_v15 = vmul.f32 %v1862_v53, %v5050_v3  ;;  %2074 = vmatprep.subr.bf16.mxu0 %v1884_v23 }
 0x3e8   :  { %2075 = vmatpush1.bf16.msra.mxu0 %v1883_v10 }
 0x3e9   :  { %v1885_v2 = vpack.c.bf16 %v1877_v7, %v1873_v62  ;;  %v1886_v46 = vpack.c.bf16 %v1878_v15, %v1874_v42 }
 0x3eb   :  { %2536 = vmatmul.mubr.msk.bf16.vlgmr.msra.gmra.mrb[8].mxu0 %vm995_vm8, %v2649_v19  ;;  %2180 = vmatprep.subr.bf16.mxu1 %v1886_v46 }
 0x3ec   :  { %2181 = vmatpush1.bf16.msra.mxu1 %v1885_v2  ;;  %2114 = vmatprep.mubr.bf16.mxu0 %v5048_v54 }
 0x3ef   :  { %2538 = vmatmul.mubr.msk.bf16.vlgmr.msra.gmra.mrb[8].mxu1 %vm995_vm8, %v2649_v19 }
 0x3f0   :  { %2220 = vmatprep.mubr.bf16.mxu1 %v5048_v54 }
 0x3f3   :  { %2537 = vmatmul.mubr.msk.bf16.gmra.mrb[12].mxu0 %vm995_vm8, %v2650_v18 }
 0x3f7   :  { %2539 = vmatmul.mubr.msk.bf16.gmra.mrb[12].mxu1 %vm995_vm8, %v2650_v18 }
 0x3fa   :  { %v1969_v57 = vpop.permute.xlu1 %1968 }
 0x3fe   :  { %v1973_v55 = vpop.permute.xlu0 %1972 }
 0x3ff   :  { %v1977_v1 = vpop.permute.xlu1 %1976 }
 0x403   :  { %v1981_v4 = vpop.permute.xlu1 %1980 }
 0x4be   :  { %v2106_v44 = vpop.f32.mrb[8].mxu0 }
 0x4bf   :  { %v4751_v28 = vadd.f32 %v2106_v44, %v1969_v57  ;;  %v2108_v22 = vpop.f32.mrb[9].mxu0 }
 0x4c0   :  { %v4753_v63 = vadd.f32 %v2108_v22, %v1969_v57  ;;  %v2110_v31 = vpop.f32.mrb[10].mxu0 }
 0x4c1   :  { %v4755_v40 = vadd.f32 %v2110_v31, %v1973_v55  ;;  %v2112_v60 = vpop.f32.mrb[11].mxu0 }
 0x4c2   :  { %v2239_v29 = vadd.f32 %v4753_v63, %v4751_v28  ;;  %v4759_v61 = vadd.f32 %v2112_v60, %v1973_v55  ;;  %v2212_v41 = vpop.f32.mrb[8].mxu1 }
 0x4c3   :  { %v4761_v24 = vadd.f32 %v2212_v41, %v1969_v57  ;;  %v2214_v34 = vpop.f32.mrb[9].mxu1 }
 0x4c4   :  { %v2242_v8 = vadd.f32 %v4759_v61, %v4755_v40  ;;  %v4765_v54 = vadd.f32 %v2214_v34, %v1969_v57  ;;  %v2216_v5 = vpop.f32.mrb[10].mxu1  ;;  %2240 = vadd.xlane.f32.xlu0 %v2239_v29 }
 0x4c5   :  { %v2218_v16 = vpop.f32.mrb[11].mxu1  ;;  %v4769_v11 = vadd.f32 %v2216_v5, %v1973_v55 }
 0x4c6   :  { %v2376_v48 = vadd.f32 %v4765_v54, %v4761_v24  ;;  %v4771_v6 = vadd.f32 %v2218_v16, %v1973_v55  ;;  %v2116_v25 = vpop.f32.mrb[12].mxu0  ;;  %2243 = vadd.xlane.f32.xlu1 %v2242_v8 }
 0x4c7   :  { %v4773_v20 = vadd.f32 %v2116_v25, %v1977_v1  ;;  %v2118_v3 = vpop.f32.mrb[13].mxu0 }
 0x4c8   :  { %v4775_v50 = vadd.f32 %v2118_v3, %v1977_v1  ;;  %v2120_v45 = vpop.f32.mrb[14].mxu0  ;;  %2377 = vadd.xlane.f32.xlu0 %v2376_v48  ;;  %v2379_v12 = vadd.f32 %v4771_v6, %v4769_v11 }
 0x4c9   :  { %v2122_v35 = vpop.f32.mrb[15].mxu0  ;;  %v4781_v9 = vadd.f32 %v2120_v45, %v1981_v4 }
 0x4ca   :  { %v2245_v59 = vadd.f32 %v4775_v50, %v4773_v20  ;;  %v4783_v30 = vadd.f32 %v2122_v35, %v1981_v4  ;;  %v2222_v43 = vpop.f32.mrb[12].mxu1 }
 0x4cb   :  { %v4785_v36 = vadd.f32 %v2222_v43, %v1977_v1  ;;  %v2224_v32 = vpop.f32.mrb[13].mxu1 }
 0x4cc   :  { %v4787_v21 = vadd.f32 %v2224_v32, %v1977_v1  ;;  %v2226_v47 = vpop.f32.mrb[14].mxu1  ;;  %2246 = vadd.xlane.f32.xlu1 %v2245_v59  ;;  %2380 = vadd.xlane.f32.xlu0 %v2379_v12  ;;  %v2248_v56 = vadd.f32 %v4783_v30, %v4781_v9 }
 0x4cd   :  { %v2228_v0 = vpop.f32.mrb[15].mxu1  ;;  %v4793_v17 = vadd.f32 %v2226_v47, %v1981_v4 }
 0x4ce   :  { %v2382_v27 = vadd.f32 %v4787_v21, %v4785_v36  ;;  %v4795_v58 = vadd.f32 %v2228_v0, %v1981_v4 }
 0x4d0   :  { %2249 = vadd.xlane.f32.xlu1 %v2248_v56  ;;  %2383 = vadd.xlane.f32.xlu0 %v2382_v27  ;;  %v2385_v13 = vadd.f32 %v4795_v58, %v4793_v17 }
 0x4d4   :  { %2386 = vadd.xlane.f32.xlu0 %v2385_v13 }
 0x551   :  { %v2241_v37 = vpop.xlane.xlu0 %2240 }
 0x552   :  { %v2252_v51 = vmul.f32 0.00390625, %v2241_v37 }
 0x553   :  { %v2244_v38 = vpop.xlane.xlu1 %2243 }
 0x554   :  { %v2253_v33 = vmul.f32 0.00390625, %v2244_v38  ;;  %v2256_v52 = vmul.f32 %v4381_v14, %v2252_v51 }
 0x555   :  { %v2378_v23 = vpop.xlane.xlu0 %2377 }
 0x556   :  { %v2257_v10 = vmul.f32 %v4431_v39, %v2253_v33  ;;  %v2388_v42 = vmul.f32 0.00390625, %v2378_v23  ;;  %v2261_v18 = vsel %vm2260_vm9, %v2256_v52, 0.0 }
 0x558   :  { %v2262_v19 = vsel %vm2260_vm9, %v2257_v10, 0.0  ;;  %v2392_v55 = vmul.f32 %v4381_v14, %v2388_v42 }
 0x559   :  { %v2247_v53 = vpop.xlane.xlu1 %2246  ;;  %v2381_v62 = vpop.xlane.xlu0 %2380  ;;  %v2263_v29 = vadd.f32 %v2262_v19, %v2261_v18 }
 0x55a   :  { %v2254_v7 = vmul.f32 0.00390625, %v2247_v53  ;;  %v2389_v15 = vmul.f32 0.00390625, %v2381_v62  ;;  %v2396_v16 = vsel %vm2260_vm9, %v2392_v55, 0.0 }
 0x55c   :  { %v2258_v2 = vmul.f32 %v4437_v49, %v2254_v7  ;;  %v2393_v46 = vmul.f32 %v4431_v39, %v2389_v15 }
 0x55d   :  { %v2250_v57 = vpop.xlane.xlu1 %2249  ;;  %v2384_v44 = vpop.xlane.xlu0 %2383 }
 0x55e   :  { %v2264_v22 = vsel %vm2260_vm9, %v2258_v2, 0.0  ;;  %v2255_v31 = vmul.f32 0.00390625, %v2250_v57  ;;  %v2390_v60 = vmul.f32 0.00390625, %v2384_v44  ;;  %v2397_v41 = vsel %vm2260_vm9, %v2393_v46, 0.0 }
 0x55f   :  { %v2265_v8 = vadd.f32 %v2264_v22, %v2263_v29  ;;  %v2398_v45 = vadd.f32 %v2397_v41, %v2396_v16 }
 0x560   :  { %v2259_v34 = vmul.f32 %v4465_v26, %v2255_v31  ;;  %v2394_v1 = vmul.f32 %v4437_v49, %v2390_v60 }
 0x561   :  { %v2387_v5 = vpop.xlane.xlu0 %2386 }
 0x562   :  { %v2266_v48 = vsel %vm2260_vm9, %v2259_v34, 0.0  ;;  %v2399_v25 = vsel %vm2260_vm9, %v2394_v1, 0.0  ;;  %v2391_v3 = vmul.f32 0.00390625, %v2387_v5 }
 0x563   :  { %v2267_v4 = vadd.f32 %v2266_v48, %v2265_v8  ;;  %v2400_v59 = vadd.f32 %v2399_v25, %v2398_v45 }
 0x564   :  { %v2395_v35 = vmul.f32 %v4465_v26, %v2391_v3 }
 0x565   :  { %v2268_v12 = vrot.slane %v2267_v4, 4 }
 0x566   :  { %v2401_v43 = vsel %vm2260_vm9, %v2395_v35, 0.0 }
 0x567   :  { %v2269_v32 = vadd.f32 %v2268_v12, %v2267_v4  ;;  %v2402_v47 = vadd.f32 %v2401_v43, %v2400_v59 }
 0x569   :  { %v2270_v0 = vrot.slane %v2269_v32, 2  ;;  %v2403_v56 = vrot.slane %v2402_v47, 4 }
 0x56b   :  { %v2271_v27 = vadd.f32 %v2270_v0, %v2269_v32  ;;  %v2404_v13 = vadd.f32 %v2403_v56, %v2402_v47 }
 0x56d   :  { %v2405_v37 = vrot.slane %v2404_v13, 2  ;;  %v2272_v38 = vrot.slane %v2271_v27, 1 }
 0x56f   :  { %v2406_v33 = vadd.f32 %v2405_v37, %v2404_v13  ;;  %v2273_v51 = vadd.f32 %v2272_v38, %v2271_v27 }
 0x571   :  { %v2274_v23 = vmax.f32 %v2273_v51, 0.0  ;;  %v2407_v10 = vrot.slane %v2406_v33, 1 }
 0x573   :  { %2276 = vrot.lane.b32.xlu1 %v2274_v23, %s2779_s1  ;;  %v2408_v52 = vadd.f32 %v2407_v10, %v2406_v33 }
 0x575   :  { %v2409_v53 = vmax.f32 %v2408_v52, 0.0 }
 0x577   :  { %2411 = vrot.lane.b32.xlu0 %v2409_v53, %s2779_s1 }
 0x5e5   :  { %v2277_v62 = vpop.permute.xlu1 %2276 }
 0x5e6   :  { %v2279_v42 = vmul.f32 %v4381_v14, %v2277_v62  ;;  %v2281_v7 = vmul.f32 %v4437_v49, %v2277_v62  ;;  %v2280_v19 = vmul.f32 %v4431_v39, %v2277_v62  ;;  %v2282_v46 = vmul.f32 %v4465_v26, %v2277_v62 }
 0x5e8   :  { %2287 = vrot.lane.b32.xlu1 %v2279_v42, %s2780_s28  ;;  %2291 = vrot.lane.b32.xlu0 %v2281_v7, %s2780_s28 }
 0x5e9   :  { %v2412_v15 = vpop.permute.xlu0 %2411 }
 0x5ea   :  { %v2414_v2 = vmul.f32 %v4381_v14, %v2412_v15  ;;  %v2416_v18 = vmul.f32 %v4437_v49, %v2412_v15  ;;  %v2415_v57 = vmul.f32 %v4431_v39, %v2412_v15  ;;  %v2417_v44 = vmul.f32 %v4465_v26, %v2412_v15 }
 0x5ec   :  { %2289 = vrot.lane.b32.xlu1 %v2280_v19, %s2780_s28  ;;  %2422 = vrot.lane.b32.xlu0 %v2414_v2, %s2780_s28 }
 0x5f0   :  { %2293 = vrot.lane.b32.xlu1 %v2282_v46, %s2780_s28  ;;  %2426 = vrot.lane.b32.xlu0 %v2416_v18, %s2780_s28  ;;  %v2231_v46 = vld [vmem:[#allocation6] sm:$0xff]  ;;  %v2232_v18 = vld [vmem:[#allocation6 + $0x8] sm:$0xff] }
 0x5f4   :  { %2424 = vrot.lane.b32.xlu1 %v2415_v57, %s2780_s28 }
 0x5f8   :  { %2428 = vrot.lane.b32.xlu1 %v2417_v44, %s2780_s28 }
 0x65a   :  { %v2288_v55 = vpop.permute.xlu1 %2287  ;;  %v2292_v22 = vpop.permute.xlu0 %2291 }
 0x65b   :  { %v2300_v31 = vsel %vm2299_vm10, %v2288_v55, 0.0  ;;  %v2306_v29 = vsel %vm2299_vm10, %v2292_v22, 0.0 }
 0x65c   :  { %2301 = vadd.xlane.f32.xlu0 %v2300_v31 }
 0x65e   :  { %v2290_v14 = vpop.permute.xlu1 %2289  ;;  %v2423_v60 = vpop.permute.xlu0 %2422 }
 0x65f   :  { %v2303_v49 = vsel %vm2299_vm10, %v2290_v14, 0.0  ;;  %v2434_v39 = vsel %vm2299_vm10, %v2423_v60, 0.0 }
 0x660   :  { %2304 = vadd.xlane.f32.xlu1 %v2303_v49  ;;  %2307 = vadd.xlane.f32.xlu0 %v2306_v29 }
 0x662   :  { %v2294_v41 = vpop.permute.xlu1 %2293  ;;  %v2427_v34 = vpop.permute.xlu0 %2426 }
 0x663   :  { %v2309_v26 = vsel %vm2299_vm10, %v2294_v41, 0.0  ;;  %v2440_v8 = vsel %vm2299_vm10, %v2427_v34, 0.0  ;;  %v2233_v41 = vld [vmem:[#allocation6 + $0x20] sm:$0xff] }
 0x664   :  { %2310 = vadd.xlane.f32.xlu0 %v2309_v26  ;;  %2435 = vadd.xlane.f32.xlu1 %v2434_v39  ;;  %v2234_v39 = vld [vmem:[#allocation6 + $0x28] sm:$0xff] }
 0x666   :  { %v2425_v1 = vpop.permute.xlu1 %2424 }
 0x667   :  { %v2437_v5 = vsel %vm2299_vm10, %v2425_v1, 0.0 }
 0x668   :  { %2438 = vadd.xlane.f32.xlu0 %v2437_v5  ;;  %2441 = vadd.xlane.f32.xlu1 %v2440_v8 }
 0x66a   :  { %v2429_v16 = vpop.permute.xlu1 %2428 }
 0x66b   :  { %v2443_v48 = vsel %vm2299_vm10, %v2429_v16, 0.0 }
 0x66c   :  { %2444 = vadd.xlane.f32.xlu0 %v2443_v48  ;;  %v2236_v48 = vld [vmem:[#allocation6 + $0x48] sm:$0xff] }
 0x6e9   :  { %v2302_v25 = vpop.xlane.xlu0 %2301 }
 0x6ea   :  { %v2540_v3 = vmul.f32 -1.442695, %v2302_v25 }
 0x6ec   :  { %2651 = vpow2.f32 %v2540_v3 }
 0x6ed   :  { %v2305_v45 = vpop.xlane.xlu1 %2304  ;;  %v2308_v4 = vpop.xlane.xlu0 %2307 }
 0x6ee   :  { %v2541_v35 = vmul.f32 -1.442695, %v2305_v45  ;;  %v2542_v12 = vmul.f32 -1.442695, %v2308_v4 }
 0x6f0   :  { %2653 = vpow2.f32 %v2541_v35 }
 0x6f1   :  { %2655 = vpow2.f32 %v2542_v12  ;;  %v2436_v59 = vpop.xlane.xlu1 %2435  ;;  %v2311_v43 = vpop.xlane.xlu0 %2310 }
 0x6f2   :  { %v2544_v32 = vmul.f32 -1.442695, %v2436_v59  ;;  %v2543_v47 = vmul.f32 -1.442695, %v2311_v43  ;;  %v2368_v59 = vld [vmem:[#allocation6 + $0x10] sm:$0xff]  ;;  %v2369_v43 = vld [vmem:[#allocation6 + $0x18] sm:$0xff] }
 0x6f4   :  { %2657 = vpow2.f32 %v2544_v32 }
 0x6f5   :  { %2659 = vpow2.f32 %v2543_v47  ;;  %v2442_v0 = vpop.xlane.xlu1 %2441  ;;  %v2439_v56 = vpop.xlane.xlu0 %2438 }
 0x6f6   :  { %v2652_v27 = vpop.eup %2651  ;;  %v2546_v13 = vmul.f32 -1.442695, %v2442_v0  ;;  %v2545_v37 = vmul.f32 -1.442695, %v2439_v56  ;;  %v2238_v56 = vld [vmem:[#allocation6 + $0x68] sm:$0xff] }
 0x6f7   :  { %v2324_v38 = vadd.f32 1.0, %v2652_v27 }
 0x6f8   :  { %2661 = vpow2.f32 %v2546_v13 }
 0x6f9   :  { %2663 = vrcp.f32 %v2324_v38  ;;  %v2445_v33 = vpop.xlane.xlu0 %2444 }
 0x6fa   :  { %v2654_v51 = vpop.eup %2653  ;;  %2665 = vpow2.f32 %v2545_v37  ;;  %v2547_v23 = vmul.f32 -1.442695, %v2445_v33 }
 0x6fb   :  { %v2656_v10 = vpop.eup %2655  ;;  %v2325_v52 = vadd.f32 1.0, %v2654_v51 }
 0x6fc   :  { %v2326_v53 = vadd.f32 1.0, %v2656_v10  ;;  %2667 = vpow2.f32 %v2547_v23 }
 0x6fd   :  { %2669 = vrcp.f32 %v2325_v52  ;;  %v2373_v52 = vld [vmem:[#allocation6 + $0x58] sm:$0xff] }
 0x6fe   :  { %v2658_v62 = vpop.eup %2657  ;;  %2671 = vrcp.f32 %v2326_v53 }
 0x6ff   :  { %v2660_v42 = vpop.eup %2659  ;;  %v2458_v7 = vadd.f32 1.0, %v2658_v62 }
 0x700   :  { %v2327_v15 = vadd.f32 1.0, %v2660_v42 }
 0x701   :  { %2673 = vrcp.f32 %v2458_v7 }
 0x702   :  { %v2662_v19 = vpop.eup %2661  ;;  %2675 = vrcp.f32 %v2327_v15  ;;  %v2370_v15 = vld [vmem:[#allocation6 + $0x30] sm:$0xff] }
 0x703   :  { %v2664_v2 = vpop.eup %2663  ;;  %v2460_v57 = vadd.f32 1.0, %v2662_v19  ;;  %v2371_v19 = vld [vmem:[#allocation6 + $0x38] sm:$0xff] }
 0x704   :  { %v2666_v44 = vpop.eup %2665  ;;  %v2336_v55 = vmul.f32 %v2664_v2, %v4751_v28  ;;  %v2337_v22 = vmul.f32 %v2664_v2, %v4753_v63  ;;  %v2235_v28 = vld [vmem:[#allocation6 + $0x40] sm:$0xff] }
 0x705   :  { %2677 = vrcp.f32 %v2460_v57  ;;  %v2459_v31 = vadd.f32 1.0, %v2666_v44 }
 0x706   :  { %v2668_v14 = vpop.eup %2667  ;;  %v2344_v60 = vadd.f32 %v2336_v55, %v2231_v46  ;;  %v2345_v29 = vadd.f32 %v2337_v22, %v2232_v18 }
 0x707   :  { %v2670_v49 = vpop.eup %2669  ;;  %2679 = vrcp.f32 %v2459_v31  ;;  %v2461_v26 = vadd.f32 1.0, %v2668_v14  ;;  %v2374_v31 = vld [vmem:[#allocation6 + $0x70] sm:$0xff]  ;;  %v2375_v14 = vld [vmem:[#allocation6 + $0x78] sm:$0xff] }
 0x708   :  { %v2672_v34 = vpop.eup %2671  ;;  %v2352_v1 = vmax.f32 %v2344_v60, 0.0  ;;  %v2353_v8 = vmax.f32 %v2345_v29, 0.0  ;;  %v2338_v5 = vmul.f32 %v2670_v49, %v4755_v40  ;;  %v2339_v16 = vmul.f32 %v2670_v49, %v4759_v61 }
 0x709   :  { %v2340_v63 = vmul.f32 %v2672_v34, %v4773_v20  ;;  %v2341_v25 = vmul.f32 %v2672_v34, %v4775_v50  ;;  %2681 = vrcp.f32 %v2461_v26  ;;  %v2237_v20 = vld [vmem:[#allocation6 + $0x60] sm:$0xff] }
 0x70a   :  { %2360 = vst [vmem:[#allocation8] sm:$0xff] %v2352_v1  ;;  %2361 = vst [vmem:[#allocation8 + $0x8] sm:$0xff] %v2353_v8  ;;  %v2346_v3 = vadd.f32 %v2338_v5, %v2233_v41  ;;  %v2347_v45 = vadd.f32 %v2339_v16, %v2234_v39 }
 0x70b   :  { %v2674_v4 = vpop.eup %2673  ;;  %v2348_v35 = vadd.f32 %v2340_v63, %v2235_v28  ;;  %v2349_v12 = vadd.f32 %v2341_v25, %v2236_v48 }
 0x70c   :  { %v2676_v32 = vpop.eup %2675  ;;  %v2354_v40 = vmax.f32 %v2346_v3, 0.0  ;;  %v2355_v47 = vmax.f32 %v2347_v45, 0.0  ;;  %v2470_v61 = vmul.f32 %v2674_v4, %v4761_v24  ;;  %v2471_v0 = vmul.f32 %v2674_v4, %v4765_v54  ;;  %v2372_v24 = vld [vmem:[#allocation6 + $0x50] sm:$0xff] }
 0x70d   :  { %v2356_v50 = vmax.f32 %v2348_v35, 0.0  ;;  %v2357_v27 = vmax.f32 %v2349_v12, 0.0  ;;  %v2342_v13 = vmul.f32 %v2676_v32, %v4781_v9  ;;  %v2343_v37 = vmul.f32 %v2676_v32, %v4783_v30 }
 0x70e   :  { %2362 = vst [vmem:[#allocation8 + $0x20] sm:$0xff] %v2354_v40  ;;  %2363 = vst [vmem:[#allocation8 + $0x28] sm:$0xff] %v2355_v47  ;;  %v2478_v38 = vadd.f32 %v2470_v61, %v2368_v59  ;;  %v2479_v33 = vadd.f32 %v2471_v0, %v2369_v43 }
 0x70f   :  { %v2678_v51 = vpop.eup %2677  ;;  %2364 = vst [vmem:[#allocation8 + $0x40] sm:$0xff] %v2356_v50  ;;  %2365 = vst [vmem:[#allocation8 + $0x48] sm:$0xff] %v2357_v27  ;;  %v2350_v23 = vadd.f32 %v2342_v13, %v2237_v20  ;;  %v2351_v10 = vadd.f32 %v2343_v37, %v2238_v56 }
 0x710   :  { %v2486_v54 = vmax.f32 %v2478_v38, 0.0  ;;  %v2487_v53 = vmax.f32 %v2479_v33, 0.0  ;;  %v2474_v62 = vmul.f32 %v2678_v51, %v4785_v36  ;;  %v2475_v42 = vmul.f32 %v2678_v51, %v4787_v21 }
 0x711   :  { %v2680_v9 = vpop.eup %2679  ;;  %v2358_v7 = vmax.f32 %v2350_v23, 0.0  ;;  %v2359_v30 = vmax.f32 %v2351_v10, 0.0 }
 0x712   :  { %2494 = vst [vmem:[#allocation8 + $0x10] sm:$0xff] %v2486_v54  ;;  %2495 = vst [vmem:[#allocation8 + $0x18] sm:$0xff] %v2487_v53  ;;  %v2482_v2 = vadd.f32 %v2474_v62, %v2372_v24  ;;  %v2483_v46 = vadd.f32 %v2475_v42, %v2373_v52  ;;  %v2472_v18 = vmul.f32 %v2680_v9, %v4769_v11 }
 0x713   :  { %v2473_v57 = vmul.f32 %v2680_v9, %v4771_v6  ;;  %v2682_v44 = vpop.eup %2681  ;;  %2366 = vst [vmem:[#allocation8 + $0x60] sm:$0xff] %v2358_v7  ;;  %2367 = vst [vmem:[#allocation8 + $0x68] sm:$0xff] %v2359_v30 }
 0x714   :  { %v2490_v55 = vmax.f32 %v2482_v2, 0.0  ;;  %v2491_v36 = vmax.f32 %v2483_v46, 0.0  ;;  %v2480_v22 = vadd.f32 %v2472_v18, %v2370_v15  ;;  %v2476_v60 = vmul.f32 %v2682_v44, %v4793_v17 }
 0x715   :  { %v2481_v21 = vadd.f32 %v2473_v57, %v2371_v19  ;;  %v2477_v29 = vmul.f32 %v2682_v44, %v4795_v58 }
 0x716   :  { %2498 = vst [vmem:[#allocation8 + $0x50] sm:$0xff] %v2490_v55  ;;  %2499 = vst [vmem:[#allocation8 + $0x58] sm:$0xff] %v2491_v36  ;;  %v2488_v49 = vmax.f32 %v2480_v22, 0.0  ;;  %v2484_v11 = vadd.f32 %v2476_v60, %v2374_v31 }
 0x717   :  { %v2489_v41 = vmax.f32 %v2481_v21, 0.0  ;;  %v2485_v6 = vadd.f32 %v2477_v29, %v2375_v14 }
 0x718   :  { %2496 = vst [vmem:[#allocation8 + $0x30] sm:$0xff] %v2488_v49  ;;  %v2492_v39 = vmax.f32 %v2484_v11, 0.0 }
 0x719   :  { %2497 = vst [vmem:[#allocation8 + $0x38] sm:$0xff] %v2489_v41  ;;  %v2493_v26 = vmax.f32 %v2485_v6, 0.0 }
 0x71a   :  { %2500 = vst [vmem:[#allocation8 + $0x70] sm:$0xff] %v2492_v39 }
 0x71b   :  { %2501 = vst [vmem:[#allocation8 + $0x78] sm:$0xff] %v2493_v26 }
 0x71c   :  { %2746 = shalt.err (!%p2743_p6)
}
 0x71d   :  { %s2747_s8 = scalar_lea.hbm %s4866_s4, 2048 }
 0x71e   :  { %p2748_p7 = scmp.ne.s32.totalorder %s4866_s4, %s2747_s8  ;;  %p2751_p8 = scmp.lt.u32.totalorder %s2747_s8, %s4866_s4 }
 0x720   :  { %p2753_p9 = pnand %p2751_p8, %p2748_p7 }
 0x722   :  { %2756 = shalt.err (!%p2753_p9)
}
 0x723   :  { %2513 = dma.vmem_to_hbm [thread:$0]  %s2508_s30, 2048, %s4866_s4, [#allocation5], %s2767_s0, %s2767_s0, %s2768_s13  }
 0x724   :  { %2761 = dma.done.wait [#allocation5], 2048  }
 0x725   :  { %2762 = vsyncadd [#allocation5], 4294965248 }
 0x726   :  { %2517 = vsyncpa [#allocation4], 1 }
 0x727   :  { %2518 = vsyncpa [#allocation7], 1 }
 0x728   :  { %2519 = vsyncpa [#allocation5], 1 }

</bundles_post_ra>
